<compile_context>
chip_gen: v7x
topology: tpu7x:2x2x1
jax: 0.10.0
libtpu: 0.0.40
codegen_flags: <defaults>
</compile_context>

<pallas_src>
import functools

import numpy as np
import jax
import jax.numpy as jnp
from jax.experimental import pallas as pl
from jax.experimental.pallas import tpu as pltpu


# ----------------------------------------------------------------------------
# In-kernel helpers
# ----------------------------------------------------------------------------
def _erf_approx(x):
    # Abramowitz & Stegun 7.1.26 rational approximation of erf, |err| < 1.5e-7.
    a1, a2, a3, a4, a5 = 0.254829592, -0.284496736, 1.421413741, -1.453152027, 1.061405429
    p = 0.3275911
    s = jnp.where(x >= 0.0, 1.0, -1.0)
    ax = jnp.abs(x)
    t = 1.0 / (1.0 + p * ax)
    poly = ((((a5 * t + a4) * t + a3) * t + a2) * t + a1) * t
    return s * (1.0 - poly * jnp.exp(-ax * ax))


def _gelu_exact(x):
    # nn.GELU() default is the exact erf-based GELU.
    return 0.5 * x * (1.0 + _erf_approx(x * 0.7071067811865476))


def _layernorm_f32(x, g, b, eps=1e-5):
    mu = jnp.mean(x, axis=-1, keepdims=True)
    var = jnp.mean(jnp.square(x - mu), axis=-1, keepdims=True)
    return (x - mu) * jax.lax.rsqrt(var + eps) * g + b


# ----------------------------------------------------------------------------
# VMEM / tiling heuristics (generation aware)
# ----------------------------------------------------------------------------
def _vmem_limit():
    """~75% of physical VMEM (96 MiB on v5e/v6e, 48 MiB on v7x); safe fallback."""
    cap = 64 * 1024 * 1024
    try:
        info = pltpu.get_tpu_info()
        cap = int(getattr(info, "vmem_capacity_bytes", cap))
    except Exception:
        pass
    return int(cap * 3 // 4)


def _resident_spec(shape):
    """BlockSpec for grid-invariant (weight/bias) blocks: single-buffered."""
    zero = (0,) * len(shape)
    try:
        return pl.BlockSpec(shape, lambda *_: zero, pipeline_mode=pl.Buffered(1))
    except (TypeError, ValueError, AttributeError):
        # older jax without pipeline_mode / Buffered(1): fall back to default.
        return pl.BlockSpec(shape, lambda *_: zero)


def _pick_window_batch(B, nW, N, C, num_heads):
    """Largest divisor of nW whose per-step working set fits the VMEM budget,
    while keeping >= 2 total grid steps so both v7x TensorCores get work."""
    limit = _vmem_limit()
    resident = ((C * 3 * C + C * C) * 2            # bf16 qkv + proj weights (single buffer)
                + (4 * C + 2 * C) * 4              # biases + ln params (f32)
                + num_heads * N * N * 4)           # rel-pos bias
    budget = max(int(limit * 0.6) - resident, 2 * 1024 * 1024)
    per_w = (2 * 2 * N * C * 4                     # x in + out blocks, double buffered
             + 2 * N * N * 4                       # shift mask block, double buffered
             + N * 3 * C * 4                       # f32 qkv intermediate
             + N * C * 4                           # ctx scratch
             + 3 * N * N * 4)                      # score / exp working set per head
    divisors = [d for d in range(1, nW + 1) if nW % d == 0]
    fitting = [d for d in divisors if d * per_w <= budget] or [1]
    best = fitting[-1]
    if B * (nW // best) < 2:                       # keep both TCs busy on v7x
        for d in reversed(fitting):
            if B * (nW // d) >= 2:
                best = d
                break
    return best


def _pick_tile_m(M, C, hidden):
    """Row tile for the fused LN2+MLP kernel that fits VMEM and fills MXU rows."""
    limit = _vmem_limit()
    resident = ((C * hidden + hidden * C) * 2      # bf16 fc1 + fc2 (single buffer)
                + (hidden + 3 * C) * 4)            # biases + ln params
    budget = max(int(limit * 0.6) - resident, 2 * 1024 * 1024)
    per_row = (2 * 2 * C * 4                       # attn + shortcut inputs (double buffer)
               + 2 * C * 4                         # output (double buffer)
               + 4 * C * 4                         # x / xn / y f32 temps
               + 3 * hidden * 4)                   # fc1 activation temps
    tm = max(8, min(M, budget // per_row))
    if tm >= 256:
        tm = (tm // 256) * 256                     # fill 256-wide MXU rows (v6e/v7x)
    else:
        tm = max(8, (tm // 8) * 8)
    if tm >= M and M > 8:                          # >= 2 grid steps for megacore
        tm = -(-M // 2)
        tm = -(-tm // 8) * 8
    return min(tm, M)


# ----------------------------------------------------------------------------
# Pallas kernels
# ----------------------------------------------------------------------------
def _ln_kernel(x_ref, g_ref, b_ref, o_ref):
    # Standalone LN1 (only used when spatial padding is required).
    x = x_ref[...].astype(jnp.float32)                        # (tm, C)
    o_ref[...] = _layernorm_f32(x, g_ref[...], b_ref[...]).astype(o_ref.dtype)


def _wmsa_kernel(*refs, num_heads, fuse_ln, has_mask):
    if has_mask:
        (x_ref, g_ref, b_ref, wqkv_ref, bqkv_ref, wproj_ref, bproj_ref,
         rel_ref, mask_ref, o_ref, ctx_ref) = refs
    else:
        (x_ref, g_ref, b_ref, wqkv_ref, bqkv_ref, wproj_ref, bproj_ref,
         rel_ref, o_ref, ctx_ref) = refs
        mask_ref = None

    _, Wb, N, C = x_ref.shape
    nh = num_heads
    hd = C // nh

    # (1, Wb, N, C) block of window tokens -> (Wb*N, C), optional fused LN1.
    x2 = x_ref[0].astype(jnp.float32).reshape(Wb * N, C)
    if fuse_ln:
        x2 = _layernorm_f32(x2, g_ref[...], b_ref[...])

    # Full-width QKV matmul (bf16 operands, f32 acc); qk scale already folded
    # into the Q columns of wqkv/bqkv.
    qkv = jnp.dot(x2.astype(jnp.bfloat16), wqkv_ref[...],
                  preferred_element_type=jnp.float32) + bqkv_ref[...]   # (Wb*N, 3C)

    if has_mask:
        mask = mask_ref[...]                                  # (Wb, N, N) f32

    for h in range(nh):                                       # static head loop
        q = qkv[:, h * hd:(h + 1) * hd].reshape(Wb, N, hd)
        k = qkv[:, C + h * hd:C + (h + 1) * hd].reshape(Wb, N, hd)
        v = qkv[:, 2 * C + h * hd:2 * C + (h + 1) * hd].reshape(Wb, N, hd)
        # window-batched scores: (Wb,N,hd) x (Wb,N,hd) -> (Wb,N,N)
        s = jnp.einsum('wnd,wmd->wnm',
                       q.astype(jnp.bfloat16), k.astype(jnp.bfloat16),
                       preferred_element_type=jnp.float32)
        s = s + rel_ref[h][None]
        if has_mask:
            s = s + mask
        # manual softmax: normalize AFTER the AV matmul with an EUP reciprocal.
        m = jnp.max(s, axis=-1, keepdims=True)
        e = jnp.exp(s - m)
        inv_l = pl.reciprocal(jnp.sum(e, axis=-1, keepdims=True), approx=True)
        o_h = jnp.einsum('wnm,wmd->wnd',
                         e.astype(jnp.bfloat16), v.astype(jnp.bfloat16),
                         preferred_element_type=jnp.float32)            # (Wb,N,hd)
        # write the head result into its lane slice of the ctx scratch
        # (no jnp.concatenate, no nh live f32 buffers).
        ctx_ref[:, h * hd:(h + 1) * hd] = (o_h * inv_l).reshape(Wb * N, hd)

    # single output projection with K = C (good MXU depth fill).
    y = jnp.dot(ctx_ref[...].astype(jnp.bfloat16), wproj_ref[...],
                preferred_element_type=jnp.float32) + bproj_ref[...]
    o_ref[0] = y.reshape(Wb, N, C).astype(o_ref.dtype)


def _mlp_kernel(a_ref, s_ref, g_ref, beta_ref, w1_ref, b1_ref, w2_ref, b2_ref,
                o_ref):
    # Fused: x = shortcut + attn ; xn = LN2(x) ; y = fc2(gelu(fc1(xn))) ; out = x + y
    x = s_ref[...].astype(jnp.float32) + a_ref[...].astype(jnp.float32)   # (tm, C)
    xn = _layernorm_f32(x, g_ref[...], beta_ref[...])
    h = jnp.dot(xn.astype(jnp.bfloat16), w1_ref[...],
                preferred_element_type=jnp.float32) + b1_ref[...]
    h = _gelu_exact(h)
    y = jnp.dot(h.astype(jnp.bfloat16), w2_ref[...],
                preferred_element_type=jnp.float32) + b2_ref[...]
    o_ref[...] = (x + y).astype(o_ref.dtype)


# ----------------------------------------------------------------------------
# Pallas wrappers
# ----------------------------------------------------------------------------
def layernorm(x2d, g, b, *, tile_m=512):
    """Standalone LN1 (fallback path, only when spatial padding is needed)."""
    M, C = x2d.shape
    tm = M if M <= tile_m else tile_m
    grid = (pl.cdiv(M, tm),)
    return pl.pallas_call(
        _ln_kernel,
        out_shape=jax.ShapeDtypeStruct((M, C), x2d.dtype),
        grid=grid,
        in_specs=[pl.BlockSpec((tm, C), lambda i: (i, 0)),
                  _resident_spec((1, C)),
                  _resident_spec((1, C))],
        out_specs=pl.BlockSpec((tm, C), lambda i: (i, 0)),
        compiler_params=pltpu.CompilerParams(
            dimension_semantics=("parallel",),
            vmem_limit_bytes=_vmem_limit()),
    )(x2d, g.reshape(1, C), b.reshape(1, C))


def window_attention(xw, fp, mask, *, num_heads, fuse_ln):
    B, nW, N, C = xw.shape
    has_mask = mask is not None
    Wb = _pick_window_batch(B, nW, N, C, num_heads)
    kernel = functools.partial(_wmsa_kernel, num_heads=num_heads,
                               fuse_ln=fuse_ln, has_mask=has_mask)

    in_specs = [
        pl.BlockSpec((1, Wb, N, C), lambda b, w: (b, w, 0, 0)),   # window tokens
        _resident_spec((1, C)),                                   # ln1 gamma
        _resident_spec((1, C)),                                   # ln1 beta
        _resident_spec((C, 3 * C)),                               # W_qkv bf16 (q-scaled)
        _resident_spec((1, 3 * C)),                               # b_qkv (q-scaled)
        _resident_spec((C, C)),                                   # W_proj bf16
        _resident_spec((1, C)),                                   # b_proj
        _resident_spec((num_heads, N, N)),                        # rel-pos bias
    ]
    args = [xw, fp['ln1_g2d'], fp['ln1_b2d'], fp['w_qkv_s'], fp['b_qkv_s'],
            fp['w_proj_bf'], fp['b_proj2d'], fp['rel_bias']]
    if has_mask:
        in_specs.append(pl.BlockSpec((Wb, N, N), lambda b, w: (w, 0, 0)))
        args.append(mask)

    return pl.pallas_call(
        kernel,
        out_shape=jax.ShapeDtypeStruct((B, nW, N, C), xw.dtype),
        grid=(B, nW // Wb),
        in_specs=in_specs,
        out_specs=pl.BlockSpec((1, Wb, N, C), lambda b, w: (b, w, 0, 0)),
        scratch_shapes=[pltpu.VMEM((Wb * N, C), jnp.float32)],    # head ctx assembly
        compiler_params=pltpu.CompilerParams(
            dimension_semantics=("parallel", "parallel"),
            vmem_limit_bytes=_vmem_limit()),
    )(*args)


def mlp_block(attn2d, shortcut2d, fp):
    """Fused residual + LN2 + MLP + residual, tiled over rows."""
    M, C = attn2d.shape
    hidden = fp['w_fc1_bf'].shape[1]
    tm = _pick_tile_m(M, C, hidden)
    grid = (pl.cdiv(M, tm),)
    return pl.pallas_call(
        _mlp_kernel,
        out_shape=jax.ShapeDtypeStruct((M, C), attn2d.dtype),
        grid=grid,
        in_specs=[
            pl.BlockSpec((tm, C), lambda i: (i, 0)),              # attention branch
            pl.BlockSpec((tm, C), lambda i: (i, 0)),              # shortcut
            _resident_spec((1, C)),                               # ln2 gamma
            _resident_spec((1, C)),                               # ln2 beta
            _resident_spec((C, hidden)),                          # W_fc1 bf16
            _resident_spec((1, hidden)),                          # b_fc1
            _resident_spec((hidden, C)),                          # W_fc2 bf16
            _resident_spec((1, C)),                               # b_fc2
        ],
        out_specs=pl.BlockSpec((tm, C), lambda i: (i, 0)),
        compiler_params=pltpu.CompilerParams(
            dimension_semantics=("parallel",),
            vmem_limit_bytes=_vmem_limit()),
    )(attn2d, shortcut2d, fp['ln2_g2d'], fp['ln2_b2d'],
      fp['w_fc1_bf'], fp['b_fc12d'], fp['w_fc2_bf'], fp['b_fc22d'])


# ----------------------------------------------------------------------------
# Static (numpy) helpers: relative position index, shift-window mask
# ----------------------------------------------------------------------------
def relative_position_index(ws):
    coords = np.stack(np.meshgrid(np.arange(ws), np.arange(ws), indexing="ij"))
    coords_flat = coords.reshape(2, -1)
    rel = coords_flat[:, :, None] - coords_flat[:, None, :]
    rel = rel.transpose(1, 2, 0).copy()
    rel[:, :, 0] += ws - 1
    rel[:, :, 1] += ws - 1
    rel[:, :, 0] *= 2 * ws - 1
    return rel.sum(-1)                                                  # (N, N)


def get_attn_mask(hw_pad, ws, ss):
    Hp, Wp = hw_pad
    N = ws * ws
    nW = (Hp // ws) * (Wp // ws)
    if ss <= 0:
        return np.zeros((nW, N, N), np.float32)
    img_mask = np.zeros((1, Hp, Wp, 1), np.float32)
    slices = (slice(0, -ws), slice(-ws, -ss), slice(-ss, None))
    cnt = 0
    for h in slices:
        for w in slices:
            img_mask[:, h, w, :] = cnt
            cnt += 1
    mw = img_mask.reshape(1, Hp // ws, ws, Wp // ws, ws, 1)
    mw = mw.transpose(0, 1, 3, 2, 4, 5).reshape(-1, N)                  # (nW, N)
    attn_mask = mw[:, None, :] - mw[:, :, None]                         # (nW, N, N)
    return np.where(attn_mask != 0, -100.0, 0.0).astype(np.float32)


# ----------------------------------------------------------------------------
# One-time parameter preparation (bf16 casts, scale folding, rel-bias gather)
# ----------------------------------------------------------------------------
def prepare_params(p, num_heads, window_size):
    C = p['w_qkv'].shape[0]
    hd = C // num_heads
    N = window_size * window_size
    scale = float(hd) ** -0.5
    hidden = p['w_fc1'].shape[1]
    # fold qk scale into the Q third of the qkv projection (weights AND bias,
    # matching `q = (x W_q + b_q) * scale` in the reference).
    scale_vec = jnp.concatenate([jnp.full((C,), scale, jnp.float32),
                                 jnp.ones((2 * C,), jnp.float32)])
    rel_idx = relative_position_index(window_size)
    rel_bias = (p['rel_bias_table'][rel_idx.reshape(-1)]
                .reshape(N, N, num_heads).transpose(2, 0, 1)).astype(jnp.float32)
    return dict(
        ln1_g=p['ln1_g'], ln1_b=p['ln1_b'],                   # fallback LN path
        ln1_g2d=p['ln1_g'].reshape(1, C), ln1_b2d=p['ln1_b'].reshape(1, C),
        ln2_g2d=p['ln2_g'].reshape(1, C), ln2_b2d=p['ln2_b'].reshape(1, C),
        w_qkv_s=(p['w_qkv'] * scale_vec[None, :]).astype(jnp.bfloat16),
        b_qkv_s=(p['b_qkv'] * scale_vec).reshape(1, 3 * C).astype(jnp.float32),
        w_proj_bf=p['w_proj'].astype(jnp.bfloat16),
        b_proj2d=p['b_proj'].reshape(1, C),
        w_fc1_bf=p['w_fc1'].astype(jnp.bfloat16),
        b_fc12d=p['b_fc1'].reshape(1, hidden),
        w_fc2_bf=p['w_fc2'].astype(jnp.bfloat16),
        b_fc22d=p['b_fc2'].reshape(1, C),
        rel_bias=rel_bias,
    )


# ----------------------------------------------------------------------------
# Full SwinTransformerBlock forward (Pallas kernels + XLA layout glue)
# ----------------------------------------------------------------------------
def swin_block_forward(query, fp, *, hw_shape, window_size, shift_size,
                       num_heads, pad_small_map=False):
    B, L, C = query.shape
    H, W = hw_shape
    assert L == H * W
    ws = window_size
    ss = shift_size
    if min(H, W) == ws:
        ss = ss if pad_small_map else 0
    elif min(H, W) < ws:
        assert pad_small_map

    shortcut2d = query.reshape(B * L, C)

    pad_r = (ws - W % ws) % ws
    pad_b = (ws - H % ws) % ws
    # Fuse LN1 into the attention kernel when no padding is needed (LN commutes
    # with roll/partition).  With padding, LN must precede zero padding so the
    # padded K/V rows stay exactly zero -> use the standalone LN kernel.
    fuse_ln = (pad_r == 0 and pad_b == 0)

    x = query
    if not fuse_ln:
        x = layernorm(x.reshape(B * L, C), fp['ln1_g'], fp['ln1_b'])
    x = x.reshape(B, H, W, C)
    x = jnp.pad(x, ((0, 0), (0, pad_b), (0, pad_r), (0, 0)))
    Hp, Wp = H + pad_b, W + pad_r
    if ss > 0:
        x = jnp.roll(x, shift=(-ss, -ss), axis=(1, 2))

    nWh, nWw = Hp // ws, Wp // ws
    nW = nWh * nWw
    N = ws * ws
    xw = (x.reshape(B, nWh, ws, nWw, ws, C)
           .transpose(0, 1, 3, 2, 4, 5)
           .reshape(B, nW, N, C))

    mask = None
    if ss > 0:                                                # shift==0 -> no mask DMA
        mask = jnp.asarray(get_attn_mask((Hp, Wp), ws, ss), jnp.float32)

    aw = window_attention(xw, fp, mask, num_heads=num_heads, fuse_ln=fuse_ln)

    a = (aw.reshape(B, nWh, nWw, ws, ws, C)
           .transpose(0, 1, 3, 2, 4, 5)
           .reshape(B, Hp, Wp, C))
    if ss > 0:
        a = jnp.roll(a, shift=(ss, ss), axis=(1, 2))
    a2d = a[:, :H, :W, :].reshape(B * L, C)

    # Fused: (shortcut + attn) -> LN2 -> MLP -> + residual.  DropPath(p=0)==Id.
    out = mlp_block(a2d, shortcut2d, fp).reshape(B, L, C)
    return out, hw_shape


# ----------------------------------------------------------------------------
# Pure-JAX reference (for correctness check)
# ----------------------------------------------------------------------------
def reference_forward(query, hw_shape, p, *, window_size, shift_size,
                      num_heads, pad_small_map=False):
    hp = jax.lax.Precision.HIGHEST

    def ln(x, g, b):
        mu = x.mean(-1, keepdims=True)
        var = ((x - mu) ** 2).mean(-1, keepdims=True)
        return (x - mu) / jnp.sqrt(var + 1e-5) * g + b

    B, L, C = query.shape
    H, W = hw_shape
    ws = window_size
    ss = shift_size
    if min(H, W) == ws:
        ss = ss if pad_small_map else 0

    shortcut = query
    x = ln(query, p['ln1_g'], p['ln1_b']).reshape(B, H, W, C)
    pad_r = (ws - W % ws) % ws
    pad_b = (ws - H % ws) % ws
    x = jnp.pad(x, ((0, 0), (0, pad_b), (0, pad_r), (0, 0)))
    Hp, Wp = x.shape[1], x.shape[2]
    if ss > 0:
        x = jnp.roll(x, (-ss, -ss), axis=(1, 2))
    nWh, nWw = Hp // ws, Wp // ws
    nW = nWh * nWw
    N = ws * ws
    xw = (x.reshape(B, nWh, ws, nWw, ws, C)
           .transpose(0, 1, 3, 2, 4, 5).reshape(B * nW, N, C))

    nh = num_heads
    hd = C // nh
    scale = hd ** -0.5
    qkv = jnp.einsum('bnc,cd->bnd', xw, p['w_qkv'], precision=hp) + p['b_qkv']
    qkv = qkv.reshape(B * nW, N, 3, nh, hd).transpose(2, 0, 3, 1, 4)
    q, k, v = qkv[0] * scale, qkv[1], qkv[2]
    attn = jnp.einsum('bhnd,bhmd->bhnm', q, k, precision=hp)

    rel_idx = relative_position_index(ws)
    rel_bias = (p['rel_bias_table'][rel_idx.reshape(-1)]
                .reshape(N, N, nh).transpose(2, 0, 1))
    attn = attn + rel_bias[None]
    mask = jnp.asarray(get_attn_mask((Hp, Wp), ws, ss), jnp.float32)
    attn = attn.reshape(B, nW, nh, N, N) + mask[None, :, None]
    attn = jax.nn.softmax(attn.reshape(B * nW, nh, N, N), axis=-1)
    out = (jnp.einsum('bhnm,bhmd->bhnd', attn, v, precision=hp)
           .transpose(0, 2, 1, 3).reshape(B * nW, N, C))
    out = jnp.einsum('bnc,cd->bnd', out, p['w_proj'], precision=hp) + p['b_proj']

    x = (out.reshape(B, nWh, nWw, ws, ws, C)
            .transpose(0, 1, 3, 2, 4, 5).reshape(B, Hp, Wp, C))
    if ss > 0:
        x = jnp.roll(x, (ss, ss), axis=(1, 2))
    x = x[:, :H, :W, :].reshape(B, L, C)
    x = shortcut + x
    xn = ln(x, p['ln2_g'], p['ln2_b'])
    h = jax.nn.gelu(jnp.einsum('blc,ch->blh', xn, p['w_fc1'], precision=hp)
                    + p['b_fc1'], approximate=False)
    y = jnp.einsum('blh,hc->blc', h, p['w_fc2'], precision=hp) + p['b_fc2']
    return x + y, hw_shape


# ----------------------------------------------------------------------------
# Deterministic parameter init
# ----------------------------------------------------------------------------
def init_params(key, C, num_heads, ws, mlp_ratio=4.0):
    hidden = int(C * mlp_ratio)
    std = 0.02
    ks = jax.random.split(key, 9)
    return dict(
        ln1_g=jnp.ones((C,), jnp.float32), ln1_b=jnp.zeros((C,), jnp.float32),
        ln2_g=jnp.ones((C,), jnp.float32), ln2_b=jnp.zeros((C,), jnp.float32),
        w_qkv=std * jax.random.normal(ks[0], (C, 3 * C), jnp.float32),
        b_qkv=std * jax.random.normal(ks[1], (3 * C,), jnp.float32),
        w_proj=std * jax.random.normal(ks[2], (C, C), jnp.float32),
        b_proj=std * jax.random.normal(ks[3], (C,), jnp.float32),
        w_fc1=std * jax.random.normal(ks[4], (C, hidden), jnp.float32),
        b_fc1=std * jax.random.normal(ks[5], (hidden,), jnp.float32),
        w_fc2=std * jax.random.normal(ks[6], (hidden, C), jnp.float32),
        b_fc2=std * jax.random.normal(ks[7], (C,), jnp.float32),
        rel_bias_table=std * jax.random.normal(
            ks[8], ((2 * ws - 1) * (2 * ws - 1), num_heads), jnp.float32),
    )


if __name__ == "__main__":
    B, H, W, C = 2, 8, 8, 32
    window_size, shift_size, num_heads = 4, 2, 4

    key = jax.random.PRNGKey(0)
    kq, kp = jax.random.split(key)
    query = jax.random.normal(kq, (B, H * W, C), jnp.float32)
    params = init_params(kp, C, num_heads, window_size)
    fparams = prepare_params(params, num_heads, window_size)    # one-time prep

    fwd = jax.jit(functools.partial(
        swin_block_forward, hw_shape=(H, W), window_size=window_size,
        shift_size=shift_size, num_heads=num_heads))

    out, out_hw = fwd(query, fparams)
    out = jax.block_until_ready(out)
    assert out.shape == (B, H * W, C)
    assert int(out_hw[0]) == H and int(out_hw[1]) == W

    ref, _ = reference_forward(query, (H, W), params,
                               window_size=window_size,
                               shift_size=shift_size,
                               num_heads=num_heads)
    ref = jax.block_until_ready(ref)
    # bf16 matmul operands + EUP approx reciprocal vs f32 HIGHEST reference.
    np.testing.assert_allclose(np.asarray(out), np.asarray(ref),
                               rtol=1e-2, atol=5e-3)
    print("KERNEL_OK")
</pallas_src>

<mosaic_0001>
module attributes {stable_mosaic.version = 11 : i64} {
  func.func @_wmsa_kernel(%arg0: i32, %arg1: i32, %arg2: memref<1x4x16x32xf32, #tpu.memory_space<vmem>>, %arg3: memref<1x32xf32, #tpu.memory_space<vmem>>, %arg4: memref<1x32xf32, #tpu.memory_space<vmem>>, %arg5: memref<32x96xbf16, #tpu.memory_space<vmem>>, %arg6: memref<1x96xf32, #tpu.memory_space<vmem>>, %arg7: memref<32x32xbf16, #tpu.memory_space<vmem>>, %arg8: memref<1x32xf32, #tpu.memory_space<vmem>>, %arg9: memref<4x16x16xf32, #tpu.memory_space<vmem>>, %arg10: memref<4x16x16xf32, #tpu.memory_space<vmem>>, %arg11: memref<1x4x16x32xf32, #tpu.memory_space<vmem>>, %arg12: memref<64x32xf32, #tpu.memory_space<vmem>>) attributes {dimension_semantics = [#tpu.dimension_semantics<parallel>, #tpu.dimension_semantics<parallel>], iteration_bounds = array<i64: 2, 1>, scalar_prefetch = 0 : i64, scratch_operands = 1 : i64, tpu.core_type = #tpu.core_type<tc>, window_params = [{transform_indices = @transform_0, window_bounds = array<i64: 1, 4, 16, 32>}, {pipeline_mode = #tpu.pipeline_mode<synchronous>, transform_indices = @transform_1, window_bounds = array<i64: 1, 32>}, {pipeline_mode = #tpu.pipeline_mode<synchronous>, transform_indices = @transform_2, window_bounds = array<i64: 1, 32>}, {pipeline_mode = #tpu.pipeline_mode<synchronous>, transform_indices = @transform_3, window_bounds = array<i64: 32, 96>}, {pipeline_mode = #tpu.pipeline_mode<synchronous>, transform_indices = @transform_4, window_bounds = array<i64: 1, 96>}, {pipeline_mode = #tpu.pipeline_mode<synchronous>, transform_indices = @transform_5, window_bounds = array<i64: 32, 32>}, {pipeline_mode = #tpu.pipeline_mode<synchronous>, transform_indices = @transform_6, window_bounds = array<i64: 1, 32>}, {pipeline_mode = #tpu.pipeline_mode<synchronous>, transform_indices = @transform_7, window_bounds = array<i64: 4, 16, 16>}, {transform_indices = @transform_8, window_bounds = array<i64: 4, 16, 16>}, {transform_indices = @transform_9, window_bounds = array<i64: 1, 4, 16, 32>}]} {
    %c0 = arith.constant 0 : index
    %c0_0 = arith.constant 0 : index
    %c0_1 = arith.constant 0 : index
    %c0_2 = arith.constant 0 : index
    %0 = vector.load %arg2[%c0, %c0_0, %c0_1, %c0_2] : memref<1x4x16x32xf32, #tpu.memory_space<vmem>>, vector<1x4x16x32xf32>
    %1 = vector.shape_cast %0 : vector<1x4x16x32xf32> to vector<4x16x32xf32>
    %2 = vector.shape_cast %1 : vector<4x16x32xf32> to vector<64x32xf32>
    %c0_3 = arith.constant 0 : index
    %c0_4 = arith.constant 0 : index
    %3 = vector.load %arg3[%c0_3, %c0_4] : memref<1x32xf32, #tpu.memory_space<vmem>>, vector<1x32xf32>
    %c0_5 = arith.constant 0 : index
    %c0_6 = arith.constant 0 : index
    %4 = vector.load %arg4[%c0_5, %c0_6] : memref<1x32xf32, #tpu.memory_space<vmem>>, vector<1x32xf32>
    %cst = arith.constant dense<0.000000e+00> : vector<64xf32>
    %5 = vector.multi_reduction <add>, %2, %cst [1] : vector<64x32xf32> to vector<64xf32>
    %6 = vector.shape_cast %5 : vector<64xf32> to vector<64x1xf32>
    %cst_7 = arith.constant 3.200000e+01 : f32
    %7 = vector.broadcast %cst_7 : f32 to vector<64x1xf32>
    %8 = arith.divf %6, %7 : vector<64x1xf32>
    %9 = vector.broadcast %8 : vector<64x1xf32> to vector<64x32xf32>
    %10 = arith.subf %2, %9 : vector<64x32xf32>
    %11 = arith.mulf %10, %10 : vector<64x32xf32>
    %cst_8 = arith.constant dense<0.000000e+00> : vector<64xf32>
    %12 = vector.multi_reduction <add>, %11, %cst_8 [1] : vector<64x32xf32> to vector<64xf32>
    %13 = vector.shape_cast %12 : vector<64xf32> to vector<64x1xf32>
    %cst_9 = arith.constant 3.200000e+01 : f32
    %14 = vector.broadcast %cst_9 : f32 to vector<64x1xf32>
    %15 = arith.divf %13, %14 : vector<64x1xf32>
    %16 = vector.broadcast %8 : vector<64x1xf32> to vector<64x32xf32>
    %17 = arith.subf %2, %16 : vector<64x32xf32>
    %cst_10 = arith.constant 9.99999974E-6 : f32
    %18 = vector.broadcast %cst_10 : f32 to vector<64x1xf32>
    %19 = arith.addf %15, %18 : vector<64x1xf32>
    %20 = math.rsqrt %19 : vector<64x1xf32>
    %21 = vector.broadcast %20 : vector<64x1xf32> to vector<64x32xf32>
    %22 = arith.mulf %17, %21 : vector<64x32xf32>
    %23 = vector.broadcast %3 : vector<1x32xf32> to vector<64x32xf32>
    %24 = arith.mulf %22, %23 : vector<64x32xf32>
    %25 = vector.broadcast %4 : vector<1x32xf32> to vector<64x32xf32>
    %26 = arith.addf %24, %25 : vector<64x32xf32>
    %27 = arith.truncf %26 : vector<64x32xf32> to vector<64x32xbf16>
    %c0_11 = arith.constant 0 : index
    %c0_12 = arith.constant 0 : index
    %28 = vector.load %arg5[%c0_11, %c0_12] : memref<32x96xbf16, #tpu.memory_space<vmem>>, vector<32x96xbf16>
    %cst_13 = arith.constant dense<0.000000e+00> : vector<64x96xf32>
    %29 = tpu.matmul %27, %28, %cst_13 {dimension_numbers = #tpu.dot_dimension_numbers<[1], [0], [0], [1], [0, 0, 1, 1], [], []>} : vector<64x32xbf16>, vector<32x96xbf16>, vector<64x96xf32> -> vector<64x96xf32>
    %c0_14 = arith.constant 0 : index
    %c0_15 = arith.constant 0 : index
    %30 = vector.load %arg6[%c0_14, %c0_15] : memref<1x96xf32, #tpu.memory_space<vmem>>, vector<1x96xf32>
    %31 = vector.broadcast %30 : vector<1x96xf32> to vector<64x96xf32>
    %32 = arith.addf %29, %31 : vector<64x96xf32>
    %c0_16 = arith.constant 0 : index
    %c0_17 = arith.constant 0 : index
    %c0_18 = arith.constant 0 : index
    %33 = vector.load %arg10[%c0_16, %c0_17, %c0_18] : memref<4x16x16xf32, #tpu.memory_space<vmem>>, vector<4x16x16xf32>
    %34 = vector.extract_strided_slice %32 {offsets = [0, 0], sizes = [64, 8], strides = [1, 1]} : vector<64x96xf32> to vector<64x8xf32>
    %35 = vector.shape_cast %34 : vector<64x8xf32> to vector<4x16x8xf32>
    %36 = vector.extract_strided_slice %32 {offsets = [0, 32], sizes = [64, 8], strides = [1, 1]} : vector<64x96xf32> to vector<64x8xf32>
    %37 = vector.shape_cast %36 : vector<64x8xf32> to vector<4x16x8xf32>
    %38 = vector.extract_strided_slice %32 {offsets = [0, 64], sizes = [64, 8], strides = [1, 1]} : vector<64x96xf32> to vector<64x8xf32>
    %39 = vector.shape_cast %38 : vector<64x8xf32> to vector<4x16x8xf32>
    %40 = arith.truncf %35 : vector<4x16x8xf32> to vector<4x16x8xbf16>
    %41 = arith.truncf %37 : vector<4x16x8xf32> to vector<4x16x8xbf16>
    "tpu.trace_start"() <{level = 10 : i32, message = "wnd,wmd->wnm"}> : () -> ()
    %cst_19 = arith.constant dense<0.000000e+00> : vector<4x16x16xf32>
    %42 = tpu.matmul %40, %41, %cst_19 {dimension_numbers = #tpu.dot_dimension_numbers<[2], [2], [1], [1], [0, 0, 0, 1, 1, 1], [0], [0]>} : vector<4x16x8xbf16>, vector<4x16x8xbf16>, vector<4x16x16xf32> -> vector<4x16x16xf32>
    "tpu.trace_stop"() : () -> ()
    %c0_20 = arith.constant 0 : index
    %c0_21 = arith.constant 0 : index
    %c0_22 = arith.constant 0 : index
    %43 = vector.load %arg9[%c0_20, %c0_21, %c0_22] : memref<4x16x16xf32, #tpu.memory_space<vmem>>, vector<1x16x16xf32>
    %44 = vector.shape_cast %43 : vector<1x16x16xf32> to vector<16x16xf32>
    %45 = vector.shape_cast %44 : vector<16x16xf32> to vector<1x16x16xf32>
    %46 = vector.broadcast %45 : vector<1x16x16xf32> to vector<4x16x16xf32>
    %47 = arith.addf %42, %46 : vector<4x16x16xf32>
    %48 = arith.addf %47, %33 : vector<4x16x16xf32>
    %cst_23 = arith.constant dense<0xFF800000> : vector<4x16xf32>
    %49 = vector.multi_reduction <maximumf>, %48, %cst_23 [2] : vector<4x16x16xf32> to vector<4x16xf32>
    %50 = vector.shape_cast %49 : vector<4x16xf32> to vector<4x16x1xf32>
    %51 = vector.broadcast %50 : vector<4x16x1xf32> to vector<4x16x16xf32>
    %52 = arith.subf %48, %51 : vector<4x16x16xf32>
    %53 = math.exp %52 : vector<4x16x16xf32>
    %cst_24 = arith.constant dense<0.000000e+00> : vector<4x16xf32>
    %54 = vector.multi_reduction <add>, %53, %cst_24 [2] : vector<4x16x16xf32> to vector<4x16xf32>
    %55 = vector.shape_cast %54 : vector<4x16xf32> to vector<4x16x1xf32>
    %56 = tpu.reciprocal %55 {approx = true} : vector<4x16x1xf32> -> vector<4x16x1xf32>
    %57 = arith.truncf %53 : vector<4x16x16xf32> to vector<4x16x16xbf16>
    %58 = arith.truncf %39 : vector<4x16x8xf32> to vector<4x16x8xbf16>
    "tpu.trace_start"() <{level = 10 : i32, message = "wnm,wmd->wnd"}> : () -> ()
    %cst_25 = arith.constant dense<0.000000e+00> : vector<4x16x8xf32>
    %59 = tpu.matmul %57, %58, %cst_25 {dimension_numbers = #tpu.dot_dimension_numbers<[2], [1], [1], [2], [0, 0, 0, 1, 1, 2], [0], [0]>} : vector<4x16x16xbf16>, vector<4x16x8xbf16>, vector<4x16x8xf32> -> vector<4x16x8xf32>
    "tpu.trace_stop"() : () -> ()
    %60 = vector.broadcast %56 : vector<4x16x1xf32> to vector<4x16x8xf32>
    %61 = arith.mulf %59, %60 : vector<4x16x8xf32>
    %62 = vector.shape_cast %61 : vector<4x16x8xf32> to vector<64x8xf32>
    %c0_26 = arith.constant 0 : index
    %c0_27 = arith.constant 0 : index
    %63 = vector.load %arg12[%c0_26, %c0_27] : memref<64x32xf32, #tpu.memory_space<vmem>>, vector<64x8xf32>
    tpu.vector_store %arg12[%c0_26, %c0_27], %62 {strides = array<i32>} : memref<64x32xf32, #tpu.memory_space<vmem>>, vector<64x8xf32>,
    %64 = vector.extract_strided_slice %32 {offsets = [0, 8], sizes = [64, 8], strides = [1, 1]} : vector<64x96xf32> to vector<64x8xf32>
    %65 = vector.shape_cast %64 : vector<64x8xf32> to vector<4x16x8xf32>
    %66 = vector.extract_strided_slice %32 {offsets = [0, 40], sizes = [64, 8], strides = [1, 1]} : vector<64x96xf32> to vector<64x8xf32>
    %67 = vector.shape_cast %66 : vector<64x8xf32> to vector<4x16x8xf32>
    %68 = vector.extract_strided_slice %32 {offsets = [0, 72], sizes = [64, 8], strides = [1, 1]} : vector<64x96xf32> to vector<64x8xf32>
    %69 = vector.shape_cast %68 : vector<64x8xf32> to vector<4x16x8xf32>
    %70 = arith.truncf %65 : vector<4x16x8xf32> to vector<4x16x8xbf16>
    %71 = arith.truncf %67 : vector<4x16x8xf32> to vector<4x16x8xbf16>
    "tpu.trace_start"() <{level = 10 : i32, message = "wnd,wmd->wnm"}> : () -> ()
    %cst_28 = arith.constant dense<0.000000e+00> : vector<4x16x16xf32>
    %72 = tpu.matmul %70, %71, %cst_28 {dimension_numbers = #tpu.dot_dimension_numbers<[2], [2], [1], [1], [0, 0, 0, 1, 1, 1], [0], [0]>} : vector<4x16x8xbf16>, vector<4x16x8xbf16>, vector<4x16x16xf32> -> vector<4x16x16xf32>
    "tpu.trace_stop"() : () -> ()
    %c1 = arith.constant 1 : index
    %c0_29 = arith.constant 0 : index
    %c0_30 = arith.constant 0 : index
    %73 = vector.load %arg9[%c1, %c0_29, %c0_30] : memref<4x16x16xf32, #tpu.memory_space<vmem>>, vector<1x16x16xf32>
    %74 = vector.shape_cast %73 : vector<1x16x16xf32> to vector<16x16xf32>
    %75 = vector.shape_cast %74 : vector<16x16xf32> to vector<1x16x16xf32>
    %76 = vector.broadcast %75 : vector<1x16x16xf32> to vector<4x16x16xf32>
    %77 = arith.addf %72, %76 : vector<4x16x16xf32>
    %78 = arith.addf %77, %33 : vector<4x16x16xf32>
    %cst_31 = arith.constant dense<0xFF800000> : vector<4x16xf32>
    %79 = vector.multi_reduction <maximumf>, %78, %cst_31 [2] : vector<4x16x16xf32> to vector<4x16xf32>
    %80 = vector.shape_cast %79 : vector<4x16xf32> to vector<4x16x1xf32>
    %81 = vector.broadcast %80 : vector<4x16x1xf32> to vector<4x16x16xf32>
    %82 = arith.subf %78, %81 : vector<4x16x16xf32>
    %83 = math.exp %82 : vector<4x16x16xf32>
    %cst_32 = arith.constant dense<0.000000e+00> : vector<4x16xf32>
    %84 = vector.multi_reduction <add>, %83, %cst_32 [2] : vector<4x16x16xf32> to vector<4x16xf32>
    %85 = vector.shape_cast %84 : vector<4x16xf32> to vector<4x16x1xf32>
    %86 = tpu.reciprocal %85 {approx = true} : vector<4x16x1xf32> -> vector<4x16x1xf32>
    %87 = arith.truncf %83 : vector<4x16x16xf32> to vector<4x16x16xbf16>
    %88 = arith.truncf %69 : vector<4x16x8xf32> to vector<4x16x8xbf16>
    "tpu.trace_start"() <{level = 10 : i32, message = "wnm,wmd->wnd"}> : () -> ()
    %cst_33 = arith.constant dense<0.000000e+00> : vector<4x16x8xf32>
    %89 = tpu.matmul %87, %88, %cst_33 {dimension_numbers = #tpu.dot_dimension_numbers<[2], [1], [1], [2], [0, 0, 0, 1, 1, 2], [0], [0]>} : vector<4x16x16xbf16>, vector<4x16x8xbf16>, vector<4x16x8xf32> -> vector<4x16x8xf32>
    "tpu.trace_stop"() : () -> ()
    %90 = vector.broadcast %86 : vector<4x16x1xf32> to vector<4x16x8xf32>
    %91 = arith.mulf %89, %90 : vector<4x16x8xf32>
    %92 = vector.shape_cast %91 : vector<4x16x8xf32> to vector<64x8xf32>
    %c0_34 = arith.constant 0 : index
    %c8 = arith.constant 8 : index
    %93 = vector.load %arg12[%c0_34, %c8] : memref<64x32xf32, #tpu.memory_space<vmem>>, vector<64x8xf32>
    tpu.vector_store %arg12[%c0_34, %c8], %92 {strides = array<i32>} : memref<64x32xf32, #tpu.memory_space<vmem>>, vector<64x8xf32>,
    %94 = vector.extract_strided_slice %32 {offsets = [0, 16], sizes = [64, 8], strides = [1, 1]} : vector<64x96xf32> to vector<64x8xf32>
    %95 = vector.shape_cast %94 : vector<64x8xf32> to vector<4x16x8xf32>
    %96 = vector.extract_strided_slice %32 {offsets = [0, 48], sizes = [64, 8], strides = [1, 1]} : vector<64x96xf32> to vector<64x8xf32>
    %97 = vector.shape_cast %96 : vector<64x8xf32> to vector<4x16x8xf32>
    %98 = vector.extract_strided_slice %32 {offsets = [0, 80], sizes = [64, 8], strides = [1, 1]} : vector<64x96xf32> to vector<64x8xf32>
    %99 = vector.shape_cast %98 : vector<64x8xf32> to vector<4x16x8xf32>
    %100 = arith.truncf %95 : vector<4x16x8xf32> to vector<4x16x8xbf16>
    %101 = arith.truncf %97 : vector<4x16x8xf32> to vector<4x16x8xbf16>
    "tpu.trace_start"() <{level = 10 : i32, message = "wnd,wmd->wnm"}> : () -> ()
    %cst_35 = arith.constant dense<0.000000e+00> : vector<4x16x16xf32>
    %102 = tpu.matmul %100, %101, %cst_35 {dimension_numbers = #tpu.dot_dimension_numbers<[2], [2], [1], [1], [0, 0, 0, 1, 1, 1], [0], [0]>} : vector<4x16x8xbf16>, vector<4x16x8xbf16>, vector<4x16x16xf32> -> vector<4x16x16xf32>
    "tpu.trace_stop"() : () -> ()
    %c2 = arith.constant 2 : index
    %c0_36 = arith.constant 0 : index
    %c0_37 = arith.constant 0 : index
    %103 = vector.load %arg9[%c2, %c0_36, %c0_37] : memref<4x16x16xf32, #tpu.memory_space<vmem>>, vector<1x16x16xf32>
    %104 = vector.shape_cast %103 : vector<1x16x16xf32> to vector<16x16xf32>
    %105 = vector.shape_cast %104 : vector<16x16xf32> to vector<1x16x16xf32>
    %106 = vector.broadcast %105 : vector<1x16x16xf32> to vector<4x16x16xf32>
    %107 = arith.addf %102, %106 : vector<4x16x16xf32>
    %108 = arith.addf %107, %33 : vector<4x16x16xf32>
    %cst_38 = arith.constant dense<0xFF800000> : vector<4x16xf32>
    %109 = vector.multi_reduction <maximumf>, %108, %cst_38 [2] : vector<4x16x16xf32> to vector<4x16xf32>
    %110 = vector.shape_cast %109 : vector<4x16xf32> to vector<4x16x1xf32>
    %111 = vector.broadcast %110 : vector<4x16x1xf32> to vector<4x16x16xf32>
    %112 = arith.subf %108, %111 : vector<4x16x16xf32>
    %113 = math.exp %112 : vector<4x16x16xf32>
    %cst_39 = arith.constant dense<0.000000e+00> : vector<4x16xf32>
    %114 = vector.multi_reduction <add>, %113, %cst_39 [2] : vector<4x16x16xf32> to vector<4x16xf32>
    %115 = vector.shape_cast %114 : vector<4x16xf32> to vector<4x16x1xf32>
    %116 = tpu.reciprocal %115 {approx = true} : vector<4x16x1xf32> -> vector<4x16x1xf32>
    %117 = arith.truncf %113 : vector<4x16x16xf32> to vector<4x16x16xbf16>
    %118 = arith.truncf %99 : vector<4x16x8xf32> to vector<4x16x8xbf16>
    "tpu.trace_start"() <{level = 10 : i32, message = "wnm,wmd->wnd"}> : () -> ()
    %cst_40 = arith.constant dense<0.000000e+00> : vector<4x16x8xf32>
    %119 = tpu.matmul %117, %118, %cst_40 {dimension_numbers = #tpu.dot_dimension_numbers<[2], [1], [1], [2], [0, 0, 0, 1, 1, 2], [0], [0]>} : vector<4x16x16xbf16>, vector<4x16x8xbf16>, vector<4x16x8xf32> -> vector<4x16x8xf32>
    "tpu.trace_stop"() : () -> ()
    %120 = vector.broadcast %116 : vector<4x16x1xf32> to vector<4x16x8xf32>
    %121 = arith.mulf %119, %120 : vector<4x16x8xf32>
    %122 = vector.shape_cast %121 : vector<4x16x8xf32> to vector<64x8xf32>
    %c0_41 = arith.constant 0 : index
    %c16 = arith.constant 16 : index
    %123 = vector.load %arg12[%c0_41, %c16] : memref<64x32xf32, #tpu.memory_space<vmem>>, vector<64x8xf32>
    tpu.vector_store %arg12[%c0_41, %c16], %122 {strides = array<i32>} : memref<64x32xf32, #tpu.memory_space<vmem>>, vector<64x8xf32>,
    %124 = vector.extract_strided_slice %32 {offsets = [0, 24], sizes = [64, 8], strides = [1, 1]} : vector<64x96xf32> to vector<64x8xf32>
    %125 = vector.shape_cast %124 : vector<64x8xf32> to vector<4x16x8xf32>
    %126 = vector.extract_strided_slice %32 {offsets = [0, 56], sizes = [64, 8], strides = [1, 1]} : vector<64x96xf32> to vector<64x8xf32>
    %127 = vector.shape_cast %126 : vector<64x8xf32> to vector<4x16x8xf32>
    %128 = vector.extract_strided_slice %32 {offsets = [0, 88], sizes = [64, 8], strides = [1, 1]} : vector<64x96xf32> to vector<64x8xf32>
    %129 = vector.shape_cast %128 : vector<64x8xf32> to vector<4x16x8xf32>
    %130 = arith.truncf %125 : vector<4x16x8xf32> to vector<4x16x8xbf16>
    %131 = arith.truncf %127 : vector<4x16x8xf32> to vector<4x16x8xbf16>
    "tpu.trace_start"() <{level = 10 : i32, message = "wnd,wmd->wnm"}> : () -> ()
    %cst_42 = arith.constant dense<0.000000e+00> : vector<4x16x16xf32>
    %132 = tpu.matmul %130, %131, %cst_42 {dimension_numbers = #tpu.dot_dimension_numbers<[2], [2], [1], [1], [0, 0, 0, 1, 1, 1], [0], [0]>} : vector<4x16x8xbf16>, vector<4x16x8xbf16>, vector<4x16x16xf32> -> vector<4x16x16xf32>
    "tpu.trace_stop"() : () -> ()
    %c3 = arith.constant 3 : index
    %c0_43 = arith.constant 0 : index
    %c0_44 = arith.constant 0 : index
    %133 = vector.load %arg9[%c3, %c0_43, %c0_44] : memref<4x16x16xf32, #tpu.memory_space<vmem>>, vector<1x16x16xf32>
    %134 = vector.shape_cast %133 : vector<1x16x16xf32> to vector<16x16xf32>
    %135 = vector.shape_cast %134 : vector<16x16xf32> to vector<1x16x16xf32>
    %136 = vector.broadcast %135 : vector<1x16x16xf32> to vector<4x16x16xf32>
    %137 = arith.addf %132, %136 : vector<4x16x16xf32>
    %138 = arith.addf %137, %33 : vector<4x16x16xf32>
    %cst_45 = arith.constant dense<0xFF800000> : vector<4x16xf32>
    %139 = vector.multi_reduction <maximumf>, %138, %cst_45 [2] : vector<4x16x16xf32> to vector<4x16xf32>
    %140 = vector.shape_cast %139 : vector<4x16xf32> to vector<4x16x1xf32>
    %141 = vector.broadcast %140 : vector<4x16x1xf32> to vector<4x16x16xf32>
    %142 = arith.subf %138, %141 : vector<4x16x16xf32>
    %143 = math.exp %142 : vector<4x16x16xf32>
    %cst_46 = arith.constant dense<0.000000e+00> : vector<4x16xf32>
    %144 = vector.multi_reduction <add>, %143, %cst_46 [2] : vector<4x16x16xf32> to vector<4x16xf32>
    %145 = vector.shape_cast %144 : vector<4x16xf32> to vector<4x16x1xf32>
    %146 = tpu.reciprocal %145 {approx = true} : vector<4x16x1xf32> -> vector<4x16x1xf32>
    %147 = arith.truncf %143 : vector<4x16x16xf32> to vector<4x16x16xbf16>
    %148 = arith.truncf %129 : vector<4x16x8xf32> to vector<4x16x8xbf16>
    "tpu.trace_start"() <{level = 10 : i32, message = "wnm,wmd->wnd"}> : () -> ()
    %cst_47 = arith.constant dense<0.000000e+00> : vector<4x16x8xf32>
    %149 = tpu.matmul %147, %148, %cst_47 {dimension_numbers = #tpu.dot_dimension_numbers<[2], [1], [1], [2], [0, 0, 0, 1, 1, 2], [0], [0]>} : vector<4x16x16xbf16>, vector<4x16x8xbf16>, vector<4x16x8xf32> -> vector<4x16x8xf32>
    "tpu.trace_stop"() : () -> ()
    %150 = vector.broadcast %146 : vector<4x16x1xf32> to vector<4x16x8xf32>
    %151 = arith.mulf %149, %150 : vector<4x16x8xf32>
    %152 = vector.shape_cast %151 : vector<4x16x8xf32> to vector<64x8xf32>
    %c0_48 = arith.constant 0 : index
    %c24 = arith.constant 24 : index
    %153 = vector.load %arg12[%c0_48, %c24] : memref<64x32xf32, #tpu.memory_space<vmem>>, vector<64x8xf32>
    tpu.vector_store %arg12[%c0_48, %c24], %152 {strides = array<i32>} : memref<64x32xf32, #tpu.memory_space<vmem>>, vector<64x8xf32>,
    %c0_49 = arith.constant 0 : index
    %c0_50 = arith.constant 0 : index
    %154 = vector.load %arg12[%c0_49, %c0_50] : memref<64x32xf32, #tpu.memory_space<vmem>>, vector<64x32xf32>
    %155 = arith.truncf %154 : vector<64x32xf32> to vector<64x32xbf16>
    %c0_51 = arith.constant 0 : index
    %c0_52 = arith.constant 0 : index
    %156 = vector.load %arg7[%c0_51, %c0_52] : memref<32x32xbf16, #tpu.memory_space<vmem>>, vector<32x32xbf16>
    %cst_53 = arith.constant dense<0.000000e+00> : vector<64x32xf32>
    %157 = tpu.matmul %155, %156, %cst_53 {dimension_numbers = #tpu.dot_dimension_numbers<[1], [0], [0], [1], [0, 0, 1, 1], [], []>} : vector<64x32xbf16>, vector<32x32xbf16>, vector<64x32xf32> -> vector<64x32xf32>
    %c0_54 = arith.constant 0 : index
    %c0_55 = arith.constant 0 : index
    %158 = vector.load %arg8[%c0_54, %c0_55] : memref<1x32xf32, #tpu.memory_space<vmem>>, vector<1x32xf32>
    %159 = vector.broadcast %158 : vector<1x32xf32> to vector<64x32xf32>
    %160 = arith.addf %157, %159 : vector<64x32xf32>
    %161 = vector.shape_cast %160 : vector<64x32xf32> to vector<4x16x32xf32>
    %c0_56 = arith.constant 0 : index
    %c0_57 = arith.constant 0 : index
    %c0_58 = arith.constant 0 : index
    %c0_59 = arith.constant 0 : index
    %162 = vector.load %arg11[%c0_56, %c0_57, %c0_58, %c0_59] : memref<1x4x16x32xf32, #tpu.memory_space<vmem>>, vector<1x4x16x32xf32>
    %163 = vector.shape_cast %162 : vector<1x4x16x32xf32> to vector<4x16x32xf32>
    %164 = vector.shape_cast %161 : vector<4x16x32xf32> to vector<1x4x16x32xf32>
    tpu.vector_store %arg11[%c0_56, %c0_57, %c0_58, %c0_59], %164 {strides = array<i32>} : memref<1x4x16x32xf32, #tpu.memory_space<vmem>>, vector<1x4x16x32xf32>,
    return
  }
  func.func @transform_0(%arg0: i32, %arg1: i32) -> (i32, i32, i32, i32) {
    %c0_i32 = arith.constant 0 : i32
    %c0_i32_0 = arith.constant 0 : i32
    %c0_i32_1 = arith.constant 0 : i32
    return %arg0, %arg1, %c0_i32, %c0_i32_0 : i32, i32, i32, i32
  }
  func.func @transform_1(%arg0: i32, %arg1: i32) -> (i32, i32) {
    %c0_i32 = arith.constant 0 : i32
    %c0_i32_0 = arith.constant 0 : i32
    %c0_i32_1 = arith.constant 0 : i32
    return %c0_i32, %c0_i32_0 : i32, i32
  }
  func.func @transform_2(%arg0: i32, %arg1: i32) -> (i32, i32) {
    %c0_i32 = arith.constant 0 : i32
    %c0_i32_0 = arith.constant 0 : i32
    %c0_i32_1 = arith.constant 0 : i32
    return %c0_i32, %c0_i32_0 : i32, i32
  }
  func.func @transform_3(%arg0: i32, %arg1: i32) -> (i32, i32) {
    %c0_i32 = arith.constant 0 : i32
    %c0_i32_0 = arith.constant 0 : i32
    %c0_i32_1 = arith.constant 0 : i32
    return %c0_i32, %c0_i32_0 : i32, i32
  }
  func.func @transform_4(%arg0: i32, %arg1: i32) -> (i32, i32) {
    %c0_i32 = arith.constant 0 : i32
    %c0_i32_0 = arith.constant 0 : i32
    %c0_i32_1 = arith.constant 0 : i32
    return %c0_i32, %c0_i32_0 : i32, i32
  }
  func.func @transform_5(%arg0: i32, %arg1: i32) -> (i32, i32) {
    %c0_i32 = arith.constant 0 : i32
    %c0_i32_0 = arith.constant 0 : i32
    %c0_i32_1 = arith.constant 0 : i32
    return %c0_i32, %c0_i32_0 : i32, i32
  }
  func.func @transform_6(%arg0: i32, %arg1: i32) -> (i32, i32) {
    %c0_i32 = arith.constant 0 : i32
    %c0_i32_0 = arith.constant 0 : i32
    %c0_i32_1 = arith.constant 0 : i32
    return %c0_i32, %c0_i32_0 : i32, i32
  }
  func.func @transform_7(%arg0: i32, %arg1: i32) -> (i32, i32, i32) {
    %c0_i32 = arith.constant 0 : i32
    %c0_i32_0 = arith.constant 0 : i32
    %c0_i32_1 = arith.constant 0 : i32
    %c0_i32_2 = arith.constant 0 : i32
    return %c0_i32, %c0_i32_0, %c0_i32_1 : i32, i32, i32
  }
  func.func @transform_8(%arg0: i32, %arg1: i32) -> (i32, i32, i32) {
    %c0_i32 = arith.constant 0 : i32
    %c0_i32_0 = arith.constant 0 : i32
    %c0_i32_1 = arith.constant 0 : i32
    return %arg1, %c0_i32, %c0_i32_0 : i32, i32, i32
  }
  func.func @transform_9(%arg0: i32, %arg1: i32) -> (i32, i32, i32, i32) {
    %c0_i32 = arith.constant 0 : i32
    %c0_i32_0 = arith.constant 0 : i32
    %c0_i32_1 = arith.constant 0 : i32
    return %arg0, %arg1, %c0_i32, %c0_i32_0 : i32, i32, i32, i32
  }
}

module attributes {stable_mosaic.version = 11 : i64} {
  func.func @_mlp_kernel(%arg0: i32, %arg1: memref<64x32xf32, #tpu.memory_space<vmem>>, %arg2: memref<64x32xf32, #tpu.memory_space<vmem>>, %arg3: memref<1x32xf32, #tpu.memory_space<vmem>>, %arg4: memref<1x32xf32, #tpu.memory_space<vmem>>, %arg5: memref<32x128xbf16, #tpu.memory_space<vmem>>, %arg6: memref<1x128xf32, #tpu.memory_space<vmem>>, %arg7: memref<128x32xbf16, #tpu.memory_space<vmem>>, %arg8: memref<1x32xf32, #tpu.memory_space<vmem>>, %arg9: memref<64x32xf32, #tpu.memory_space<vmem>>) attributes {dimension_semantics = [#tpu.dimension_semantics<parallel>], iteration_bounds = array<i64: 2>, scalar_prefetch = 0 : i64, scratch_operands = 0 : i64, tpu.core_type = #tpu.core_type<tc>, window_params = [{transform_indices = @transform_0, window_bounds = array<i64: 64, 32>}, {transform_indices = @transform_1, window_bounds = array<i64: 64, 32>}, {pipeline_mode = #tpu.pipeline_mode<synchronous>, transform_indices = @transform_2, window_bounds = array<i64: 1, 32>}, {pipeline_mode = #tpu.pipeline_mode<synchronous>, transform_indices = @transform_3, window_bounds = array<i64: 1, 32>}, {pipeline_mode = #tpu.pipeline_mode<synchronous>, transform_indices = @transform_4, window_bounds = array<i64: 32, 128>}, {pipeline_mode = #tpu.pipeline_mode<synchronous>, transform_indices = @transform_5, window_bounds = array<i64: 1, 128>}, {pipeline_mode = #tpu.pipeline_mode<synchronous>, transform_indices = @transform_6, window_bounds = array<i64: 128, 32>}, {pipeline_mode = #tpu.pipeline_mode<synchronous>, transform_indices = @transform_7, window_bounds = array<i64: 1, 32>}, {transform_indices = @transform_8, window_bounds = array<i64: 64, 32>}]} {
    %c0 = arith.constant 0 : index
    %c0_0 = arith.constant 0 : index
    %0 = vector.load %arg2[%c0, %c0_0] : memref<64x32xf32, #tpu.memory_space<vmem>>, vector<64x32xf32>
    %c0_1 = arith.constant 0 : index
    %c0_2 = arith.constant 0 : index
    %1 = vector.load %arg1[%c0_1, %c0_2] : memref<64x32xf32, #tpu.memory_space<vmem>>, vector<64x32xf32>
    %2 = arith.addf %0, %1 : vector<64x32xf32>
    %c0_3 = arith.constant 0 : index
    %c0_4 = arith.constant 0 : index
    %3 = vector.load %arg3[%c0_3, %c0_4] : memref<1x32xf32, #tpu.memory_space<vmem>>, vector<1x32xf32>
    %c0_5 = arith.constant 0 : index
    %c0_6 = arith.constant 0 : index
    %4 = vector.load %arg4[%c0_5, %c0_6] : memref<1x32xf32, #tpu.memory_space<vmem>>, vector<1x32xf32>
    %cst = arith.constant dense<0.000000e+00> : vector<64xf32>
    %5 = vector.multi_reduction <add>, %2, %cst [1] : vector<64x32xf32> to vector<64xf32>
    %6 = vector.shape_cast %5 : vector<64xf32> to vector<64x1xf32>
    %cst_7 = arith.constant 3.200000e+01 : f32
    %7 = vector.broadcast %cst_7 : f32 to vector<64x1xf32>
    %8 = arith.divf %6, %7 : vector<64x1xf32>
    %9 = vector.broadcast %8 : vector<64x1xf32> to vector<64x32xf32>
    %10 = arith.subf %2, %9 : vector<64x32xf32>
    %11 = arith.mulf %10, %10 : vector<64x32xf32>
    %cst_8 = arith.constant dense<0.000000e+00> : vector<64xf32>
    %12 = vector.multi_reduction <add>, %11, %cst_8 [1] : vector<64x32xf32> to vector<64xf32>
    %13 = vector.shape_cast %12 : vector<64xf32> to vector<64x1xf32>
    %cst_9 = arith.constant 3.200000e+01 : f32
    %14 = vector.broadcast %cst_9 : f32 to vector<64x1xf32>
    %15 = arith.divf %13, %14 : vector<64x1xf32>
    %16 = vector.broadcast %8 : vector<64x1xf32> to vector<64x32xf32>
    %17 = arith.subf %2, %16 : vector<64x32xf32>
    %cst_10 = arith.constant 9.99999974E-6 : f32
    %18 = vector.broadcast %cst_10 : f32 to vector<64x1xf32>
    %19 = arith.addf %15, %18 : vector<64x1xf32>
    %20 = math.rsqrt %19 : vector<64x1xf32>
    %21 = vector.broadcast %20 : vector<64x1xf32> to vector<64x32xf32>
    %22 = arith.mulf %17, %21 : vector<64x32xf32>
    %23 = vector.broadcast %3 : vector<1x32xf32> to vector<64x32xf32>
    %24 = arith.mulf %22, %23 : vector<64x32xf32>
    %25 = vector.broadcast %4 : vector<1x32xf32> to vector<64x32xf32>
    %26 = arith.addf %24, %25 : vector<64x32xf32>
    %27 = arith.truncf %26 : vector<64x32xf32> to vector<64x32xbf16>
    %c0_11 = arith.constant 0 : index
    %c0_12 = arith.constant 0 : index
    %28 = vector.load %arg5[%c0_11, %c0_12] : memref<32x128xbf16, #tpu.memory_space<vmem>>, vector<32x128xbf16>
    %cst_13 = arith.constant dense<0.000000e+00> : vector<64x128xf32>
    %29 = tpu.matmul %27, %28, %cst_13 {dimension_numbers = #tpu.dot_dimension_numbers<[1], [0], [0], [1], [0, 0, 1, 1], [], []>} : vector<64x32xbf16>, vector<32x128xbf16>, vector<64x128xf32> -> vector<64x128xf32>
    %c0_14 = arith.constant 0 : index
    %c0_15 = arith.constant 0 : index
    %30 = vector.load %arg6[%c0_14, %c0_15] : memref<1x128xf32, #tpu.memory_space<vmem>>, vector<1x128xf32>
    %31 = vector.broadcast %30 : vector<1x128xf32> to vector<64x128xf32>
    %32 = arith.addf %29, %31 : vector<64x128xf32>
    %cst_16 = arith.constant 5.000000e-01 : f32
    %33 = vector.broadcast %cst_16 : f32 to vector<64x128xf32>
    %34 = arith.mulf %33, %32 : vector<64x128xf32>
    %cst_17 = arith.constant 0.707106769 : f32
    %35 = vector.broadcast %cst_17 : f32 to vector<64x128xf32>
    %36 = arith.mulf %32, %35 : vector<64x128xf32>
    %cst_18 = arith.constant 0.000000e+00 : f32
    %37 = vector.broadcast %cst_18 : f32 to vector<64x128xf32>
    %38 = arith.cmpf oge, %36, %37 : vector<64x128xf32>
    %cst_19 = arith.constant 1.000000e+00 : f32
    %cst_20 = arith.constant -1.000000e+00 : f32
    %39 = vector.broadcast %cst_19 : f32 to vector<64x128xf32>
    %40 = vector.broadcast %cst_20 : f32 to vector<64x128xf32>
    %41 = arith.select %38, %39, %40 : vector<64x128xi1>, vector<64x128xf32>
    %42 = math.absf %36 : vector<64x128xf32>
    %cst_21 = arith.constant 0.327591091 : f32
    %43 = vector.broadcast %cst_21 : f32 to vector<64x128xf32>
    %44 = arith.mulf %43, %42 : vector<64x128xf32>
    %cst_22 = arith.constant 1.000000e+00 : f32
    %45 = vector.broadcast %cst_22 : f32 to vector<64x128xf32>
    %46 = arith.addf %45, %44 : vector<64x128xf32>
    %cst_23 = arith.constant 1.000000e+00 : f32
    %47 = vector.broadcast %cst_23 : f32 to vector<64x128xf32>
    %48 = arith.divf %47, %46 : vector<64x128xf32>
    %cst_24 = arith.constant 1.06140542 : f32
    %49 = vector.broadcast %cst_24 : f32 to vector<64x128xf32>
    %50 = arith.mulf %49, %48 : vector<64x128xf32>
    %cst_25 = arith.constant -1.45315206 : f32
    %51 = vector.broadcast %cst_25 : f32 to vector<64x128xf32>
    %52 = arith.addf %50, %51 : vector<64x128xf32>
    %53 = arith.mulf %52, %48 : vector<64x128xf32>
    %cst_26 = arith.constant 1.42141378 : f32
    %54 = vector.broadcast %cst_26 : f32 to vector<64x128xf32>
    %55 = arith.addf %53, %54 : vector<64x128xf32>
    %56 = arith.mulf %55, %48 : vector<64x128xf32>
    %cst_27 = arith.constant -0.284496725 : f32
    %57 = vector.broadcast %cst_27 : f32 to vector<64x128xf32>
    %58 = arith.addf %56, %57 : vector<64x128xf32>
    %59 = arith.mulf %58, %48 : vector<64x128xf32>
    %cst_28 = arith.constant 0.254829586 : f32
    %60 = vector.broadcast %cst_28 : f32 to vector<64x128xf32>
    %61 = arith.addf %59, %60 : vector<64x128xf32>
    %62 = arith.mulf %61, %48 : vector<64x128xf32>
    %cst_29 = arith.constant 0.000000e+00 : f32
    %63 = vector.broadcast %cst_29 : f32 to vector<64x128xf32>
    %64 = arith.subf %63, %42 : vector<64x128xf32>
    %65 = arith.mulf %64, %42 : vector<64x128xf32>
    %66 = math.exp %65 : vector<64x128xf32>
    %67 = arith.mulf %62, %66 : vector<64x128xf32>
    %cst_30 = arith.constant 1.000000e+00 : f32
    %68 = vector.broadcast %cst_30 : f32 to vector<64x128xf32>
    %69 = arith.subf %68, %67 : vector<64x128xf32>
    %70 = arith.mulf %41, %69 : vector<64x128xf32>
    %cst_31 = arith.constant 1.000000e+00 : f32
    %71 = vector.broadcast %cst_31 : f32 to vector<64x128xf32>
    %72 = arith.addf %71, %70 : vector<64x128xf32>
    %73 = arith.mulf %34, %72 : vector<64x128xf32>
    %74 = arith.truncf %73 : vector<64x128xf32> to vector<64x128xbf16>
    %c0_32 = arith.constant 0 : index
    %c0_33 = arith.constant 0 : index
    %75 = vector.load %arg7[%c0_32, %c0_33] : memref<128x32xbf16, #tpu.memory_space<vmem>>, vector<128x32xbf16>
    %cst_34 = arith.constant dense<0.000000e+00> : vector<64x32xf32>
    %76 = tpu.matmul %74, %75, %cst_34 {dimension_numbers = #tpu.dot_dimension_numbers<[1], [0], [0], [1], [0, 0, 1, 1], [], []>} : vector<64x128xbf16>, vector<128x32xbf16>, vector<64x32xf32> -> vector<64x32xf32>
    %c0_35 = arith.constant 0 : index
    %c0_36 = arith.constant 0 : index
    %77 = vector.load %arg8[%c0_35, %c0_36] : memref<1x32xf32, #tpu.memory_space<vmem>>, vector<1x32xf32>
    %78 = vector.broadcast %77 : vector<1x32xf32> to vector<64x32xf32>
    %79 = arith.addf %76, %78 : vector<64x32xf32>
    %80 = arith.addf %2, %79 : vector<64x32xf32>
    %c0_37 = arith.constant 0 : index
    %c0_38 = arith.constant 0 : index
    %81 = vector.load %arg9[%c0_37, %c0_38] : memref<64x32xf32, #tpu.memory_space<vmem>>, vector<64x32xf32>
    tpu.vector_store %arg9[%c0_37, %c0_38], %80 {strides = array<i32>} : memref<64x32xf32, #tpu.memory_space<vmem>>, vector<64x32xf32>,
    return
  }
  func.func @transform_0(%arg0: i32) -> (i32, i32) {
    %c0_i32 = arith.constant 0 : i32
    %c0_i32_0 = arith.constant 0 : i32
    return %arg0, %c0_i32 : i32, i32
  }
  func.func @transform_1(%arg0: i32) -> (i32, i32) {
    %c0_i32 = arith.constant 0 : i32
    %c0_i32_0 = arith.constant 0 : i32
    return %arg0, %c0_i32 : i32, i32
  }
  func.func @transform_2(%arg0: i32) -> (i32, i32) {
    %c0_i32 = arith.constant 0 : i32
    %c0_i32_0 = arith.constant 0 : i32
    %c0_i32_1 = arith.constant 0 : i32
    return %c0_i32, %c0_i32_0 : i32, i32
  }
  func.func @transform_3(%arg0: i32) -> (i32, i32) {
    %c0_i32 = arith.constant 0 : i32
    %c0_i32_0 = arith.constant 0 : i32
    %c0_i32_1 = arith.constant 0 : i32
    return %c0_i32, %c0_i32_0 : i32, i32
  }
  func.func @transform_4(%arg0: i32) -> (i32, i32) {
    %c0_i32 = arith.constant 0 : i32
    %c0_i32_0 = arith.constant 0 : i32
    %c0_i32_1 = arith.constant 0 : i32
    return %c0_i32, %c0_i32_0 : i32, i32
  }
  func.func @transform_5(%arg0: i32) -> (i32, i32) {
    %c0_i32 = arith.constant 0 : i32
    %c0_i32_0 = arith.constant 0 : i32
    %c0_i32_1 = arith.constant 0 : i32
    return %c0_i32, %c0_i32_0 : i32, i32
  }
  func.func @transform_6(%arg0: i32) -> (i32, i32) {
    %c0_i32 = arith.constant 0 : i32
    %c0_i32_0 = arith.constant 0 : i32
    %c0_i32_1 = arith.constant 0 : i32
    return %c0_i32, %c0_i32_0 : i32, i32
  }
  func.func @transform_7(%arg0: i32) -> (i32, i32) {
    %c0_i32 = arith.constant 0 : i32
    %c0_i32_0 = arith.constant 0 : i32
    %c0_i32_1 = arith.constant 0 : i32
    return %c0_i32, %c0_i32_0 : i32, i32
  }
  func.func @transform_8(%arg0: i32) -> (i32, i32) {
    %c0_i32 = arith.constant 0 : i32
    %c0_i32_0 = arith.constant 0 : i32
    return %arg0, %c0_i32 : i32, i32
  }
}

</mosaic_0001>

<bundles_post_ra>
// kernel: swin_block_forward.3
= control target key start
LH: loop header
LB: loop body
LE: loop exit
PB: predicated region body
PF: predicated region fallthrough
CT: control target
= control target key end

     0   :  { %s1242_s27 = smov 0   ;;  %s1573_s0 = inlined_call_operand.vmem [shape: f32[128,32], index: 0, kind: input, shape index: {}]   ;;  %s1574_s1 = inlined_call_operand.vmem [shape: f32[128,32], index: 1, kind: input, shape index: {}]   ;;  %s1575_s2 = inlined_call_operand.vmem [shape: f32[1,32], index: 2, kind: input, shape index: {}]   ;;  %s1576_s3 = inlined_call_operand.vmem [shape: f32[1,32], index: 3, kind: input, shape index: {}]   ;;  %s1577_s4 = inlined_call_operand.vmem [shape: bf16[32,128], index: 4, kind: input, shape index: {}]   ;;  %s1578_s5 = inlined_call_operand.vmem [shape: f32[1,128], index: 5, kind: input, shape index: {}]   ;;  %s1579_s6 = inlined_call_operand.vmem [shape: bf16[128,32], index: 6, kind: input, shape index: {}]   ;;  %s1580_s7 = inlined_call_operand.vmem [shape: f32[1,32], index: 7, kind: input, shape index: {}]   ;;  %s1581_s8 = inlined_call_operand.vmem [shape: f32[128,32], index: 8, kind: output, shape index: {}]  }
   0x1 LB: > { %s1036_s28 = sadd.s32 4294967295, %s1194_s27   ;;  %p1040_p0 = scmp.ge.s32.totalorder %s1194_s27, 1  ;;  %s1194_s27 = sphi %s1242_s27, %s18_s27  }
   0x2   : > { %p274_p1 = scmp.lt.s32.totalorder %s1194_s27, 3 }
   0x4   : > { %p275_p2 = pnand %p1040_p0, %p274_p1 }
   0x5   : > { %s1041_s29 = sshll.u32 (!%p275_p2), %s1036_s28, 3  ;;  %vm358_vm0 = vcmask (!%p275_p2), 261120  }
   0x6   : > { %278 = sbr.rel (%p275_p2) target bundleno = 847 (0x34f), region = 52  ;;  %p314_p3 = scmp.lt.s32.totalorder (!%p275_p2), %s1041_s29, 15 }
   0xd   : > { %s1583_s29 = smov (!%p314_p3, %s1041_s29), 15 }
   0xe   : > { %s1250_s30 = sshll.u32 %s1583_s29, 3 }
   0xf   : > { %s1256_s11 = scalar_lea.vmem %s1573_s0, %s1250_s30  ;;  %s323_s14 = scalar_lea.vmem %s1574_s1, %s1250_s30 }
  0x10   : > { %v332_v0 = vld [vmem:[%s323_s14] sm:$0xff]  ;;  %v334_v2 = vld [vmem:[%s323_s14 + $0x10] sm:$0xff]  ;;  %v333_v5 = vld [vmem:[%s323_s14 + $0x8] sm:$0xff]  ;;  %s329_s25 = scalar_lea.vmem %s1581_s8, %s1250_s30 }
  0x11   : > { %v340_v1 = vld [vmem:[%s1256_s11] sm:$0xff]  ;;  %v342_v4 = vld [vmem:[%s1256_s11 + $0x10] sm:$0xff]  ;;  %v341_v6 = vld [vmem:[%s1256_s11 + $0x8] sm:$0xff] }
  0x12   : > { %v1263_v3 = vadd.f32 %v340_v1, %v332_v0  ;;  %v1267_v7 = vadd.f32 %v342_v4, %v334_v2  ;;  %v1269_v8 = vadd.f32 %v341_v6, %v333_v5  ;;  %v335_v9 = vld [vmem:[%s323_s14 + $0x18] sm:$0xff]  ;;  %v336_v11 = vld [vmem:[%s323_s14 + $0x20] sm:$0xff]  ;;  %v337_v15 = vld [vmem:[%s323_s14 + $0x28] sm:$0xff] }
  0x13   : > { %v343_v10 = vld [vmem:[%s1256_s11 + $0x18] sm:$0xff]  ;;  %v344_v14 = vld [vmem:[%s1256_s11 + $0x20] sm:$0xff]  ;;  %v345_v16 = vld [vmem:[%s1256_s11 + $0x28] sm:$0xff] }
  0x14   : > { %v359_v12 = vsel %vm358_vm0, %v1263_v3, 0.0  ;;  %v1274_v13 = vadd.f32 %v343_v10, %v335_v9  ;;  %v365_v17 = vsel %vm358_vm0, %v1267_v7, 0.0  ;;  %v362_v18 = vsel %vm358_vm0, %v1269_v8, 0.0  ;;  %v338_v22 = vld [vmem:[%s323_s14 + $0x30] sm:$0xff]  ;;  %v339_v24 = vld [vmem:[%s323_s14 + $0x38] sm:$0xff] }
  0x15   : > { %360 = vadd.xlane.f32.xlu0 %v359_v12  ;;  %366 = vadd.xlane.f32.xlu1 %v365_v17  ;;  %v1282_v19 = vadd.f32 %v344_v14, %v336_v11  ;;  %v1286_v21 = vadd.f32 %v345_v16, %v337_v15  ;;  %v346_v23 = vld [vmem:[%s1256_s11 + $0x30] sm:$0xff]  ;;  %v347_v25 = vld [vmem:[%s1256_s11 + $0x38] sm:$0xff]  ;;  %v1130_v11 = vld [vmem:[%s1577_s4] sm:$0xff]  }
  0x16   : > { %v368_v20 = vsel %vm358_vm0, %v1274_v13, 0.0  ;;  %v1292_v27 = vadd.f32 %v346_v23, %v338_v22  ;;  %v1296_v29 = vadd.f32 %v347_v25, %v339_v24  ;;  %1085 = vmatprep.subr.bf16.mxu0 %v1130_v11  ;;  %v1131_v12 = vld [vmem:[%s1577_s4 + $0x8] sm:$0xff]  }
  0x17   : > { %v371_v26 = vsel %vm358_vm0, %v1282_v19, 0.0  ;;  %v374_v28 = vsel %vm358_vm0, %v1286_v21, 0.0  ;;  %1086 = vmatpush3.bf16.msra.mxu0 %v1130_v11 }
  0x18   : > { %v377_v30 = vsel %vm358_vm0, %v1292_v27, 0.0  ;;  %v380_v31 = vsel %vm358_vm0, %v1296_v29, 0.0  ;;  %1087 = vmatprep.subr.bf16.mxu0 %v1131_v12 }
  0x19   : > { %363 = vadd.xlane.f32.xlu0 %v362_v18  ;;  %369 = vadd.xlane.f32.xlu1 %v368_v20 }
  0x1b   : > { %1088 = vmatpush3.bf16.msra.mxu0 %v1131_v12 }
  0x1d   : > { %372 = vadd.xlane.f32.xlu0 %v371_v26  ;;  %375 = vadd.xlane.f32.xlu1 %v374_v28 }
  0x21   : > { %378 = vadd.xlane.f32.xlu0 %v377_v30  ;;  %381 = vadd.xlane.f32.xlu1 %v380_v31 }
  0xa2   : > { %v361_v32 = vpop.xlane.xlu0 %360  ;;  %v367_v34 = vpop.xlane.xlu1 %366 }
  0xa3   : > { %v384_v33 = vmul.f32 0.03125, %v361_v32  ;;  %v386_v35 = vmul.f32 0.03125, %v367_v34 }
  0xa5   : > { %v1303_v36 = vsub.f32 %v1263_v3, %v384_v33  ;;  %v1306_v37 = vsub.f32 %v1267_v7, %v386_v35 }
  0xa6   : > { %v364_v38 = vpop.xlane.xlu0 %363  ;;  %v370_v40 = vpop.xlane.xlu1 %369 }
  0xa7   : > { %v385_v39 = vmul.f32 0.03125, %v364_v38  ;;  %v400_v41 = vmul.f32 %v1303_v36, %v1303_v36  ;;  %v387_v42 = vmul.f32 0.03125, %v370_v40  ;;  %v402_v43 = vmul.f32 %v1306_v37, %v1306_v37 }
  0xa9   : > { %v1313_v44 = vsub.f32 %v1269_v8, %v385_v39  ;;  %v408_v45 = vsel %vm358_vm0, %v400_v41, 0.0  ;;  %v1317_v46 = vsub.f32 %v1274_v13, %v387_v42  ;;  %v414_v50 = vsel %vm358_vm0, %v402_v43, 0.0 }
  0xaa   : > { %409 = vadd.xlane.f32.xlu0 %v408_v45  ;;  %v373_v47 = vpop.xlane.xlu0 %372  ;;  %v376_v49 = vpop.xlane.xlu1 %375 }
  0xab   : > { %v388_v48 = vmul.f32 0.03125, %v373_v47  ;;  %v401_v51 = vmul.f32 %v1313_v44, %v1313_v44  ;;  %v389_v52 = vmul.f32 0.03125, %v376_v49  ;;  %v403_v53 = vmul.f32 %v1317_v46, %v1317_v46  ;;  %v1047_v47 = vld [vmem:[%s1575_s2] ss:$0 sm:$0xff] }
  0xad   : > { %v1325_v54 = vsub.f32 %v1282_v19, %v388_v48  ;;  %v411_v55 = vsel %vm358_vm0, %v401_v51, 0.0  ;;  %v1329_v56 = vsub.f32 %v1286_v21, %v389_v52  ;;  %v417_v60 = vsel %vm358_vm0, %v403_v53, 0.0 }
  0xae   : > { %415 = vadd.xlane.f32.xlu0 %v414_v50  ;;  %412 = vadd.xlane.f32.xlu1 %v411_v55  ;;  %v379_v57 = vpop.xlane.xlu0 %378  ;;  %v382_v59 = vpop.xlane.xlu1 %381 }
  0xaf   : > { %v390_v58 = vmul.f32 0.03125, %v379_v57  ;;  %v404_v61 = vmul.f32 %v1325_v54, %v1325_v54  ;;  %v391_v62 = vmul.f32 0.03125, %v382_v59  ;;  %v405_v63 = vmul.f32 %v1329_v56, %v1329_v56 }
  0xb1   : > { %v1337_v0 = vsub.f32 %v1292_v27, %v390_v58  ;;  %v420_v1 = vsel %vm358_vm0, %v404_v61, 0.0  ;;  %v1341_v2 = vsub.f32 %v1296_v29, %v391_v62  ;;  %v423_v4 = vsel %vm358_vm0, %v405_v63, 0.0 }
  0xb2   : > { %418 = vadd.xlane.f32.xlu1 %v417_v60  ;;  %421 = vadd.xlane.f32.xlu0 %v420_v1 }
  0xb3   : > { %v406_v5 = vmul.f32 %v1337_v0, %v1337_v0  ;;  %v407_v6 = vmul.f32 %v1341_v2, %v1341_v2 }
  0xb5   : > { %v426_v9 = vsel %vm358_vm0, %v406_v5, 0.0  ;;  %v429_v10 = vsel %vm358_vm0, %v407_v6, 0.0 }
  0xb6   : > { %424 = vadd.xlane.f32.xlu1 %v423_v4  ;;  %427 = vadd.xlane.f32.xlu0 %v426_v9 }
  0xba   : > { %430 = vadd.xlane.f32.xlu1 %v429_v10 }
 0x137   : > { %v410_v14 = vpop.xlane.xlu0 %409 }
 0x138   : > { %v432_v15 = vmul.f32 0.03125, %v410_v14 }
 0x13a   : > { %v440_v16 = vadd.f32 1e-05, %v432_v15 }
 0x13b   : > { %v413_v17 = vpop.xlane.xlu1 %412  ;;  %v416_v18 = vpop.xlane.xlu0 %415 }
 0x13c   : > { %1140 = vrsqrt.f32 %v440_v16  ;;  %v433_v20 = vmul.f32 0.03125, %v413_v17  ;;  %v434_v22 = vmul.f32 0.03125, %v416_v18 }
 0x13e   : > { %v441_v23 = vadd.f32 1e-05, %v433_v20  ;;  %v442_v24 = vadd.f32 1e-05, %v434_v22 }
 0x13f   : > { %v419_v25 = vpop.xlane.xlu1 %418  ;;  %v422_v26 = vpop.xlane.xlu0 %421 }
 0x140   : > { %1142 = vrsqrt.f32 %v441_v23  ;;  %v435_v28 = vmul.f32 0.03125, %v419_v25  ;;  %v436_v30 = vmul.f32 0.03125, %v422_v26  ;;  %v1135_v25 = vld [vmem:[%s1579_s6 + $0x18] sm:$0xff]   ;;  %v1136_v26 = vld [vmem:[%s1579_s6 + $0x20] sm:$0xff]  }
 0x141   : > { %1144 = vrsqrt.f32 %v442_v24  ;;  %v1134_v24 = vld [vmem:[%s1579_s6 + $0x10] sm:$0xff]  }
 0x142   : > { %v443_v31 = vadd.f32 1e-05, %v435_v28  ;;  %v444_v32 = vadd.f32 1e-05, %v436_v30  ;;  %v1137_v28 = vld [vmem:[%s1579_s6 + $0x28] sm:$0xff]   ;;  %v1138_v30 = vld [vmem:[%s1579_s6 + $0x30] sm:$0xff]  }
 0x143   : > { %v425_v33 = vpop.xlane.xlu1 %424  ;;  %v428_v34 = vpop.xlane.xlu0 %427 }
 0x144   : > { %1146 = vrsqrt.f32 %v443_v31  ;;  %v437_v35 = vmul.f32 0.03125, %v425_v33  ;;  %v438_v38 = vmul.f32 0.03125, %v428_v34  ;;  %v1139_v31 = vld [vmem:[%s1579_s6 + $0x38] sm:$0xff]  }
 0x145   : > { %1148 = vrsqrt.f32 %v444_v32  ;;  %v1049_v32 = vld [vmem:[%s1578_s5] ss:$0 sm:$0xff] }
 0x146   : > { %v1141_v39 = vpop.eup %1140  ;;  %v445_v40 = vadd.f32 1e-05, %v437_v35  ;;  %v446_v41 = vadd.f32 1e-05, %v438_v38 }
 0x147   : > { %v431_v42 = vpop.xlane.xlu1 %430  ;;  %v456_v43 = vmul.f32 %v1141_v39, %v1303_v36  ;;  %v1048_v36 = vld [vmem:[%s1576_s3] ss:$0 sm:$0xff] }
 0x148   : > { %1150 = vrsqrt.f32 %v445_v40  ;;  %v439_v45 = vmul.f32 0.03125, %v431_v42 }
 0x149   : > { %1152 = vrsqrt.f32 %v446_v41  ;;  %v470_v52 = vmul.f32 %v1047_v47, %v456_v43 }
 0x14a   : > { %v1143_v48 = vpop.eup %1142  ;;  %v447_v49 = vadd.f32 1e-05, %v439_v45 }
 0x14b   : > { %v1145_v50 = vpop.eup %1144  ;;  %v457_v51 = vmul.f32 %v1143_v48, %v1313_v44  ;;  %v484_v60 = vadd.f32 %v1048_v36, %v470_v52 }
 0x14c   : > { %v458_v53 = vmul.f32 %v1145_v50, %v1306_v37  ;;  %1154 = vrsqrt.f32 %v447_v49 }
 0x14d   : > { %v471_v55 = vmul.f32 %v1047_v47, %v457_v51 }
 0x14e   : > { %v1147_v57 = vpop.eup %1146  ;;  %v472_v62 = vmul.f32 %v1047_v47, %v458_v53 }
 0x14f   : > { %v1149_v58 = vpop.eup %1148  ;;  %v459_v59 = vmul.f32 %v1147_v57, %v1317_v46  ;;  %v485_v61 = vadd.f32 %v1048_v36, %v471_v55 }
 0x150   : > { %v460_v63 = vmul.f32 %v1149_v58, %v1325_v54  ;;  %v486_v6 = vadd.f32 %v1048_v36, %v472_v62 }
 0x151   : > { %v492_v1 = vpack.c.bf16 %v485_v61, %v484_v60  ;;  %v473_v44 = vmul.f32 %v1047_v47, %v459_v59 }
 0x152   : > { %v1151_v4 = vpop.eup %1150  ;;  %v474_v10 = vmul.f32 %v1047_v47, %v460_v63 }
 0x153   : > { %v1153_v5 = vpop.eup %1152  ;;  %v461_v37 = vmul.f32 %v1151_v4, %v1329_v56  ;;  %1089 = vmatprep.mubr.msk.bf16.mxu0 %vm358_vm0, %v492_v1  ;;  %v487_v9 = vadd.f32 %v1048_v36, %v473_v44 }
 0x154   : > { %v462_v11 = vmul.f32 %v1153_v5, %v1337_v0  ;;  %v488_v54 = vadd.f32 %v1048_v36, %v474_v10  ;;  %v1132_v0 = vld [vmem:[%s1579_s6] sm:$0xff]  }
 0x155   : > { %v493_v12 = vpack.c.bf16 %v487_v9, %v486_v6  ;;  %v475_v46 = vmul.f32 %v1047_v47, %v461_v37  ;;  %1097 = vmatprep.subr.bf16.mxu1 %v1132_v0 }
 0x156   : > { %v1155_v14 = vpop.eup %1154  ;;  %v476_v17 = vmul.f32 %v1047_v47, %v462_v11  ;;  %1098 = vmatpush3.bf16.msra.mxu1 %v1132_v0 }
 0x157   : > { %v463_v15 = vmul.f32 %v1155_v14, %v1341_v2  ;;  %1090 = vmatmul.mubr.msk.bf16.vlgmr.msra.gmra.mrb[0].mxu0 %vm358_vm0, %v493_v12  ;;  %v489_v16 = vadd.f32 %v1048_v36, %v475_v46  ;;  %v1133_v2 = vld [vmem:[%s1579_s6 + $0x8] sm:$0xff]  }
 0x158   : > { %v490_v56 = vadd.f32 %v1048_v36, %v476_v17  ;;  %1099 = vmatprep.subr.bf16.mxu1 %v1133_v2 }
 0x159   : > { %v494_v18 = vpack.c.bf16 %v489_v16, %v488_v54  ;;  %v477_v20 = vmul.f32 %v1047_v47, %v463_v15 }
 0x15a   : > { %1100 = vmatpush3.bf16.msra.mxu1 %v1133_v2 }
 0x15b   : > { %1093 = vmatprep.mubr.msk.bf16.mxu0 %vm358_vm0, %v494_v18  ;;  %v491_v22 = vadd.f32 %v1048_v36, %v477_v20  ;;  %1101 = vmatprep.subr.bf16.mxu1 %v1134_v24 }
 0x15d   : > { %v495_v23 = vpack.c.bf16 %v491_v22, %v490_v56  ;;  %v1196_v22 = vmov -1.0  }
 0x15e   : > { %1102 = vmatpush3.bf16.msra.mxu1 %v1134_v24 }
 0x15f   : > { %1094 = vmatmul.mubr.msk.bf16.gmra.mrb[4].mxu0 %vm358_vm0, %v495_v23  ;;  %1103 = vmatprep.subr.bf16.mxu1 %v1135_v25 }
 0x162   : > { %1104 = vmatpush3.bf16.msra.mxu1 %v1135_v25 }
 0x163   : > { %1105 = vmatprep.subr.bf16.mxu1 %v1136_v26 }
 0x166   : > { %1106 = vmatpush3.bf16.msra.mxu1 %v1136_v26 }
 0x167   : > { %1107 = vmatprep.subr.bf16.mxu1 %v1137_v28 }
 0x16a   : > { %1108 = vmatpush3.bf16.msra.mxu1 %v1137_v28 }
 0x16b   : > { %1109 = vmatprep.subr.bf16.mxu1 %v1138_v30 }
 0x16e   : > { %1110 = vmatpush3.bf16.msra.mxu1 %v1138_v30 }
 0x16f   : > { %1111 = vmatprep.subr.bf16.mxu1 %v1139_v31 }
 0x172   : > { %1112 = vmatpush3.bf16.msra.mxu1 %v1139_v31 }
 0x22a   : > { %v1091_v33 = vpop.f32.mrb[0].mxu0 }
 0x22b   : > { %v574_v34 = vadd.f32 %v1091_v33, %v1049_v32  ;;  %v565_v35 = vpop.f32.mrb[1].mxu0 }
 0x22c   : > { %v566_v38 = vadd.f32 %v1049_v32, %v565_v35  ;;  %v1092_v39 = vpop.f32.mrb[2].mxu0 }
 0x22d   : > { %v606_v40 = vmul.f32 0.70710677, %v574_v34  ;;  %v577_v41 = vadd.f32 %v1092_v39, %v1049_v32  ;;  %v568_v42 = vpop.f32.mrb[3].mxu0  ;;  %v1429_v14 = vmul.f32 0.5, %v574_v34 }
 0x22e   : > { %v1401_v43 = vmul.f32 0.70710677, %v566_v38  ;;  %v1403_v45 = vadd.f32 %v1049_v32, %v568_v42  ;;  %v1431_v15 = vmul.f32 0.5, %v566_v38 }
 0x22f   : > { %v630_v47 = vand.u32 2147483647, %v606_v40  ;;  %v1405_v48 = vmul.f32 0.70710677, %v577_v41  ;;  %vm614_vm1 = vcmp.ge.f32.partialorder %v606_v40, 0.0  ;;  %v1434_v18 = vmul.f32 0.5, %v577_v41 }
 0x230   : > { %v628_v49 = vand.u32 2147483647, %v1401_v43  ;;  %v1410_v53 = vmul.f32 0.70710677, %v1403_v45  ;;  %v1437_v23 = vsel %vm614_vm1, 1.0, %v1196_v22  ;;  %vm612_vm3 = vcmp.ge.f32.partialorder %v1401_v43, 0.0 }
 0x231   : > { %v638_v50 = vmul.f32 0.3275911, %v630_v47  ;;  %v631_v51 = vand.u32 2147483647, %v1405_v48  ;;  %v742_v6 = vsub.f32 0.0, %v630_v47  ;;  %vm615_vm2 = vcmp.ge.f32.partialorder %v1405_v48, 0.0 }
 0x232   : > { %v636_v52 = vmul.f32 0.3275911, %v628_v49  ;;  %v1095_v57 = vpop.f32.mrb[4].mxu0  ;;  %v629_v59 = vand.u32 2147483647, %v1410_v53  ;;  %v740_v11 = vsub.f32 0.0, %v628_v49 }
 0x233   : > { %v646_v36 = vadd.f32 1.0, %v638_v50  ;;  %v639_v55 = vmul.f32 0.3275911, %v631_v51  ;;  %v581_v60 = vpop.f32.mrb[5].mxu0  ;;  %v1413_v44 = vadd.f32 %v1095_v57, %v1049_v32  ;;  %v743_v54 = vsub.f32 0.0, %v631_v51 }
 0x234   : > { %v644_v58 = vadd.f32 1.0, %v636_v52  ;;  %v1096_v62 = vpop.f32.mrb[6].mxu0  ;;  %v637_v63 = vmul.f32 0.3275911, %v629_v59  ;;  %v1415_v4 = vadd.f32 %v1049_v32, %v581_v60  ;;  %v750_v17 = vmul.f32 %v742_v6, %v630_v47 }
 0x235   : > { %1156 = vrcp.f32 %v646_v36  ;;  %v647_v61 = vadd.f32 1.0, %v639_v55  ;;  %v584_v1 = vpop.f32.mrb[7].mxu0  ;;  %v1417_v37 = vadd.f32 %v1096_v62, %v1049_v32  ;;  %v1420_v9 = vmul.f32 0.70710677, %v1413_v44 }
 0x236   : > { %1158 = vrcp.f32 %v644_v58  ;;  %v645_v5 = vadd.f32 1.0, %v637_v63  ;;  %v1423_v10 = vmul.f32 0.70710677, %v1415_v4  ;;  %v741_v20 = vsub.f32 0.0, %v629_v59 }
 0x237   : > { %1160 = vrcp.f32 %v647_v61  ;;  %v634_v12 = vand.u32 2147483647, %v1420_v9  ;;  %v1427_v46 = vmul.f32 0.70710677, %v1417_v37  ;;  %v748_v26 = vmul.f32 %v740_v11, %v628_v49 }
 0x238   : > { %1162 = vrcp.f32 %v645_v5  ;;  %v632_v16 = vand.u32 2147483647, %v1423_v10  ;;  %v1445_v30 = vadd.f32 %v1049_v32, %v584_v1  ;;  %v751_v33 = vmul.f32 %v743_v54, %v631_v51 }
 0x239   : > { %v642_v56 = vmul.f32 0.3275911, %v634_v12  ;;  %v746_v0 = vsub.f32 0.0, %v634_v12  ;;  %v1440_v24 = vand.u32 2147483647, %v1427_v46  ;;  %v749_v40 = vmul.f32 %v741_v20, %v629_v59 }
 0x23a   : > { %v640_v2 = vmul.f32 0.3275911, %v632_v16  ;;  %v760_v39 = vmul.f32 1.442695, %v750_v17  ;;  %v756_v32 = vmul.f32 1.442695, %v748_v26 }
 0x23b   : > { %v650_v28 = vadd.f32 1.0, %v642_v56  ;;  %v643_v35 = vmul.f32 0.3275911, %v1440_v24  ;;  %v754_v42 = vmul.f32 %v746_v0, %v634_v12  ;;  %v1457_v50 = vsel %vm615_vm2, 1.0, %v1196_v22 }
 0x23c   : > { %v648_v34 = vadd.f32 1.0, %v640_v2  ;;  %v744_v51 = vsub.f32 0.0, %v632_v16  ;;  %v1460_v52 = vmul.f32 0.70710677, %v1445_v30  ;;  %v762_v57 = vmul.f32 1.442695, %v751_v33 }
 0x23d   : > { %1164 = vrcp.f32 %v650_v28  ;;  %v651_v47 = vadd.f32 1.0, %v643_v35  ;;  %vm613_vm4 = vcmp.ge.f32.partialorder %v1410_v53, 0.0  ;;  %v758_v60 = vmul.f32 1.442695, %v749_v40 }
 0x23e   : > { %1166 = vrcp.f32 %v648_v34  ;;  %v633_v48 = vand.u32 2147483647, %v1460_v52  ;;  %v768_v63 = vmul.f32 1.442695, %v754_v42  ;;  %v752_v1 = vmul.f32 %v744_v51, %v632_v16 }
 0x23f   : > { %v1442_v25 = vpop.eup %1156  ;;  %1168 = vrcp.f32 %v651_v47  ;;  %v747_v17 = vsub.f32 0.0, %v1440_v24  ;;  %v1492_v43 = vsel %vm613_vm4, 1.0, %v1196_v22  ;;  %vm618_vm5 = vcmp.ge.f32.partialorder %v1420_v9, 0.0 }
 0x240   : > { %v670_v31 = vmul.f32 1.0614054, %v1442_v25  ;;  %v1449_v38 = vpop.eup %1158  ;;  %1170 = vpow2.f32 %v760_v39  ;;  %v641_v5 = vmul.f32 0.3275911, %v633_v48  ;;  %v764_v28 = vmul.f32 1.442695, %v752_v1 }
 0x241   : > { %v1452_v49 = vpop.eup %1160  ;;  %v668_v58 = vmul.f32 1.0614054, %v1449_v38  ;;  %1172 = vpow2.f32 %v756_v32  ;;  %v755_v47 = vmul.f32 %v747_v17, %v1440_v24  ;;  %vm619_vm6 = vcmp.ge.f32.partialorder %v1427_v46, 0.0 }
 0x242   : > { %v678_v41 = vadd.f32 -1.4531521, %v670_v31  ;;  %v671_v55 = vmul.f32 1.0614054, %v1452_v49  ;;  %v1465_v59 = vpop.eup %1162  ;;  %1174 = vpow2.f32 %v762_v57  ;;  %v649_v20 = vadd.f32 1.0, %v641_v5 }
 0x243   : > { %v669_v6 = vmul.f32 1.0614054, %v1465_v59  ;;  %v676_v54 = vadd.f32 -1.4531521, %v668_v58  ;;  %1176 = vpow2.f32 %v758_v60  ;;  %v1479_v31 = vsel %vm612_vm3, 1.0, %v1196_v22 }
 0x244   : > { %v686_v36 = vmul.f32 %v1442_v25, %v678_v41  ;;  %v679_v62 = vadd.f32 -1.4531521, %v671_v55  ;;  %1178 = vpow2.f32 %v768_v63  ;;  %vm616_vm7 = vcmp.ge.f32.partialorder %v1423_v10, 0.0 }
 0x245   : > { %v677_v56 = vadd.f32 -1.4531521, %v669_v6  ;;  %v684_v26 = vmul.f32 %v1449_v38, %v676_v54  ;;  %1180 = vrcp.f32 %v649_v20  ;;  %v602_v46 = vmul.f32 0.5, %v1413_v44 }
 0x246   : > { %v694_v61 = vadd.f32 1.4214138, %v686_v36  ;;  %v687_v12 = vmul.f32 %v1452_v49, %v679_v62  ;;  %1182 = vpow2.f32 %v764_v28  ;;  %vm617_vm8 = vcmp.ge.f32.partialorder %v1460_v52, 0.0  ;;  %v1056_v52 = vld [vmem:[%s1580_s7] ss:$0 sm:$0xff] }
 0x247   : > { %v1474_v16 = vpop.eup %1164  ;;  %v685_v33 = vmul.f32 %v1465_v59, %v677_v56  ;;  %v692_v41 = vadd.f32 1.4214138, %v684_v26  ;;  %v600_v44 = vmul.f32 0.5, %v1415_v4 }
 0x248   : > { %v702_v11 = vmul.f32 %v1442_v25, %v694_v61  ;;  %v695_v2 = vadd.f32 1.4214138, %v687_v12  ;;  %v1482_v34 = vpop.eup %1166  ;;  %v674_v40 = vmul.f32 1.0614054, %v1474_v16  ;;  %v745_v61 = vsub.f32 0.0, %v633_v48 }
 0x249   : > { %v672_v42 = vmul.f32 1.0614054, %v1482_v34  ;;  %v693_v32 = vadd.f32 1.4214138, %v685_v33  ;;  %v700_v57 = vmul.f32 %v1449_v38, %v692_v41  ;;  %v1495_v58 = vpop.eup %1168  ;;  %v770_v12 = vmul.f32 1.442695, %v755_v47 }
 0x24a   : > { %v710_v0 = vadd.f32 -0.28449672, %v702_v11  ;;  %v703_v39 = vmul.f32 %v1452_v49, %v695_v2  ;;  %v682_v55 = vadd.f32 -1.4531521, %v674_v40  ;;  %v1171_v63 = vpop.eup %1170  ;;  %v675_v5 = vmul.f32 1.0614054, %v1495_v58 }
 0x24b   : > { %v680_v60 = vadd.f32 -1.4531521, %v672_v42  ;;  %v701_v62 = vmul.f32 %v1465_v59, %v693_v32  ;;  %v1173_v6 = vpop.eup %1172  ;;  %v708_v54 = vadd.f32 -0.28449672, %v700_v57  ;;  %1184 = vpow2.f32 %v770_v12 }
 0x24c   : > { %v718_v35 = vmul.f32 %v1442_v25, %v710_v0  ;;  %v711_v36 = vadd.f32 -0.28449672, %v703_v39  ;;  %v690_v1 = vmul.f32 %v1474_v16, %v682_v55  ;;  %v1175_v20 = vpop.eup %1174  ;;  %v683_v26 = vadd.f32 -1.4531521, %v675_v5 }
 0x24d   : > { %v688_v11 = vmul.f32 %v1482_v34, %v680_v60  ;;  %v709_v17 = vadd.f32 -0.28449672, %v701_v62  ;;  %v1177_v28 = vpop.eup %1176 }
 0x24e   : > { %v726_v51 = vadd.f32 0.2548296, %v718_v35  ;;  %v719_v53 = vmul.f32 %v1452_v49, %v711_v36  ;;  %v698_v2 = vadd.f32 1.4214138, %v690_v1  ;;  %v716_v35 = vmul.f32 %v1449_v38, %v708_v54  ;;  %v1179_v40 = vpop.eup %1178 }
 0x24f   : > { %v696_v33 = vadd.f32 1.4214138, %v688_v11  ;;  %v717_v39 = vmul.f32 %v1465_v59, %v709_v17  ;;  %v691_v32 = vmul.f32 %v1495_v58, %v683_v26 }
 0x250   : > { %v734_v24 = vmul.f32 %v1442_v25, %v726_v51  ;;  %v727_v0 = vadd.f32 0.2548296, %v719_v53  ;;  %v753_v25 = vmul.f32 %v745_v61, %v633_v48  ;;  %v706_v47 = vmul.f32 %v1474_v16, %v698_v2  ;;  %v1508_v51 = vpop.eup %1180 }
 0x251   : > { %v704_v36 = vmul.f32 %v1482_v34, %v696_v33  ;;  %v724_v48 = vadd.f32 0.2548296, %v716_v35  ;;  %v725_v55 = vadd.f32 0.2548296, %v717_v39  ;;  %v699_v62 = vadd.f32 1.4214138, %v691_v32  ;;  %v1183_v54 = vpop.eup %1182 }
 0x252   : > { %v774_v56 = vmul.f32 %v1171_v63, %v734_v24  ;;  %v735_v42 = vmul.f32 %v1452_v49, %v727_v0  ;;  %v714_v61 = vadd.f32 -0.28449672, %v706_v47  ;;  %v673_v49 = vmul.f32 1.0614054, %v1508_v51 }
 0x253   : > { %v712_v63 = vadd.f32 -0.28449672, %v704_v36  ;;  %v732_v24 = vmul.f32 %v1449_v38, %v724_v48  ;;  %v733_v53 = vmul.f32 %v1465_v59, %v725_v55  ;;  %v707_v11 = vmul.f32 %v1495_v58, %v699_v62 }
 0x254   : > { %v782_v41 = vsub.f32 1.0, %v774_v56  ;;  %v775_v60 = vmul.f32 %v1175_v20, %v735_v42  ;;  %v722_v5 = vmul.f32 %v1474_v16, %v714_v61  ;;  %v766_v12 = vmul.f32 1.442695, %v753_v25 }
 0x255   : > { %v720_v17 = vmul.f32 %v1482_v34, %v712_v63  ;;  %v772_v20 = vmul.f32 %v1173_v6, %v732_v24  ;;  %v773_v56 = vmul.f32 %v1177_v28, %v733_v53  ;;  %v715_v33 = vadd.f32 -0.28449672, %v707_v11 }
 0x256   : > { %v790_v57 = vmul.f32 %v782_v41, %v1437_v23  ;;  %v783_v1 = vsub.f32 1.0, %v775_v60  ;;  %v681_v23 = vadd.f32 -1.4531521, %v673_v49  ;;  %v730_v26 = vadd.f32 0.2548296, %v722_v5 }
 0x257   : > { %v728_v38 = vadd.f32 0.2548296, %v720_v17  ;;  %v780_v35 = vsub.f32 1.0, %v772_v20  ;;  %v781_v39 = vsub.f32 1.0, %v773_v56  ;;  %v723_v25 = vmul.f32 %v1495_v58, %v715_v33 }
 0x258   : > { %v798_v0 = vadd.f32 1.0, %v790_v57  ;;  %v791_v2 = vmul.f32 %v783_v1, %v1457_v50  ;;  %v689_v59 = vmul.f32 %v1508_v51, %v681_v23  ;;  %v738_v42 = vmul.f32 %v1474_v16, %v730_v26  ;;  %v1185_v57 = vpop.eup %1184 }
 0x259   : > { %1186 = vpow2.f32 %v766_v12  ;;  %v736_v47 = vmul.f32 %v1482_v34, %v728_v38  ;;  %v788_v28 = vmul.f32 %v780_v35, %v1479_v31  ;;  %v789_v50 = vmul.f32 %v781_v39, %v1492_v43 }
 0x25a   : > { %v799_v41 = vadd.f32 1.0, %v791_v2  ;;  %v697_v6 = vadd.f32 1.4214138, %v689_v59  ;;  %v806_v32 = vmul.f32 %v798_v0, %v1429_v14  ;;  %v778_v48 = vmul.f32 %v1179_v40, %v738_v42 }
 0x25b   : > { %v731_v55 = vadd.f32 0.2548296, %v723_v25  ;;  %v597_v60 = vmul.f32 0.5, %v1403_v45  ;;  %v796_v61 = vadd.f32 1.0, %v788_v28  ;;  %v797_v62 = vadd.f32 1.0, %v789_v50 }
 0x25c   : > { %v807_v36 = vmul.f32 %v799_v41, %v1434_v18  ;;  %v705_v16 = vmul.f32 %v1508_v51, %v697_v6  ;;  %v626_v34 = vsel %vm618_vm5, 1.0, %v1196_v22  ;;  %v786_v31 = vsub.f32 1.0, %v778_v48 }
 0x25d   : > { %v739_v43 = vmul.f32 %v1495_v58, %v731_v55  ;;  %v776_v14 = vmul.f32 %v1183_v54, %v736_v47  ;;  %v804_v18 = vmul.f32 %v796_v61, %v1431_v15  ;;  %v805_v40 = vmul.f32 %v797_v62, %v597_v60 }
 0x25e   : > { %v813_v63 = vpack.c.bf16 %v807_v36, %v806_v32  ;;  %v713_v49 = vadd.f32 -0.28449672, %v705_v16  ;;  %v794_v24 = vmul.f32 %v786_v31, %v626_v34  ;;  %v627_v11 = vsel %vm619_vm6, 1.0, %v1196_v22 }
 0x25f   : > { %v779_v45 = vmul.f32 %v1185_v57, %v739_v43  ;;  %v812_v1 = vpack.c.bf16 %v805_v40, %v804_v18  ;;  %v784_v9 = vsub.f32 1.0, %v776_v14  ;;  %v624_v23 = vsel %vm616_vm7, 1.0, %v1196_v22 }
 0x260   : > { %v721_v53 = vmul.f32 %v1508_v51, %v713_v49  ;;  %v802_v54 = vadd.f32 1.0, %v794_v24  ;;  %v603_v20 = vmul.f32 0.5, %v1417_v37  ;;  %v625_v38 = vsel %vm617_vm8, 1.0, %v1196_v22 }
 0x261   : > { %v787_v5 = vsub.f32 1.0, %v779_v45  ;;  %1113 = vmatprep.mubr.bf16.mxu1 %v812_v1  ;;  %v792_v0 = vmul.f32 %v784_v9, %v624_v23  ;;  %v601_v39 = vmul.f32 0.5, %v1445_v30 }
 0x262   : > { %v729_v58 = vadd.f32 0.2548296, %v721_v53  ;;  %1114 = vmatmul.mubr.bf16.vlgmr.msra.gmra.mrb[0].mxu1 %v813_v63  ;;  %v810_v2 = vmul.f32 %v802_v54, %v602_v46 }
 0x263   : > { %v1187_v12 = vpop.eup %1186  ;;  %v795_v17 = vmul.f32 %v787_v5, %v627_v11  ;;  %v800_v35 = vadd.f32 1.0, %v792_v0 }
 0x264   : > { %v737_v15 = vmul.f32 %v1508_v51, %v729_v58 }
 0x265   : > { %v803_v56 = vadd.f32 1.0, %v795_v17  ;;  %v808_v37 = vmul.f32 %v800_v35, %v600_v44 }
 0x266   : > { %v777_v10 = vmul.f32 %v1187_v12, %v737_v15 }
 0x267   : > { %v811_v26 = vmul.f32 %v803_v56, %v603_v20 }
 0x268   : > { %v785_v33 = vsub.f32 1.0, %v777_v10 }
 0x269   : > { %v815_v59 = vpack.c.bf16 %v811_v26, %v810_v2 }
 0x26a   : > { %v793_v51 = vmul.f32 %v785_v33, %v625_v38 }
 0x26c   : > { %v801_v41 = vadd.f32 1.0, %v793_v51 }
 0x26e   : > { %v809_v42 = vmul.f32 %v801_v41, %v601_v39 }
 0x270   : > { %v814_v25 = vpack.c.bf16 %v809_v42, %v808_v37 }
 0x272   : > { %1117 = vmatprep.mubr.bf16.mxu1 %v814_v25 }
 0x273   : > { %1118 = vmatmul.mubr.bf16.gmra.mrb[4].mxu1 %v815_v59 }
 0x335   : > { %v1115_v47 = vpop.f32.mrb[0].mxu1 }
 0x336   : > { %v930_v22 = vadd.f32 %v1115_v47, %v1056_v52  ;;  %v921_v6 = vpop.f32.mrb[1].mxu1 }
 0x337   : > { %v922_v4 = vadd.f32 %v1056_v52, %v921_v6  ;;  %v1116_v28 = vpop.f32.mrb[2].mxu1 }
 0x338   : > { %v954_v30 = vadd.f32 %v930_v22, %v1267_v7  ;;  %v933_v50 = vadd.f32 %v1116_v28, %v1056_v52  ;;  %v924_v32 = vpop.f32.mrb[3].mxu1 }
 0x339   : > { %v952_v36 = vadd.f32 %v922_v4, %v1263_v3  ;;  %v925_v48 = vadd.f32 %v1056_v52, %v924_v32 }
 0x33a   : > { %962 = vst.msk [vmem:[%s329_s25 + $0x10] sm:$0xff] %vm358_vm0, %v954_v30  ;;  %v955_v55 = vadd.f32 %v933_v50, %v1274_v13 }
 0x33b   : > { %960 = vst.msk [vmem:[%s329_s25] sm:$0xff] %vm358_vm0, %v952_v36  ;;  %v953_v57 = vadd.f32 %v925_v48, %v1269_v8 }
 0x33c   : > { %963 = vst.msk [vmem:[%s329_s25 + $0x18] sm:$0xff] %vm358_vm0, %v955_v55 }
 0x33d   : > { %961 = vst.msk [vmem:[%s329_s25 + $0x8] sm:$0xff] %vm358_vm0, %v953_v57 }
 0x346   : > { %v1119_v60 = vpop.f32.mrb[4].mxu1 }
 0x347   : > { %v946_v16 = vadd.f32 %v1119_v60, %v1056_v52  ;;  %v937_v7 = vpop.f32.mrb[5].mxu1 }
 0x348   : > { %v938_v61 = vadd.f32 %v1056_v52, %v937_v7  ;;  %v1120_v62 = vpop.f32.mrb[6].mxu1 }
 0x349   : > { %v958_v3 = vadd.f32 %v946_v16, %v1292_v27  ;;  %v949_v34 = vadd.f32 %v1120_v62, %v1056_v52  ;;  %v940_v31 = vpop.f32.mrb[7].mxu1 }
 0x34a   : > { %v956_v43 = vadd.f32 %v938_v61, %v1282_v19  ;;  %v941_v13 = vadd.f32 %v1056_v52, %v940_v31 }
 0x34b   : > { %966 = vst.msk [vmem:[%s329_s25 + $0x30] sm:$0xff] %vm358_vm0, %v958_v3  ;;  %v959_v8 = vadd.f32 %v949_v34, %v1296_v29 }
 0x34c   : > { %964 = vst.msk [vmem:[%s329_s25 + $0x20] sm:$0xff] %vm358_vm0, %v956_v43  ;;  %v957_v63 = vadd.f32 %v941_v13, %v1286_v21 }
 0x34d   : > { %967 = vst.msk [vmem:[%s329_s25 + $0x38] sm:$0xff] %vm358_vm0, %v959_v8 }
 0x34e   : > { %965 = vst.msk [vmem:[%s329_s25 + $0x28] sm:$0xff] %vm358_vm0, %v957_v63 }
 0x34f PF: > { %s18_s27 = sadd.s32 1, %s1194_s27  }
 0x350   : > { %p15_p4 = scmp.ge.s32.totalorder %s18_s27, 4  }
 0x352   :  { %17 = sbr.rel (!%p15_p4) target bundleno = 1 (0x1), region = 85 }

// kernel: swin_block_forward.2
= control target key start
LH: loop header
LB: loop body
LE: loop exit
PB: predicated region body
PF: predicated region fallthrough
CT: control target
= control target key end

     0   :  { %s3652_s30 = smov 0   ;;  %s3654_s10 = smov 0   ;;  %s4488_s0 = inlined_call_operand.vmem [shape: f32[2,4,16,32], index: 0, kind: input, shape index: {}]   ;;  %s4489_s1 = inlined_call_operand.vmem [shape: f32[1,32], index: 1, kind: input, shape index: {}]   ;;  %s4490_s2 = inlined_call_operand.vmem [shape: f32[1,32], index: 2, kind: input, shape index: {}]   ;;  %s4491_s3 = inlined_call_operand.vmem [shape: bf16[32,96], index: 3, kind: input, shape index: {}]   ;;  %s4492_s4 = inlined_call_operand.vmem [shape: f32[1,96], index: 4, kind: input, shape index: {}]   ;;  %s4493_s5 = inlined_call_operand.vmem [shape: bf16[32,32], index: 5, kind: input, shape index: {}]   ;;  %s4494_s6 = inlined_call_operand.vmem [shape: f32[1,32], index: 6, kind: input, shape index: {}]   ;;  %s4495_s7 = inlined_call_operand.vmem [shape: f32[4,16,16], index: 7, kind: input, shape index: {}]   ;;  %s4496_s8 = inlined_call_operand.vmem [shape: f32[4,16,16], index: 8, kind: input, shape index: {}]   ;;  %s4497_s9 = inlined_call_operand.vmem [shape: f32[2,4,16,32], index: 9, kind: output, shape index: {}]  }
   0x1   :  { %s3656_s11 = smov 0  }
   0x2 LB: > { %s31_s12 = sadd.s32 1, %s3580_s10  ;;  %p3007_p0 = scmp.ge.s32.totalorder %s3584_s11, 1  ;;  %s3584_s11 = sphi %s3656_s11, %s19_s11   ;;  %s3580_s10 = sphi %s3654_s10, %s4518_s10   ;;  %s3576_s30 = sphi %s3652_s30, %s4517_s30  }
   0x3   : > { %p33_p1 = scmp.ge.s32.totalorder %s31_s12, 2  ;;  %p321_p2 = scmp.lt.s32.totalorder %s3584_s11, 3 }
   0x5   : > { %s4520_s12 = smov (%p33_p1, %s31_s12), 0  ;;  %p322_p3 = pnand %p3007_p0, %p321_p2 }
   0x7   : > { %325 = sbr.rel (%p322_p3) target bundleno = 3059 (0xbf3), region = 56 }
   0xe   : > { %p374_p4 = scmp.lt.s32.totalorder %s3576_s30, 1  ;;  %vm413_vm0 = vcmask 261120   ;;  %v3406_v56 = vld [vmem:[%s4491_s3] sm:$0xff]   ;;  %v3407_v57 = vld [vmem:[%s4491_s3 + $0x8] sm:$0xff]   ;;  %vm3587_vm1 = vmmov 0   ;;  %s3588_s27 = smov 96  }
   0xf   : > { %3146 = vmatprep.subr.bf16.mxu0 %v3406_v56  ;;  %3362 = vmatprep.subr.bf16.mxu1 %v3406_v56  ;;  %vm668_vm2 = vcmask 64512   ;;  %vm874_vm3 = vcmask 130048   ;;  %s3589_s28 = smov 64   ;;  %s3590_s29 = smov 88   ;;  %vm1690_vm4 = vcmask 130112   ;;  %vm2226_vm5 = vcmask 195712  }
  0x10   : > { %s4522_s30 = smov (!%p374_p4, %s3576_s30), 1  ;;  %3147 = vmatpush3.bf16.msra.mxu0 %v3406_v56  ;;  %3364 = vmatpush3.bf16.msra.mxu1 %v3406_v56  ;;  %s3591_s18 = smov 120   ;;  %vm2762_vm6 = vcmask 261312  }
  0x11   : > { %s3068_s13 = sshll.u32 %s4522_s30, 6  ;;  %3148 = vmatprep.subr.bf16.mxu0 %v3407_v57  ;;  %3363 = vmatprep.subr.bf16.mxu1 %v3407_v57  ;;  %s3592_s23 = smov 56  }
  0x12   : > { %s382_s16 = scalar_lea.vmem %s4488_s0, %s3068_s13  ;;  %s3593_s24 = smov 80  }
  0x13   : > { %v403_v0 = vld [vmem:[%s382_s16] sm:$0xff]  ;;  %v405_v1 = vld [vmem:[%s382_s16 + $0x10] sm:$0xff]  ;;  %v404_v2 = vld [vmem:[%s382_s16 + $0x8] sm:$0xff]  ;;  %s3594_s25 = smov 112   ;;  %s3595_s14 = smov 48  }
  0x14   : > { %v414_v3 = vsel %vm413_vm0, %v403_v0, 0.0  ;;  %v420_v4 = vsel %vm413_vm0, %v405_v1, 0.0  ;;  %v406_v5 = vld [vmem:[%s382_s16 + $0x18] sm:$0xff]  ;;  %v417_v6 = vsel %vm413_vm0, %v404_v2, 0.0  ;;  %v407_v8 = vld [vmem:[%s382_s16 + $0x20] sm:$0xff]  ;;  %v408_v9 = vld [vmem:[%s382_s16 + $0x28] sm:$0xff]  ;;  %3149 = vmatpush3.bf16.msra.mxu0 %v3407_v57  ;;  %3365 = vmatpush3.bf16.msra.mxu1 %v3407_v57  ;;  %s400_s17 = scalar_lea.vmem %s4497_s9, %s3068_s13 }
  0x15   : > { %415 = vadd.xlane.f32.xlu0 %v414_v3  ;;  %421 = vadd.xlane.f32.xlu1 %v420_v4  ;;  %v423_v7 = vsel %vm413_vm0, %v406_v5, 0.0  ;;  %v426_v10 = vsel %vm413_vm0, %v407_v8, 0.0  ;;  %v429_v11 = vsel %vm413_vm0, %v408_v9, 0.0  ;;  %v409_v12 = vld [vmem:[%s382_s16 + $0x30] sm:$0xff]  ;;  %v410_v13 = vld [vmem:[%s382_s16 + $0x38] sm:$0xff]  ;;  %s3596_s15 = smov 72  }
  0x16   : > { %v432_v14 = vsel %vm413_vm0, %v409_v12, 0.0  ;;  %v435_v15 = vsel %vm413_vm0, %v410_v13, 0.0  ;;  %s3597_s16 = smov 104   ;;  %s3598_s19 = smov 40  }
  0x17   : > { %s3599_s22 = smov 8  }
  0x19   : > { %418 = vadd.xlane.f32.xlu0 %v417_v6  ;;  %424 = vadd.xlane.f32.xlu1 %v423_v7 }
  0x1d   : > { %427 = vadd.xlane.f32.xlu0 %v426_v10  ;;  %430 = vadd.xlane.f32.xlu1 %v429_v11 }
  0x21   : > { %433 = vadd.xlane.f32.xlu0 %v432_v14  ;;  %436 = vadd.xlane.f32.xlu1 %v435_v15 }
  0xa2   : > { %v416_v16 = vpop.xlane.xlu0 %415  ;;  %v422_v17 = vpop.xlane.xlu1 %421 }
  0xa3   : > { %v439_v18 = vmul.f32 0.03125, %v416_v16  ;;  %v441_v19 = vmul.f32 0.03125, %v422_v17 }
  0xa5   : > { %v3686_v20 = vsub.f32 %v403_v0, %v439_v18  ;;  %v3688_v21 = vsub.f32 %v405_v1, %v441_v19  ;;  %v3012_v19 = vld [vmem:[%s4489_s1] ss:$0 sm:$0xff] }
  0xa6   : > { %v419_v22 = vpop.xlane.xlu0 %418  ;;  %v425_v23 = vpop.xlane.xlu1 %424 }
  0xa7   : > { %v440_v24 = vmul.f32 0.03125, %v419_v22  ;;  %v442_v25 = vmul.f32 0.03125, %v425_v23  ;;  %v455_v26 = vmul.f32 %v3686_v20, %v3686_v20  ;;  %v457_v27 = vmul.f32 %v3688_v21, %v3688_v21 }
  0xa9   : > { %v3694_v28 = vsub.f32 %v404_v2, %v440_v24  ;;  %v3696_v29 = vsub.f32 %v406_v5, %v442_v25  ;;  %v463_v30 = vsel %vm413_vm0, %v455_v26, 0.0  ;;  %v469_v33 = vsel %vm413_vm0, %v457_v27, 0.0  ;;  %v3013_v27 = vld [vmem:[%s4490_s2] ss:$0 sm:$0xff] }
  0xaa   : > { %464 = vadd.xlane.f32.xlu0 %v463_v30  ;;  %v428_v31 = vpop.xlane.xlu0 %427  ;;  %v431_v32 = vpop.xlane.xlu1 %430 }
  0xab   : > { %v443_v34 = vmul.f32 0.03125, %v428_v31  ;;  %v444_v35 = vmul.f32 0.03125, %v431_v32  ;;  %v456_v36 = vmul.f32 %v3694_v28, %v3694_v28  ;;  %v458_v37 = vmul.f32 %v3696_v29, %v3696_v29 }
  0xad   : > { %v3704_v38 = vsub.f32 %v407_v8, %v443_v34  ;;  %v3706_v39 = vsub.f32 %v408_v9, %v444_v35  ;;  %v466_v40 = vsel %vm413_vm0, %v456_v36, 0.0  ;;  %v472_v43 = vsel %vm413_vm0, %v458_v37, 0.0 }
  0xae   : > { %470 = vadd.xlane.f32.xlu0 %v469_v33  ;;  %467 = vadd.xlane.f32.xlu1 %v466_v40  ;;  %v434_v41 = vpop.xlane.xlu0 %433  ;;  %v437_v42 = vpop.xlane.xlu1 %436 }
  0xaf   : > { %v445_v44 = vmul.f32 0.03125, %v434_v41  ;;  %v446_v45 = vmul.f32 0.03125, %v437_v42  ;;  %v459_v46 = vmul.f32 %v3704_v38, %v3704_v38  ;;  %v460_v47 = vmul.f32 %v3706_v39, %v3706_v39 }
  0xb1   : > { %v3714_v48 = vsub.f32 %v409_v12, %v445_v44  ;;  %v3716_v49 = vsub.f32 %v410_v13, %v446_v45  ;;  %v475_v50 = vsel %vm413_vm0, %v459_v46, 0.0  ;;  %v478_v51 = vsel %vm413_vm0, %v460_v47, 0.0 }
  0xb2   : > { %473 = vadd.xlane.f32.xlu1 %v472_v43  ;;  %476 = vadd.xlane.f32.xlu0 %v475_v50 }
  0xb3   : > { %v461_v52 = vmul.f32 %v3714_v48, %v3714_v48  ;;  %v462_v53 = vmul.f32 %v3716_v49, %v3716_v49 }
  0xb5   : > { %v481_v54 = vsel %vm413_vm0, %v461_v52, 0.0  ;;  %v484_v55 = vsel %vm413_vm0, %v462_v53, 0.0 }
  0xb6   : > { %479 = vadd.xlane.f32.xlu1 %v478_v51  ;;  %482 = vadd.xlane.f32.xlu0 %v481_v54 }
  0xba   : > { %485 = vadd.xlane.f32.xlu1 %v484_v55 }
 0x137   : > { %v465_v58 = vpop.xlane.xlu0 %464 }
 0x138   : > { %v487_v59 = vmul.f32 0.03125, %v465_v58  ;;  %v3014_v58 = vld [vmem:[%s4492_s4] ss:$0 sm:$0xff] }
 0x13a   : > { %v495_v60 = vadd.f32 1e-05, %v487_v59 }
 0x13b   : > { %v468_v61 = vpop.xlane.xlu1 %467  ;;  %v471_v62 = vpop.xlane.xlu0 %470 }
 0x13c   : > { %3410 = vrsqrt.f32 %v495_v60  ;;  %v488_v63 = vmul.f32 0.03125, %v468_v61  ;;  %v489_v0 = vmul.f32 0.03125, %v471_v62 }
 0x13e   : > { %v496_v1 = vadd.f32 1e-05, %v488_v63  ;;  %v497_v2 = vadd.f32 1e-05, %v489_v0 }
 0x13f   : > { %v474_v3 = vpop.xlane.xlu1 %473  ;;  %v477_v4 = vpop.xlane.xlu0 %476 }
 0x140   : > { %3412 = vrsqrt.f32 %v496_v1  ;;  %v490_v5 = vmul.f32 0.03125, %v474_v3  ;;  %v491_v6 = vmul.f32 0.03125, %v477_v4 }
 0x141   : > { %3414 = vrsqrt.f32 %v497_v2 }
 0x142   : > { %v498_v7 = vadd.f32 1e-05, %v490_v5  ;;  %v499_v8 = vadd.f32 1e-05, %v491_v6 }
 0x143   : > { %v480_v9 = vpop.xlane.xlu1 %479  ;;  %v483_v10 = vpop.xlane.xlu0 %482 }
 0x144   : > { %3416 = vrsqrt.f32 %v498_v7  ;;  %v492_v11 = vmul.f32 0.03125, %v480_v9  ;;  %v493_v12 = vmul.f32 0.03125, %v483_v10 }
 0x145   : > { %3418 = vrsqrt.f32 %v499_v8 }
 0x146   : > { %v3411_v13 = vpop.eup %3410  ;;  %v500_v14 = vadd.f32 1e-05, %v492_v11  ;;  %v501_v15 = vadd.f32 1e-05, %v493_v12 }
 0x147   : > { %v486_v16 = vpop.xlane.xlu1 %485  ;;  %v511_v17 = vmul.f32 %v3411_v13, %v3686_v20 }
 0x148   : > { %3420 = vrsqrt.f32 %v500_v14  ;;  %v494_v18 = vmul.f32 0.03125, %v486_v16 }
 0x149   : > { %3422 = vrsqrt.f32 %v501_v15  ;;  %v525_v26 = vmul.f32 %v3012_v19, %v511_v17 }
 0x14a   : > { %v3413_v22 = vpop.eup %3412  ;;  %v502_v23 = vadd.f32 1e-05, %v494_v18 }
 0x14b   : > { %v3415_v24 = vpop.eup %3414  ;;  %v512_v25 = vmul.f32 %v3413_v22, %v3694_v28  ;;  %v539_v33 = vadd.f32 %v3013_v27, %v525_v26  ;;  %v664_v26 = vld [vmem:[%s4495_s7 + $0x8] sm:$0xff] }
 0x14c   : > { %3424 = vrsqrt.f32 %v502_v23  ;;  %v513_v20 = vmul.f32 %v3415_v24, %v3688_v21  ;;  %v663_v24 = vld [vmem:[%s4495_s7] sm:$0xff] }
 0x14d   : > { %v526_v30 = vmul.f32 %v3012_v19, %v512_v25 }
 0x14e   : > { %v3417_v31 = vpop.eup %3416  ;;  %v527_v36 = vmul.f32 %v3012_v19, %v513_v20 }
 0x14f   : > { %v3419_v32 = vpop.eup %3418  ;;  %v540_v34 = vadd.f32 %v3013_v27, %v526_v30  ;;  %v514_v35 = vmul.f32 %v3417_v31, %v3696_v29 }
 0x150   : > { %v515_v37 = vmul.f32 %v3419_v32, %v3704_v38  ;;  %v541_v43 = vadd.f32 %v3013_v27, %v527_v36  ;;  %v3809_v32 = vld [vmem:[%s4496_s8 + $0x8] sm:$0xff] }
 0x151   : > { %v547_v40 = vpack.c.bf16 %v540_v34, %v539_v33  ;;  %v528_v28 = vmul.f32 %v3012_v19, %v514_v35 }
 0x152   : > { %v3421_v41 = vpop.eup %3420  ;;  %v529_v45 = vmul.f32 %v3012_v19, %v515_v37 }
 0x153   : > { %v3423_v42 = vpop.eup %3422  ;;  %3150 = vmatprep.mubr.msk.bf16.mxu0 %vm413_vm0, %v547_v40  ;;  %v542_v44 = vadd.f32 %v3013_v27, %v528_v28  ;;  %v516_v21 = vmul.f32 %v3421_v41, %v3706_v39 }
 0x154   : > { %v517_v46 = vmul.f32 %v3423_v42, %v3714_v48  ;;  %v543_v29 = vadd.f32 %v3013_v27, %v529_v45  ;;  %v4498_v48 = vmov 0.0   ;;  %v3824_v42 = vld [vmem:[%s4496_s8 + $0x20] sm:$0xff] }
 0x155   : > { %v548_v47 = vpack.c.bf16 %v542_v44, %v541_v43  ;;  %v530_v50 = vmul.f32 %v3012_v19, %v516_v21  ;;  %3158 = vmatprep.subr.bf16.mxu1 %v4498_v48  ;;  %3170 = vmatprep.subr.bf16.mxu0 %v4498_v48 }
 0x156   : > { %v3425_v51 = vpop.eup %3424  ;;  %v531_v53 = vmul.f32 %v3012_v19, %v517_v46 }
 0x157   : > { %3151 = vmatmul.mubr.msk.bf16.vlgmr.msra.gmra.mrb[0].mxu0 %vm413_vm0, %v548_v47  ;;  %v544_v38 = vadd.f32 %v3013_v27, %v530_v50  ;;  %v518_v52 = vmul.f32 %v3425_v51, %v3716_v49  ;;  %v3829_v50 = vld [vmem:[%s4496_s8 + $0x28] sm:$0xff]  ;;  %v3834_v51 = vld [vmem:[%s4496_s8 + $0x10] sm:$0xff] }
 0x158   : > { %v545_v56 = vadd.f32 %v3013_v27, %v531_v53  ;;  %3172 = vmatprep.mubr.msk.bf16.mxu0 %vm3587_vm1, %v4498_v48 }
 0x159   : > { %v549_v54 = vpack.c.bf16 %v544_v38, %v543_v29  ;;  %v532_v55 = vmul.f32 %v3012_v19, %v518_v52 }
 0x15b   : > { %3154 = vmatprep.mubr.msk.bf16.mxu1 %vm413_vm0, %v549_v54  ;;  %v546_v57 = vadd.f32 %v3013_v27, %v532_v55  ;;  %v3804_v27 = vld [vmem:[%s4496_s8] sm:$0xff] }
 0x15d   : > { %v550_v39 = vpack.c.bf16 %v546_v57, %v545_v56 }
 0x15f   : > { %3155 = vmatmul.mubr.msk.bf16.vlgmr.msra.gmra.mrb[0].mxu1 %vm413_vm0, %v550_v39  ;;  %v3843_v39 = vld [vmem:[%s4496_s8 + $0x18] sm:$0xff] }
 0x160   : > { %3160 = vmatprep.mubr.msk.bf16.mxu1 %vm3587_vm1, %v4498_v48 }
 0x22a   : > { %v3152_v49 = vpop.f32.mrb[0].mxu0 }
 0x22b   : > { %v620_v59 = vpop.f32.mrb[1].mxu0  ;;  %v629_v61 = vadd.f32 %v3152_v49, %v3014_v58 }
 0x22c   : > { %v3153_v60 = vpop.f32.mrb[2].mxu0  ;;  %v621_v0 = vadd.f32 %v3014_v58, %v620_v59 }
 0x22d   : > { %v632_v62 = vadd.f32 %v3153_v60, %v3014_v58  ;;  %v623_v63 = vpop.f32.mrb[3].mxu0 }
 0x22e   : > { %v624_v1 = vadd.f32 %v3014_v58, %v623_v63 }
 0x22f   : > { %v3759_v2 = vpack.c.bf16 %v632_v62, %v629_v61 }
 0x230   : > { %v3761_v3 = vpack.c.bf16 %v624_v1, %v621_v0 }
 0x231   : > { %717 = vrot.lane.b32.xlu1 %v3759_v2, %s3588_s27 }
 0x232   : > { %666 = vrot.lane.b32.xlu0 %v3761_v3, %s3588_s27  ;;  %v3156_v4 = vpop.f32.mrb[0].mxu1 }
 0x233   : > { %v636_v5 = vpop.f32.mrb[1].mxu1  ;;  %v645_v7 = vadd.f32 %v3156_v4, %v3014_v58 }
 0x234   : > { %v3157_v6 = vpop.f32.mrb[2].mxu1  ;;  %v637_v10 = vadd.f32 %v3014_v58, %v636_v5  ;;  %v3857_v5 = vld [vmem:[%s4496_s8 + $0x30] sm:$0xff] }
 0x235   : > { %v648_v8 = vadd.f32 %v3157_v6, %v3014_v58  ;;  %v639_v9 = vpop.f32.mrb[3].mxu1 }
 0x236   : > { %v640_v11 = vadd.f32 %v3014_v58, %v639_v9 }
 0x237   : > { %v3765_v12 = vpack.c.bf16 %v648_v8, %v645_v7  ;;  %v3865_v7 = vld [vmem:[%s4496_s8 + $0x38] sm:$0xff] }
 0x238   : > { %v3767_v13 = vpack.c.bf16 %v640_v11, %v637_v10 }
 0x23a   : > { %767 = vrot.lane.b32.xlu1 %v3767_v13, %s3588_s27 }
 0x23e   : > { %817 = vrot.lane.b32.xlu1 %v3765_v12, %s3588_s27 }
 0x2a3   : > { %v718_v16 = vpop.permute.xlu1 %717 }
 0x2a4   : > { %v667_v14 = vpop.permute.xlu0 %666  ;;  %v723_v18 = vsel %vm668_vm2, %v718_v16, 0 }
 0x2a5   : > { %v673_v15 = vsel %vm668_vm2, %v667_v14, 0 }
 0x2a6   : > { %3159 = vmatpush3.bf16.xpose.msra.mxu1 %v673_v15 }
 0x2a7   : > { %3164 = vmatprep.subr.bf16.mxu1 %v4498_v48 }
 0x2ac   : > { %v768_v17 = vpop.permute.xlu1 %767 }
 0x2ad   : > { %v773_v19 = vsel %vm668_vm2, %v768_v17, 0  ;;  %3161 = vmatmul.mubr.msk.bf16.vlgmr.msra.gmra.mrb[4].mxu1 %vm668_vm2, %v3761_v3 }
 0x2ae   : > { %3165 = vmatpush3.bf16.xpose.msra.mxu1 %v723_v18  ;;  %3171 = vmatpush3.bf16.xpose.msra.mxu0 %v773_v19 }
 0x2af   : > { %3166 = vmatprep.mubr.msk.bf16.mxu1 %vm3587_vm1, %v4498_v48  ;;  %3176 = vmatprep.subr.bf16.mxu1 %v4498_v48 }
 0x2b0   : > { %3182 = vmatprep.subr.bf16.mxu0 %v4498_v48  ;;  %v818_v22 = vpop.permute.xlu1 %817 }
 0x2b1   : > { %v823_v23 = vsel %vm668_vm2, %v818_v22, 0 }
 0x2b5   : > { %3167 = vmatmul.mubr.msk.bf16.vlgmr.msra.gmra.mrb[8].mxu1 %vm668_vm2, %v3759_v2  ;;  %3173 = vmatmul.mubr.msk.bf16.vlgmr.msra.gmra.mrb[4].mxu0 %vm668_vm2, %v3767_v13 }
 0x2b6   : > { %3177 = vmatpush3.bf16.xpose.msra.mxu1 %v823_v23  ;;  %3178 = vmatprep.mubr.msk.bf16.mxu1 %vm3587_vm1, %v4498_v48 }
 0x2b7   : > { %3188 = vmatprep.subr.bf16.mxu1 %v4498_v48  ;;  %3184 = vmatprep.mubr.msk.bf16.mxu0 %vm3587_vm1, %v4498_v48 }
 0x2bd   : > { %3179 = vmatmul.mubr.msk.bf16.vlgmr.msra.gmra.mrb[12].mxu1 %vm668_vm2, %v3765_v12 }
 0x2be   : > { %3190 = vmatprep.mubr.msk.bf16.mxu1 %vm3587_vm1, %v4498_v48 }
 0x380   : > { %v709_v25 = vpop.f32.mrb[4].mxu1 }
 0x381   : > { %v710_v20 = vadd.f32 %v709_v25, %v663_v24  ;;  %v3162_v30 = vpop.f32.mrb[5].mxu1 }
 0x382   : > { %v712_v31 = vpop.f32.mrb[6].mxu1 }
 0x383   : > { %v713_v33 = vadd.f32 %v712_v31, %v664_v26  ;;  %v3163_v34 = vpop.f32.mrb[7].mxu1  ;;  %v3812_v35 = vadd.f32 %v710_v20, %v3804_v27 }
 0x385   : > { %v875_v36 = vsel %vm874_vm3, %v3812_v35, -inf  ;;  %v3817_v37 = vadd.f32 %v713_v33, %v3809_v32 }
 0x386   : > { %876 = vmax.xlane.f32.xlu0 %v875_v36 }
 0x387   : > { %v878_v40 = vsel %vm874_vm3, %v3817_v37, -inf }
 0x388   : > { %v809_v28 = vpop.f32.mrb[4].mxu0  ;;  %879 = vmax.xlane.f32.xlu1 %v878_v40  ;;  %v759_v41 = vpop.f32.mrb[8].mxu1 }
 0x389   : > { %v810_v43 = vadd.f32 %v809_v28, %v663_v24  ;;  %v760_v44 = vadd.f32 %v759_v41, %v663_v24  ;;  %v3168_v21 = vpop.f32.mrb[9].mxu1  ;;  %v3174_v45 = vpop.f32.mrb[5].mxu0 }
 0x38a   : > { %v762_v46 = vpop.f32.mrb[10].mxu1  ;;  %v812_v47 = vpop.f32.mrb[6].mxu0 }
 0x38b   : > { %v813_v29 = vadd.f32 %v812_v47, %v664_v26  ;;  %v3169_v38 = vpop.f32.mrb[11].mxu1  ;;  %v3175_v52 = vpop.f32.mrb[7].mxu0  ;;  %v870_v53 = vadd.f32 %v810_v43, %v3824_v42  ;;  %v763_v54 = vadd.f32 %v762_v46, %v664_v26  ;;  %v868_v57 = vadd.f32 %v760_v44, %v3834_v51 }
 0x38d   : > { %v887_v55 = vsel %vm874_vm3, %v870_v53, -inf  ;;  %v871_v56 = vadd.f32 %v813_v29, %v3829_v50  ;;  %v881_v61 = vsel %vm874_vm3, %v868_v57, -inf  ;;  %v869_v62 = vadd.f32 %v763_v54, %v3843_v39 }
 0x38e   : > { %888 = vmax.xlane.f32.xlu0 %v887_v55 }
 0x38f   : > { %v890_v49 = vsel %vm874_vm3, %v871_v56, -inf  ;;  %v884_v4 = vsel %vm874_vm3, %v869_v62, -inf }
 0x390   : > { %891 = vmax.xlane.f32.xlu1 %v890_v49  ;;  %v859_v58 = vpop.f32.mrb[12].mxu1 }
 0x391   : > { %v860_v59 = vadd.f32 %v859_v58, %v663_v24  ;;  %v3180_v60 = vpop.f32.mrb[13].mxu1 }
 0x392   : > { %882 = vmax.xlane.f32.xlu0 %v881_v61  ;;  %v862_v63 = vpop.f32.mrb[14].mxu1 }
 0x393   : > { %v863_v0 = vadd.f32 %v862_v63, %v664_v26  ;;  %v3181_v1 = vpop.f32.mrb[15].mxu1  ;;  %v3860_v6 = vadd.f32 %v860_v59, %v3857_v5 }
 0x395   : > { %v893_v8 = vsel %vm874_vm3, %v3860_v6, -inf  ;;  %v3870_v9 = vadd.f32 %v863_v0, %v3865_v7 }
 0x396   : > { %885 = vmax.xlane.f32.xlu0 %v884_v4 }
 0x397   : > { %v896_v10 = vsel %vm874_vm3, %v3870_v9, -inf }
 0x3a1   : > { %1006 = vrot.lane.b32.xlu1 %v3759_v2, %s3589_s28 }
 0x3a5   : > { %1053 = vrot.lane.b32.xlu1 %v3767_v13, %s3589_s28 }
 0x3a9   : > { %1100 = vrot.lane.b32.xlu1 %v3765_v12, %s3589_s28 }
 0x3ac   : > { %959 = vrot.lane.b32.xlu0 %v3761_v3, %s3589_s28  ;;  %s3601_s28 = smov 24  }
 0x3ad   : > { %1219 = vrot.lane.b32.xlu1 %v3759_v2, %s3590_s29 }
 0x3cb   : > { %894 = vmax.xlane.f32.xlu0 %v893_v8 }
 0x3d1   : > { %897 = vmax.xlane.f32.xlu1 %v896_v10 }
 0x3e1   : > { %1168 = vrot.lane.b32.xlu0 %v3761_v3, %s3590_s29 }
 0x3e2   : > { %1270 = vrot.lane.b32.xlu1 %v3767_v13, %s3590_s29 }
 0x3e5   : > { %1166 = vrot.lane.b32.xlu0 %v3761_v3, %s3591_s18 }
 0x3e6   : > { %1321 = vrot.lane.b32.xlu1 %v3765_v12, %s3590_s29 }
 0x3e9   : > { %1217 = vrot.lane.b32.xlu0 %v3759_v2, %s3591_s18 }
 0x3ea   : > { %1319 = vrot.lane.b32.xlu1 %v3765_v12, %s3591_s18 }
 0x3ed   : > { %1268 = vrot.lane.b32.xlu0 %v3767_v13, %s3591_s18 }
 0x413   : > { %v877_v11 = vpop.xlane.xlu0 %876 }
 0x414   : > { %v899_v15 = vsub.f32 %v3812_v35, %v877_v11 }
 0x415   : > { %v880_v14 = vpop.xlane.xlu1 %879 }
 0x416   : > { %v900_v16 = vsub.f32 %v3817_v37, %v880_v14  ;;  %v907_v18 = vmul.f32 1.442695, %v899_v15 }
 0x418   : > { %v909_v17 = vmul.f32 1.442695, %v900_v16 }
 0x41a   : > { %3426 = vpow2.f32 %v909_v17 }
 0x41b   : > { %v889_v19 = vpop.xlane.xlu0 %888  ;;  %3428 = vpow2.f32 %v907_v18 }
 0x41c   : > { %v903_v23 = vsub.f32 %v870_v53, %v889_v19 }
 0x41d   : > { %v892_v22 = vpop.xlane.xlu1 %891 }
 0x41e   : > { %v904_v24 = vsub.f32 %v871_v56, %v892_v22  ;;  %v915_v31 = vmul.f32 1.442695, %v903_v23 }
 0x41f   : > { %v883_v25 = vpop.xlane.xlu0 %882 }
 0x420   : > { %v917_v26 = vmul.f32 1.442695, %v904_v24  ;;  %v901_v20 = vsub.f32 %v868_v57, %v883_v25 }
 0x421   : > { %v1007_v30 = vpop.permute.xlu1 %1006 }
 0x422   : > { %3189 = vmatpush3.bf16.msra.mxu1 %v1007_v30  ;;  %v911_v33 = vmul.f32 1.442695, %v901_v20  ;;  %3430 = vpow2.f32 %v917_v26  ;;  %v3029_v30 = vld [vmem:[%s4495_s7 + $0x10] sm:$0xff] }
 0x423   : > { %v886_v34 = vpop.xlane.xlu0 %885  ;;  %3200 = vmatprep.subr.bf16.mxu1 %v4498_v48  ;;  %3432 = vpow2.f32 %v915_v31 }
 0x424   : > { %v902_v35 = vsub.f32 %v869_v62, %v886_v34  ;;  %v3884_v36 = vpop.eup %3426  ;;  %3434 = vpow2.f32 %v911_v33  ;;  %v3030_v33 = vld [vmem:[%s4495_s7 + $0x18] sm:$0xff] }
 0x425   : > { %v3886_v28 = vpop.eup %3428  ;;  %v1054_v43 = vpop.permute.xlu1 %1053 }
 0x426   : > { %v913_v37 = vmul.f32 1.442695, %v902_v35  ;;  %v955_v41 = vpack.c.bf16 %v3884_v36, %v3886_v28 }
 0x427   : > { %v960_v40 = vpop.permute.xlu0 %959 }
 0x428   : > { %3436 = vpow2.f32 %v913_v37  ;;  %3183 = vmatpush3.bf16.msra.mxu0 %v960_v40 }
 0x429   : > { %3194 = vmatprep.subr.bf16.mxu0 %v4498_v48  ;;  %v1101_v38 = vpop.permute.xlu1 %1100 }
 0x42b   : > { %3185 = vmatmul.mubr.msk.bf16.vlgmr.msra.gmra.mrb[8].mxu0 %vm874_vm3, %v955_v41 }
 0x42c   : > { %3195 = vmatpush3.bf16.msra.mxu0 %v1054_v43  ;;  %3196 = vmatprep.mubr.msk.bf16.mxu0 %vm3587_vm1, %v4498_v48  ;;  %v3895_v44 = vpop.eup %3430 }
 0x42d   : > { %3206 = vmatprep.subr.bf16.mxu0 %v4498_v48  ;;  %v3897_v21 = vpop.eup %3432  ;;  %v1220_v53 = vpop.permute.xlu1 %1219 }
 0x42e   : > { %v3899_v45 = vpop.eup %3434  ;;  %v957_v46 = vpack.c.bf16 %v3895_v44, %v3897_v21  ;;  %v1225_v8 = vsel %vm668_vm2, %v1220_v53, 0 }
 0x432   : > { %v3903_v47 = vpop.eup %3436 }
 0x433   : > { %3197 = vmatmul.mubr.msk.bf16.vlgmr.msra.gmra.mrb[12].mxu0 %vm874_vm3, %v957_v46  ;;  %v956_v29 = vpack.c.bf16 %v3903_v47, %v3899_v45 }
 0x434   : > { %3208 = vmatprep.mubr.msk.bf16.mxu0 %vm3587_vm1, %v4498_v48 }
 0x435   : > { %3191 = vmatmul.mubr.msk.bf16.vlgmr.msra.gmra.mrb[16].mxu1 %vm874_vm3, %v956_v29 }
 0x436   : > { %3201 = vmatpush3.bf16.msra.mxu1 %v1101_v38  ;;  %3202 = vmatprep.mubr.msk.bf16.mxu1 %vm3587_vm1, %v4498_v48 }
 0x437   : > { %3212 = vmatprep.subr.bf16.mxu1 %v4498_v48 }
 0x458   : > { %v895_v52 = vpop.xlane.xlu0 %894 }
 0x459   : > { %v905_v54 = vsub.f32 %v3860_v6, %v895_v52 }
 0x45b   : > { %v919_v57 = vmul.f32 1.442695, %v905_v54 }
 0x45c   : > { %v1169_v55 = vpop.permute.xlu0 %1168 }
 0x45d   : > { %v1174_v56 = vsel %vm668_vm2, %v1169_v55, 0  ;;  %3438 = vpow2.f32 %v919_v57 }
 0x45e   : > { %3207 = vmatpush3.bf16.xpose.msra.mxu0 %v1174_v56  ;;  %v898_v49 = vpop.xlane.xlu1 %897 }
 0x45f   : > { %v906_v58 = vsub.f32 %v3870_v9, %v898_v49  ;;  %3218 = vmatprep.subr.bf16.mxu0 %v4498_v48 }
 0x460   : > { %v1167_v59 = vpop.permute.xlu0 %1166 }
 0x461   : > { %v921_v60 = vmul.f32 1.442695, %v906_v58 }
 0x462   : > { %v1271_v61 = vpop.permute.xlu1 %1270 }
 0x463   : > { %3440 = vpow2.f32 %v921_v60  ;;  %v1276_v62 = vsel %vm668_vm2, %v1271_v61, 0 }
 0x464   : > { %v1218_v63 = vpop.permute.xlu0 %1217 }
 0x465   : > { %3209 = vmatmul.mubr.msk.bf16.vlgmr.msra.gmra.mrb[16].mxu0 %vm668_vm2, %v1167_v59 }
 0x466   : > { %3219 = vmatpush3.bf16.xpose.msra.mxu0 %v1276_v62  ;;  %3220 = vmatprep.mubr.msk.bf16.mxu0 %vm3587_vm1, %v4498_v48  ;;  %v1322_v9 = vpop.permute.xlu1 %1321 }
 0x467   : > { %3230 = vmatprep.subr.bf16.mxu0 %v4498_v48  ;;  %v3923_v0 = vpop.eup %3438  ;;  %v1327_v10 = vsel %vm668_vm2, %v1322_v9, 0 }
 0x468   : > { %v1269_v1 = vpop.permute.xlu0 %1268 }
 0x46a   : > { %v1320_v11 = vpop.permute.xlu1 %1319 }
 0x46d   : > { %v3925_v4 = vpop.eup %3440  ;;  %3221 = vmatmul.mubr.msk.bf16.vlgmr.msra.gmra.mrb[20].mxu0 %vm668_vm2, %v1269_v1 }
 0x46e   : > { %v958_v6 = vpack.c.bf16 %v3925_v4, %v3923_v0  ;;  %3232 = vmatprep.mubr.msk.bf16.mxu0 %vm3587_vm1, %v4498_v48 }
 0x470   : > { %3203 = vmatmul.mubr.msk.bf16.vlgmr.msra.gmra.mrb[20].mxu1 %vm874_vm3, %v958_v6 }
 0x471   : > { %3213 = vmatpush3.bf16.xpose.msra.mxu1 %v1225_v8  ;;  %3214 = vmatprep.mubr.msk.bf16.mxu1 %vm3587_vm1, %v4498_v48 }
 0x472   : > { %3224 = vmatprep.subr.bf16.mxu1 %v4498_v48 }
 0x478   : > { %3215 = vmatmul.mubr.msk.bf16.vlgmr.msra.gmra.mrb[24].mxu1 %vm668_vm2, %v1218_v63 }
 0x479   : > { %3225 = vmatpush3.bf16.xpose.msra.mxu1 %v1327_v10  ;;  %3226 = vmatprep.mubr.msk.bf16.mxu1 %vm3587_vm1, %v4498_v48 }
 0x47a   : > { %3236 = vmatprep.subr.bf16.mxu1 %v4498_v48 }
 0x480   : > { %3227 = vmatmul.mubr.msk.bf16.vlgmr.msra.gmra.mrb[28].mxu1 %vm668_vm2, %v1320_v11 }
 0x481   : > { %3238 = vmatprep.mubr.msk.bf16.mxu1 %vm3587_vm1, %v4498_v48 }
 0x4fe   : > { %v3945_v14 = vpop.f32.mrb[8].mxu0 }
 0x4ff   : > { %4500 = vst [vmem:[#allocation3_spill] sm:$0xff] %v3945_v14  ;;  %v3186_v15 = vpop.f32.mrb[9].mxu0 }
 0x500   : > { %v3947_v16 = vpop.f32.mrb[10].mxu0 }
 0x501   : > { %4501 = vst [vmem:[#allocation4_spill] sm:$0xff] %v3947_v16  ;;  %v3187_v17 = vpop.f32.mrb[11].mxu0 }
 0x506   : > { %v3949_v18 = vpop.f32.mrb[12].mxu0 }
 0x507   : > { %4502 = vst [vmem:[#allocation5_spill] sm:$0xff] %v3949_v18  ;;  %v3198_v19 = vpop.f32.mrb[13].mxu0 }
 0x508   : > { %v3951_v22 = vpop.f32.mrb[16].mxu1  ;;  %v3953_v23 = vpop.f32.mrb[14].mxu0 }
 0x509   : > { %4503 = vst [vmem:[#allocation6_spill] sm:$0xff] %v3951_v22  ;;  %4504 = vst [vmem:[#allocation7_spill] sm:$0xff] %v3953_v23  ;;  %v3192_v24 = vpop.f32.mrb[17].mxu1  ;;  %v3199_v25 = vpop.f32.mrb[15].mxu0 }
 0x50a   : > { %v3955_v26 = vpop.f32.mrb[18].mxu1 }
 0x50b   : > { %4505 = vst [vmem:[#allocation8_spill] sm:$0xff] %v3955_v26  ;;  %v3193_v20 = vpop.f32.mrb[19].mxu1 }
 0x538   : > { %v1210_v31 = vpop.f32.mrb[16].mxu0 }
 0x539   : > { %v1211_v34 = vadd.f32 %v3029_v30, %v1210_v31  ;;  %v3210_v35 = vpop.f32.mrb[17].mxu0 }
 0x53a   : > { %v1213_v37 = vpop.f32.mrb[18].mxu0 }
 0x53b   : > { %v1214_v40 = vadd.f32 %v3030_v33, %v1213_v37  ;;  %v3211_v41 = vpop.f32.mrb[19].mxu0  ;;  %v3964_v43 = vadd.f32 %v1211_v34, %v3804_v27 }
 0x53d   : > { %v1378_v46 = vsel %vm874_vm3, %v3964_v43, -inf  ;;  %v3969_v29 = vadd.f32 %v1214_v40, %v3809_v32 }
 0x53e   : > { %1379 = vmax.xlane.f32.xlu0 %v1378_v46 }
 0x53f   : > { %v1381_v38 = vsel %vm874_vm3, %v3969_v29, -inf }
 0x540   : > { %1382 = vmax.xlane.f32.xlu1 %v1381_v38  ;;  %v1312_v52 = vpop.f32.mrb[20].mxu0 }
 0x541   : > { %v3222_v53 = vpop.f32.mrb[21].mxu0  ;;  %v1313_v60 = vadd.f32 %v3029_v30, %v1312_v52 }
 0x542   : > { %v1315_v54 = vpop.f32.mrb[22].mxu0 }
 0x543   : > { %v3973_v55 = vpop.f32.mrb[20].mxu1  ;;  %v3223_v56 = vpop.f32.mrb[23].mxu0  ;;  %v3980_v10 = vadd.f32 %v1313_v60, %v3824_v42 }
 0x544   : > { %4506 = vst [vmem:[#allocation9_spill] sm:$0xff] %v3973_v55  ;;  %v3204_v57 = vpop.f32.mrb[21].mxu1 }
 0x545   : > { %v3975_v49 = vpop.f32.mrb[22].mxu1  ;;  %v1390_v19 = vsel %vm874_vm3, %v3980_v10, -inf }
 0x546   : > { %4507 = vst [vmem:[#allocation10_spill] sm:$0xff] %v3975_v49  ;;  %v3205_v58 = vpop.f32.mrb[23].mxu1 }
 0x54b   : > { %v1261_v59 = vpop.f32.mrb[24].mxu1 }
 0x54c   : > { %v1262_v61 = vadd.f32 %v3029_v30, %v1261_v59  ;;  %v3216_v62 = vpop.f32.mrb[25].mxu1 }
 0x54d   : > { %v1264_v63 = vpop.f32.mrb[26].mxu1 }
 0x54e   : > { %v3217_v1 = vpop.f32.mrb[27].mxu1  ;;  %v1372_v6 = vadd.f32 %v1262_v61, %v3834_v51  ;;  %v1265_v8 = vadd.f32 %v3030_v33, %v1264_v63 }
 0x550   : > { %v1384_v9 = vsel %vm874_vm3, %v1372_v6, -inf  ;;  %v1373_v24 = vadd.f32 %v1265_v8, %v3843_v39 }
 0x551   : > { %1509 = vrot.lane.b32.xlu1 %v3759_v2, %s3592_s23  ;;  %1385 = vmax.xlane.f32.xlu0 %v1384_v9 }
 0x552   : > { %v1387_v34 = vsel %vm874_vm3, %v1373_v24, -inf }
 0x553   : > { %v1363_v11 = vpop.f32.mrb[28].mxu1 }
 0x554   : > { %v1364_v15 = vadd.f32 %v3029_v30, %v1363_v11  ;;  %v3228_v17 = vpop.f32.mrb[29].mxu1  ;;  %v1316_v30 = vadd.f32 %v3030_v33, %v1315_v54 }
 0x555   : > { %1556 = vrot.lane.b32.xlu1 %v3767_v13, %s3592_s23  ;;  %1391 = vmax.xlane.f32.xlu0 %v1390_v19  ;;  %v1366_v25 = vpop.f32.mrb[30].mxu1 }
 0x556   : > { %v1367_v20 = vadd.f32 %v3030_v33, %v1366_v25  ;;  %v3229_v31 = vpop.f32.mrb[31].mxu1  ;;  %v1375_v35 = vadd.f32 %v1316_v30, %v3829_v50  ;;  %v3993_v40 = vadd.f32 %v1364_v15, %v3857_v5 }
 0x558   : > { %v1393_v37 = vsel %vm874_vm3, %v1375_v35, -inf  ;;  %v1396_v41 = vsel %vm874_vm3, %v3993_v40, -inf  ;;  %v4002_v33 = vadd.f32 %v1367_v20, %v3865_v7 }
 0x559   : > { %1603 = vrot.lane.b32.xlu1 %v3765_v12, %s3592_s23  ;;  %1388 = vmax.xlane.f32.xlu0 %v1387_v34 }
 0x55a   : > { %v1399_v46 = vsel %vm874_vm3, %v4002_v33, -inf }
 0x56f   : > { %1462 = vrot.lane.b32.xlu0 %v3761_v3, %s3592_s23  ;;  %s3600_s23 = smov 16  }
 0x57d   : > { %1394 = vmax.xlane.f32.xlu1 %v1393_v37 }
 0x58e   : > { %1755 = vrot.lane.b32.xlu1 %v3759_v2, %s3593_s24  ;;  %1397 = vmax.xlane.f32.xlu0 %v1396_v41 }
 0x5a4   : > { %1704 = vrot.lane.b32.xlu0 %v3761_v3, %s3593_s24 }
 0x5a8   : > { %1702 = vrot.lane.b32.xlu0 %v3761_v3, %s3594_s25 }
 0x5ac   : > { %1753 = vrot.lane.b32.xlu0 %v3759_v2, %s3594_s25 }
 0x5b0   : > { %1804 = vrot.lane.b32.xlu0 %v3767_v13, %s3594_s25 }
 0x5b2   : > { %1400 = vmax.xlane.f32.xlu1 %v1399_v46 }
 0x5c3   : > { %1806 = vrot.lane.b32.xlu1 %v3767_v13, %s3593_s24 }
 0x5c7   : > { %1857 = vrot.lane.b32.xlu1 %v3765_v12, %s3593_s24 }
 0x5cb   : > { %1855 = vrot.lane.b32.xlu1 %v3765_v12, %s3594_s25  ;;  %v1380_v53 = vpop.xlane.xlu0 %1379 }
 0x5cc   : > { %v1402_v56 = vsub.f32 %v3964_v43, %v1380_v53 }
 0x5cd   : > { %v1383_v38 = vpop.xlane.xlu1 %1382 }
 0x5ce   : > { %v1403_v54 = vsub.f32 %v3969_v29, %v1383_v38  ;;  %v1410_v58 = vmul.f32 1.442695, %v1402_v56 }
 0x5d0   : > { %v1412_v57 = vmul.f32 1.442695, %v1403_v54 }
 0x5d1   : > { %v1510_v52 = vpop.permute.xlu1 %1509 }
 0x5d2   : > { %3237 = vmatpush3.bf16.msra.mxu1 %v1510_v52  ;;  %3442 = vpow2.f32 %v1412_v57 }
 0x5d3   : > { %3248 = vmatprep.subr.bf16.mxu1 %v4498_v48  ;;  %3444 = vpow2.f32 %v1410_v58 }
 0x5d5   : > { %v1557_v29 = vpop.permute.xlu1 %1556 }
 0x5dc   : > { %v4013_v8 = vpop.eup %3442 }
 0x5dd   : > { %v4015_v15 = vpop.eup %3444 }
 0x5de   : > { %v1386_v59 = vpop.xlane.xlu0 %1385  ;;  %v1458_v43 = vpack.c.bf16 %v4013_v8, %v4015_v15 }
 0x5df   : > { %v1404_v60 = vsub.f32 %v1372_v6, %v1386_v59 }
 0x5e1   : > { %v1414_v62 = vmul.f32 1.442695, %v1404_v60 }
 0x5e2   : > { %v1392_v61 = vpop.xlane.xlu0 %1391 }
 0x5e3   : > { %3446 = vpow2.f32 %v1414_v62  ;;  %v1406_v25 = vsub.f32 %v3980_v10, %v1392_v61 }
 0x5e5   : > { %v1418_v20 = vmul.f32 1.442695, %v1406_v25 }
 0x5e6   : > { %v1389_v63 = vpop.xlane.xlu0 %1388 }
 0x5e7   : > { %v1405_v1 = vsub.f32 %v1373_v24, %v1389_v63  ;;  %v1604_v24 = vpop.permute.xlu1 %1603 }
 0x5e9   : > { %v1416_v9 = vmul.f32 1.442695, %v1405_v1 }
 0x5ea   : > { %v1463_v11 = vpop.permute.xlu0 %1462 }
 0x5eb   : > { %3448 = vpow2.f32 %v1416_v9  ;;  %3231 = vmatpush3.bf16.msra.mxu0 %v1463_v11 }
 0x5ec   : > { %3242 = vmatprep.subr.bf16.mxu0 %v4498_v48  ;;  %3450 = vpow2.f32 %v1418_v20 }
 0x5ed   : > { %v4024_v6 = vpop.eup %3446 }
 0x5ee   : > { %3233 = vmatmul.mubr.msk.bf16.vlgmr.msra.gmra.mrb[24].mxu0 %vm874_vm3, %v1458_v43 }
 0x5ef   : > { %3243 = vmatpush3.bf16.msra.mxu0 %v1557_v29  ;;  %3244 = vmatprep.mubr.msk.bf16.mxu0 %vm3587_vm1, %v4498_v48 }
 0x5f0   : > { %3254 = vmatprep.subr.bf16.mxu0 %v4498_v48 }
 0x5f5   : > { %v4026_v17 = vpop.eup %3448 }
 0x5f6   : > { %v1459_v19 = vpack.c.bf16 %v4026_v17, %v4024_v6  ;;  %v4035_v37 = vpop.eup %3450 }
 0x5f8   : > { %3239 = vmatmul.mubr.msk.bf16.vlgmr.msra.gmra.mrb[32].mxu1 %vm874_vm3, %v1459_v19 }
 0x5f9   : > { %3249 = vmatpush3.bf16.msra.mxu1 %v1604_v24  ;;  %3250 = vmatprep.mubr.msk.bf16.mxu1 %vm3587_vm1, %v4498_v48 }
 0x5fa   : > { %3260 = vmatprep.subr.bf16.mxu1 %v4498_v48 }
 0x60a   : > { %v1395_v31 = vpop.xlane.xlu1 %1394 }
 0x60b   : > { %v1407_v34 = vsub.f32 %v1375_v35, %v1395_v31 }
 0x60d   : > { %v1420_v30 = vmul.f32 1.442695, %v1407_v34 }
 0x60e   : > { %v1756_v53 = vpop.permute.xlu1 %1755 }
 0x60f   : > { %3452 = vpow2.f32 %v1420_v30  ;;  %v1761_v9 = vsel %vm668_vm2, %v1756_v53, 0  ;;  %v3039_v53 = vld [vmem:[%s4495_s7 + $0x20] sm:$0xff] }
 0x619   : > { %v4037_v41 = vpop.eup %3452 }
 0x61a   : > { %v1460_v46 = vpack.c.bf16 %v4037_v41, %v4035_v37 }
 0x61b   : > { %v1398_v38 = vpop.xlane.xlu0 %1397 }
 0x61c   : > { %3245 = vmatmul.mubr.msk.bf16.vlgmr.msra.gmra.mrb[28].mxu0 %vm874_vm3, %v1460_v46  ;;  %v1408_v54 = vsub.f32 %v3993_v40, %v1398_v38 }
 0x61d   : > { %3256 = vmatprep.mubr.msk.bf16.mxu0 %vm3587_vm1, %v4498_v48 }
 0x61e   : > { %v1422_v56 = vmul.f32 1.442695, %v1408_v54 }
 0x61f   : > { %v1705_v10 = vpop.permute.xlu0 %1704 }
 0x620   : > { %v1710_v52 = vsel %vm668_vm2, %v1705_v10, 0  ;;  %3454 = vpow2.f32 %v1422_v56  ;;  %v3040_v56 = vld [vmem:[%s4495_s7 + $0x28] sm:$0xff] }
 0x621   : > { %3255 = vmatpush3.bf16.xpose.msra.mxu0 %v1710_v52 }
 0x622   : > { %3266 = vmatprep.subr.bf16.mxu0 %v4498_v48 }
 0x623   : > { %v1703_v35 = vpop.permute.xlu0 %1702 }
 0x627   : > { %v1754_v62 = vpop.permute.xlu0 %1753 }
 0x628   : > { %3257 = vmatmul.mubr.msk.bf16.vlgmr.msra.gmra.mrb[32].mxu0 %vm668_vm2, %v1703_v35 }
 0x629   : > { %3268 = vmatprep.mubr.msk.bf16.mxu0 %vm3587_vm1, %v4498_v48 }
 0x62a   : > { %v4054_v1 = vpop.eup %3454 }
 0x62b   : > { %v1805_v63 = vpop.permute.xlu0 %1804 }
 0x63f   : > { %v1401_v57 = vpop.xlane.xlu1 %1400 }
 0x640   : > { %v1409_v58 = vsub.f32 %v4002_v33, %v1401_v57 }
 0x642   : > { %v1424_v59 = vmul.f32 1.442695, %v1409_v58 }
 0x643   : > { %v1807_v60 = vpop.permute.xlu1 %1806 }
 0x644   : > { %3456 = vpow2.f32 %v1424_v59  ;;  %v1812_v61 = vsel %vm668_vm2, %v1807_v60, 0 }
 0x645   : > { %3267 = vmatpush3.bf16.xpose.msra.mxu0 %v1812_v61 }
 0x646   : > { %3278 = vmatprep.subr.bf16.mxu0 %v4498_v48 }
 0x647   : > { %v1858_v11 = vpop.permute.xlu1 %1857 }
 0x648   : > { %v1863_v43 = vsel %vm668_vm2, %v1858_v11, 0 }
 0x64b   : > { %v1856_v29 = vpop.permute.xlu1 %1855 }
 0x64c   : > { %3269 = vmatmul.mubr.msk.bf16.vlgmr.msra.gmra.mrb[36].mxu0 %vm668_vm2, %v1805_v63 }
 0x64d   : > { %3280 = vmatprep.mubr.msk.bf16.mxu0 %vm3587_vm1, %v4498_v48 }
 0x64e   : > { %v4058_v40 = vpop.eup %3456 }
 0x64f   : > { %v1461_v33 = vpack.c.bf16 %v4058_v40, %v4054_v1 }
 0x651   : > { %3251 = vmatmul.mubr.msk.bf16.vlgmr.msra.gmra.mrb[36].mxu1 %vm874_vm3, %v1461_v33 }
 0x652   : > { %3261 = vmatpush3.bf16.xpose.msra.mxu1 %v1761_v9  ;;  %3262 = vmatprep.mubr.msk.bf16.mxu1 %vm3587_vm1, %v4498_v48 }
 0x653   : > { %3272 = vmatprep.subr.bf16.mxu1 %v4498_v48 }
 0x659   : > { %3263 = vmatmul.mubr.msk.bf16.vlgmr.msra.gmra.mrb[40].mxu1 %vm668_vm2, %v1754_v62 }
 0x65a   : > { %3273 = vmatpush3.bf16.xpose.msra.mxu1 %v1863_v43  ;;  %3274 = vmatprep.mubr.msk.bf16.mxu1 %vm3587_vm1, %v4498_v48 }
 0x65b   : > { %3284 = vmatprep.subr.bf16.mxu1 %v4498_v48 }
 0x661   : > { %3275 = vmatmul.mubr.msk.bf16.vlgmr.msra.gmra.mrb[44].mxu1 %vm668_vm2, %v1856_v29 }
 0x662   : > { %3286 = vmatprep.mubr.msk.bf16.mxu1 %vm3587_vm1, %v4498_v48 }
 0x6c1   : > { %v4075_v19 = vpop.f32.mrb[24].mxu0 }
 0x6c2   : > { %v3234_v24 = vpop.f32.mrb[25].mxu0 }
 0x6c3   : > { %v4077_v25 = vpop.f32.mrb[26].mxu0 }
 0x6c4   : > { %v3235_v20 = vpop.f32.mrb[27].mxu0 }
 0x6cb   : > { %v4079_v31 = vpop.f32.mrb[32].mxu1 }
 0x6cc   : > { %v3240_v34 = vpop.f32.mrb[33].mxu1 }
 0x6cd   : > { %v4081_v30 = vpop.f32.mrb[34].mxu1 }
 0x6ce   : > { %v3241_v46 = vpop.f32.mrb[35].mxu1 }
 0x6ef   : > { %v4083_v38 = vpop.f32.mrb[28].mxu0 }
 0x6f0   : > { %v3246_v10 = vpop.f32.mrb[29].mxu0 }
 0x6f1   : > { %v4085_v52 = vpop.f32.mrb[30].mxu0 }
 0x6f2   : > { %v3247_v35 = vpop.f32.mrb[31].mxu0 }
 0x6fb   : > { %v1746_v54 = vpop.f32.mrb[32].mxu0 }
 0x6fc   : > { %v1747_v57 = vadd.f32 %v3039_v53, %v1746_v54  ;;  %v3258_v58 = vpop.f32.mrb[33].mxu0 }
 0x6fd   : > { %v1749_v59 = vpop.f32.mrb[34].mxu0 }
 0x6fe   : > { %v1750_v60 = vadd.f32 %v3040_v56, %v1749_v59  ;;  %v3259_v61 = vpop.f32.mrb[35].mxu0  ;;  %v4094_v62 = vadd.f32 %v1747_v57, %v3804_v27 }
 0x700   : > { %v1914_v63 = vsel %vm874_vm3, %v4094_v62, -inf  ;;  %v4099_v33 = vadd.f32 %v1750_v60, %v3809_v32 }
 0x701   : > { %1915 = vmax.xlane.f32.xlu0 %v1914_v63 }
 0x702   : > { %v1917_v9 = vsel %vm874_vm3, %v4099_v33, -inf }
 0x703   : > { %1918 = vmax.xlane.f32.xlu1 %v1917_v9 }
 0x714   : > { %2045 = vrot.lane.b32.xlu1 %v3759_v2, %s3595_s14 }
 0x718   : > { %2092 = vrot.lane.b32.xlu1 %v3767_v13, %s3595_s14 }
 0x71c   : > { %2139 = vrot.lane.b32.xlu1 %v3765_v12, %s3595_s14 }
 0x71f   : > { %v1848_v27 = vpop.f32.mrb[36].mxu0 }
 0x720   : > { %v3270_v11 = vpop.f32.mrb[37].mxu0  ;;  %v1849_v10 = vadd.f32 %v3039_v53, %v1848_v27 }
 0x721   : > { %v1851_v43 = vpop.f32.mrb[38].mxu0 }
 0x722   : > { %v3271_v32 = vpop.f32.mrb[39].mxu0  ;;  %v1910_v63 = vadd.f32 %v1849_v10, %v3824_v42 }
 0x724   : > { %v4109_v29 = vpop.f32.mrb[36].mxu1 }
 0x725   : > { %v3252_v24 = vpop.f32.mrb[37].mxu1 }
 0x726   : > { %v4111_v20 = vpop.f32.mrb[38].mxu1  ;;  %v1926_v24 = vsel %vm874_vm3, %v1910_v63, -inf }
 0x727   : > { %v3253_v34 = vpop.f32.mrb[39].mxu1 }
 0x72c   : > { %v1797_v46 = vpop.f32.mrb[40].mxu1 }
 0x72d   : > { %v1798_v35 = vadd.f32 %v3039_v53, %v1797_v46  ;;  %v3264_v54 = vpop.f32.mrb[41].mxu1  ;;  %v1852_v46 = vadd.f32 %v3040_v56, %v1851_v43 }
 0x72e   : > { %v1800_v57 = vpop.f32.mrb[42].mxu1 }
 0x72f   : > { %v3265_v58 = vpop.f32.mrb[43].mxu1  ;;  %v1908_v59 = vadd.f32 %v1798_v35, %v3834_v51  ;;  %v1801_v60 = vadd.f32 %v3040_v56, %v1800_v57  ;;  %v1911_v35 = vadd.f32 %v1852_v46, %v3829_v50 }
 0x731   : > { %v1920_v61 = vsel %vm874_vm3, %v1908_v59, -inf  ;;  %v1909_v34 = vadd.f32 %v1801_v60, %v3843_v39  ;;  %v1929_v42 = vsel %vm874_vm3, %v1911_v35, -inf }
 0x732   : > { %1921 = vmax.xlane.f32.xlu0 %v1920_v61 }
 0x733   : > { %v1923_v51 = vsel %vm874_vm3, %v1909_v34, -inf }
 0x734   : > { %v1899_v9 = vpop.f32.mrb[44].mxu1 }
 0x735   : > { %v1900_v11 = vadd.f32 %v3039_v53, %v1899_v9  ;;  %v3276_v32 = vpop.f32.mrb[45].mxu1 }
 0x736   : > { %1927 = vmax.xlane.f32.xlu0 %v1926_v24  ;;  %v1902_v27 = vpop.f32.mrb[46].mxu1 }
 0x737   : > { %v1903_v54 = vadd.f32 %v3040_v56, %v1902_v27  ;;  %v3277_v58 = vpop.f32.mrb[47].mxu1  ;;  %v4125_v39 = vadd.f32 %v1900_v11, %v3857_v5 }
 0x739   : > { %v1932_v53 = vsel %vm874_vm3, %v4125_v39, -inf  ;;  %v4130_v56 = vadd.f32 %v1903_v54, %v3865_v7 }
 0x73a   : > { %1924 = vmax.xlane.f32.xlu0 %v1923_v51 }
 0x73b   : > { %v1935_v50 = vsel %vm874_vm3, %v4130_v56, -inf }
 0x740   : > { %1930 = vmax.xlane.f32.xlu1 %v1929_v42 }
 0x750   : > { %1998 = vrot.lane.b32.xlu0 %v3761_v3, %s3595_s14 }
 0x751   : > { %2291 = vrot.lane.b32.xlu1 %v3759_v2, %s3596_s15 }
 0x76f   : > { %1933 = vmax.xlane.f32.xlu0 %v1932_v53 }
 0x775   : > { %1936 = vmax.xlane.f32.xlu1 %v1935_v50 }
 0x785   : > { %2240 = vrot.lane.b32.xlu0 %v3761_v3, %s3596_s15 }
 0x786   : > { %2342 = vrot.lane.b32.xlu1 %v3767_v13, %s3596_s15 }
 0x789   : > { %2238 = vrot.lane.b32.xlu0 %v3761_v3, %s3597_s16 }
 0x78a   : > { %2393 = vrot.lane.b32.xlu1 %v3765_v12, %s3596_s15 }
 0x78d   : > { %2289 = vrot.lane.b32.xlu0 %v3759_v2, %s3597_s16 }
 0x78e   : > { %2391 = vrot.lane.b32.xlu1 %v3765_v12, %s3597_s16  ;;  %v1916_v43 = vpop.xlane.xlu0 %1915 }
 0x78f   : > { %v1938_v57 = vsub.f32 %v4094_v62, %v1916_v43 }
 0x790   : > { %v1919_v5 = vpop.xlane.xlu1 %1918 }
 0x791   : > { %2340 = vrot.lane.b32.xlu0 %v3767_v13, %s3597_s16  ;;  %v1939_v10 = vsub.f32 %v4099_v33, %v1919_v5  ;;  %v1946_v61 = vmul.f32 1.442695, %v1938_v57 }
 0x793   : > { %v1948_v60 = vmul.f32 1.442695, %v1939_v10 }
 0x794   : > { %v2046_v7 = vpop.permute.xlu1 %2045 }
 0x795   : > { %3285 = vmatpush3.bf16.msra.mxu1 %v2046_v7  ;;  %3458 = vpow2.f32 %v1948_v60 }
 0x796   : > { %3296 = vmatprep.subr.bf16.mxu1 %v4498_v48  ;;  %3460 = vpow2.f32 %v1946_v61 }
 0x798   : > { %v2093_v11 = vpop.permute.xlu1 %2092 }
 0x79c   : > { %v2140_v58 = vpop.permute.xlu1 %2139 }
 0x79f   : > { %v4144_v42 = vpop.eup %3458 }
 0x7a0   : > { %v4146_v50 = vpop.eup %3460 }
 0x7bf   : > { %v1922_v9 = vpop.xlane.xlu0 %1921 }
 0x7c0   : > { %v1940_v32 = vsub.f32 %v1908_v59, %v1922_v9  ;;  %v1994_v59 = vpack.c.bf16 %v4144_v42, %v4146_v50 }
 0x7c2   : > { %v1950_v27 = vmul.f32 1.442695, %v1940_v32 }
 0x7c3   : > { %v1928_v24 = vpop.xlane.xlu0 %1927 }
 0x7c4   : > { %v1942_v51 = vsub.f32 %v1910_v63, %v1928_v24  ;;  %3462 = vpow2.f32 %v1950_v27 }
 0x7c6   : > { %v1954_v62 = vmul.f32 1.442695, %v1942_v51 }
 0x7c7   : > { %v1925_v46 = vpop.xlane.xlu0 %1924 }
 0x7c8   : > { %v1941_v54 = vsub.f32 %v1909_v34, %v1925_v46 }
 0x7ca   : > { %v1952_v53 = vmul.f32 1.442695, %v1941_v54 }
 0x7cb   : > { %v1999_v33 = vpop.permute.xlu0 %1998 }
 0x7cc   : > { %3464 = vpow2.f32 %v1952_v53  ;;  %3279 = vmatpush3.bf16.msra.mxu0 %v1999_v33 }
 0x7cd   : > { %v1931_v5 = vpop.xlane.xlu1 %1930  ;;  %3290 = vmatprep.subr.bf16.mxu0 %v4498_v48  ;;  %3466 = vpow2.f32 %v1954_v62 }
 0x7ce   : > { %v1943_v7 = vsub.f32 %v1911_v35, %v1931_v5  ;;  %v4155_v34 = vpop.eup %3462 }
 0x7cf   : > { %3281 = vmatmul.mubr.msk.bf16.vlgmr.msra.gmra.mrb[40].mxu0 %vm874_vm3, %v1994_v59 }
 0x7d0   : > { %v1956_v63 = vmul.f32 1.442695, %v1943_v7  ;;  %3291 = vmatpush3.bf16.msra.mxu0 %v2093_v11  ;;  %3292 = vmatprep.mubr.msk.bf16.mxu0 %vm3587_vm1, %v4498_v48 }
 0x7d1   : > { %3302 = vmatprep.subr.bf16.mxu0 %v4498_v48  ;;  %v2292_v9 = vpop.permute.xlu1 %2291 }
 0x7d2   : > { %3468 = vpow2.f32 %v1956_v63  ;;  %v2297_v7 = vsel %vm668_vm2, %v2292_v9, 0 }
 0x7d6   : > { %v4157_v43 = vpop.eup %3464 }
 0x7d7   : > { %v1995_v10 = vpack.c.bf16 %v4157_v43, %v4155_v34  ;;  %v4164_v35 = vpop.eup %3466 }
 0x7d9   : > { %3287 = vmatmul.mubr.msk.bf16.vlgmr.msra.gmra.mrb[48].mxu1 %vm874_vm3, %v1995_v10 }
 0x7da   : > { %3297 = vmatpush3.bf16.msra.mxu1 %v2140_v58  ;;  %3298 = vmatprep.mubr.msk.bf16.mxu1 %vm3587_vm1, %v4498_v48 }
 0x7db   : > { %3308 = vmatprep.subr.bf16.mxu1 %v4498_v48 }
 0x7dc   : > { %v4167_v57 = vpop.eup %3468 }
 0x7dd   : > { %v1996_v60 = vpack.c.bf16 %v4167_v57, %v4164_v35 }
 0x7df   : > { %3293 = vmatmul.mubr.msk.bf16.vlgmr.msra.gmra.mrb[44].mxu0 %vm874_vm3, %v1996_v60 }
 0x7e0   : > { %3304 = vmatprep.mubr.msk.bf16.mxu0 %vm3587_vm1, %v4498_v48 }
 0x7fc   : > { %v1934_v61 = vpop.xlane.xlu0 %1933 }
 0x7fd   : > { %v1944_v11 = vsub.f32 %v4125_v39, %v1934_v61 }
 0x7ff   : > { %v1958_v27 = vmul.f32 1.442695, %v1944_v11 }
 0x800   : > { %v2241_v32 = vpop.permute.xlu0 %2240 }
 0x801   : > { %v2246_v24 = vsel %vm668_vm2, %v2241_v32, 0  ;;  %3470 = vpow2.f32 %v1958_v27 }
 0x802   : > { %3303 = vmatpush3.bf16.xpose.msra.mxu0 %v2246_v24  ;;  %v1937_v46 = vpop.xlane.xlu1 %1936 }
 0x803   : > { %v1945_v54 = vsub.f32 %v4130_v56, %v1937_v46  ;;  %3314 = vmatprep.subr.bf16.mxu0 %v4498_v48 }
 0x804   : > { %v2239_v58 = vpop.permute.xlu0 %2238 }
 0x805   : > { %v1960_v51 = vmul.f32 1.442695, %v1945_v54 }
 0x806   : > { %v2343_v53 = vpop.permute.xlu1 %2342 }
 0x807   : > { %3472 = vpow2.f32 %v1960_v51  ;;  %v2348_v33 = vsel %vm668_vm2, %v2343_v53, 0 }
 0x808   : > { %v2290_v39 = vpop.permute.xlu0 %2289 }
 0x809   : > { %3305 = vmatmul.mubr.msk.bf16.vlgmr.msra.gmra.mrb[48].mxu0 %vm668_vm2, %v2239_v58 }
 0x80a   : > { %3315 = vmatpush3.bf16.xpose.msra.mxu0 %v2348_v33  ;;  %3316 = vmatprep.mubr.msk.bf16.mxu0 %vm3587_vm1, %v4498_v48  ;;  %v2394_v63 = vpop.permute.xlu1 %2393 }
 0x80b   : > { %3326 = vmatprep.subr.bf16.mxu0 %v4498_v48  ;;  %v4183_v62 = vpop.eup %3470  ;;  %v2399_v10 = vsel %vm668_vm2, %v2394_v63, 0 }
 0x80c   : > { %v2341_v56 = vpop.permute.xlu0 %2340 }
 0x80e   : > { %v2392_v60 = vpop.permute.xlu1 %2391 }
 0x811   : > { %v4185_v5 = vpop.eup %3472  ;;  %3317 = vmatmul.mubr.msk.bf16.vlgmr.msra.gmra.mrb[52].mxu0 %vm668_vm2, %v2341_v56 }
 0x812   : > { %v1997_v59 = vpack.c.bf16 %v4185_v5, %v4183_v62  ;;  %3328 = vmatprep.mubr.msk.bf16.mxu0 %vm3587_vm1, %v4498_v48 }
 0x814   : > { %3299 = vmatmul.mubr.msk.bf16.vlgmr.msra.gmra.mrb[52].mxu1 %vm874_vm3, %v1997_v59  ;;  %v3050_v59 = vld [vmem:[%s4495_s7 + $0x38] sm:$0xff] }
 0x815   : > { %3309 = vmatpush3.bf16.xpose.msra.mxu1 %v2297_v7  ;;  %3310 = vmatprep.mubr.msk.bf16.mxu1 %vm3587_vm1, %v4498_v48 }
 0x816   : > { %3320 = vmatprep.subr.bf16.mxu1 %v4498_v48 }
 0x81c   : > { %3311 = vmatmul.mubr.msk.bf16.vlgmr.msra.gmra.mrb[56].mxu1 %vm668_vm2, %v2290_v39  ;;  %v3049_v39 = vld [vmem:[%s4495_s7 + $0x30] sm:$0xff] }
 0x81d   : > { %3321 = vmatpush3.bf16.xpose.msra.mxu1 %v2399_v10  ;;  %3322 = vmatprep.mubr.msk.bf16.mxu1 %vm3587_vm1, %v4498_v48 }
 0x81e   : > { %3332 = vmatprep.subr.bf16.mxu1 %v4498_v48 }
 0x824   : > { %3323 = vmatmul.mubr.msk.bf16.vlgmr.msra.gmra.mrb[60].mxu1 %vm668_vm2, %v2392_v60 }
 0x825   : > { %3334 = vmatprep.mubr.msk.bf16.mxu1 %vm3587_vm1, %v4498_v48 }
 0x8a2   : > { %v4205_v61 = vpop.f32.mrb[40].mxu0 }
 0x8a3   : > { %v3282_v9 = vpop.f32.mrb[41].mxu0 }
 0x8a4   : > { %v4207_v11 = vpop.f32.mrb[42].mxu0 }
 0x8a5   : > { %v3283_v32 = vpop.f32.mrb[43].mxu0 }
 0x8a6   : > { %v3554_v32 = vld [vmem:[%s4496_s8] sm:$0xff] }
 0x8ac   : > { %v4209_v24 = vpop.f32.mrb[48].mxu1 }
 0x8ad   : > { %v3288_v27 = vpop.f32.mrb[49].mxu1 }
 0x8ae   : > { %v4211_v46 = vpop.f32.mrb[50].mxu1 }
 0x8af   : > { %v3289_v54 = vpop.f32.mrb[51].mxu1 }
 0x8b2   : > { %v4213_v58 = vpop.f32.mrb[44].mxu0 }
 0x8b3   : > { %v3294_v51 = vpop.f32.mrb[45].mxu0 }
 0x8b4   : > { %v4215_v53 = vpop.f32.mrb[46].mxu0  ;;  %v3555_v51 = vld [vmem:[%s4496_s8 + $0x8] sm:$0xff] }
 0x8b5   : > { %v3295_v33 = vpop.f32.mrb[47].mxu0 }
 0x8dc   : > { %v2282_v56 = vpop.f32.mrb[48].mxu0 }
 0x8dd   : > { %v2283_v7 = vadd.f32 %v3049_v39, %v2282_v56  ;;  %v3306_v63 = vpop.f32.mrb[49].mxu0 }
 0x8de   : > { %v2285_v10 = vpop.f32.mrb[50].mxu0 }
 0x8df   : > { %v2286_v60 = vadd.f32 %v3050_v59, %v2285_v10  ;;  %v3307_v9 = vpop.f32.mrb[51].mxu0  ;;  %v4226_v27 = vadd.f32 %v3554_v32, %v2283_v7 }
 0x8e1   : > { %v2450_v54 = vsel %vm874_vm3, %v4226_v27, -inf  ;;  %v4233_v33 = vadd.f32 %v3555_v51, %v2286_v60  ;;  %v3556_v60 = vld [vmem:[%s4496_s8 + $0x28] sm:$0xff] }
 0x8e2   : > { %2451 = vmax.xlane.f32.xlu0 %v2450_v54 }
 0x8e3   : > { %v2453_v56 = vsel %vm874_vm3, %v4233_v33, -inf }
 0x8e4   : > { %2454 = vmax.xlane.f32.xlu1 %v2453_v56  ;;  %v2384_v63 = vpop.f32.mrb[52].mxu0 }
 0x8e5   : > { %v3318_v10 = vpop.f32.mrb[53].mxu0  ;;  %v2385_v23 = vadd.f32 %v3049_v39, %v2384_v63 }
 0x8e6   : > { %v2387_v9 = vpop.f32.mrb[54].mxu0 }
 0x8e7   : > { %v2388_v48 = vadd.f32 %v3050_v59, %v2387_v9  ;;  %v4237_v7 = vpop.f32.mrb[52].mxu1  ;;  %v3319_v32 = vpop.f32.mrb[55].mxu0 }
 0x8e8   : > { %v3300_v49 = vpop.f32.mrb[53].mxu1 }
 0x8e9   : > { %v4239_v55 = vpop.f32.mrb[54].mxu1  ;;  %v4244_v51 = vadd.f32 %v3556_v60, %v2388_v48  ;;  %v3557_v49 = vld [vmem:[%s4496_s8 + $0x10] sm:$0xff]  ;;  %v3558_v60 = vld [vmem:[%s4496_s8 + $0x20] sm:$0xff] }
 0x8ea   : > { %v3301_v54 = vpop.f32.mrb[55].mxu1 }
 0x8eb   : > { %v2465_v56 = vsel %vm874_vm3, %v4244_v51, -inf  ;;  %v4258_v54 = vadd.f32 %v3558_v60, %v2385_v23 }
 0x8ec   : > { %2466 = vmax.xlane.f32.xlu1 %v2465_v56 }
 0x8ef   : > { %v2333_v10 = vpop.f32.mrb[56].mxu1 }
 0x8f0   : > { %v2334_v9 = vadd.f32 %v3049_v39, %v2333_v10  ;;  %v3312_v18 = vpop.f32.mrb[57].mxu1  ;;  %v2462_v10 = vsel %vm874_vm3, %v4258_v54, -inf }
 0x8f1   : > { %v2336_v26 = vpop.f32.mrb[58].mxu1 }
 0x8f2   : > { %v3313_v32 = vpop.f32.mrb[59].mxu1  ;;  %v4251_v22 = vadd.f32 %v3557_v49, %v2334_v9  ;;  %v2337_v16 = vadd.f32 %v3050_v59, %v2336_v26  ;;  %v3559_v26 = vld [vmem:[%s4496_s8 + $0x18] sm:$0xff] }
 0x8f4   : > { %v2456_v48 = vsel %vm874_vm3, %v4251_v22, -inf  ;;  %v4265_v9 = vadd.f32 %v3559_v26, %v2337_v16 }
 0x8f5   : > { %2457 = vmax.xlane.f32.xlu0 %v2456_v48 }
 0x8f6   : > { %v2459_v23 = vsel %vm874_vm3, %v4265_v9, -inf }
 0x8f7   : > { %v2435_v18 = vpop.f32.mrb[60].mxu1 }
 0x8f8   : > { %v2436_v63 = vadd.f32 %v3049_v39, %v2435_v18  ;;  %v3324_v56 = vpop.f32.mrb[61].mxu1  ;;  %v3560_v39 = vld [vmem:[%s4496_s8 + $0x30] sm:$0xff]  ;;  %v1962_v18 = vsel %vm874_vm3, %v4146_v50, 0.0  ;;  %v1429_v50 = vsel %vm874_vm3, %v4013_v8, 0.0  ;;  %v1977_v8 = vsel %vm874_vm3, %v4167_v57, 0.0 }
 0x8f9   : > { %2463 = vmax.xlane.f32.xlu0 %v2462_v10  ;;  %v2438_v32 = vpop.f32.mrb[62].mxu1 }
 0x8fa   : > { %v2439_v49 = vadd.f32 %v3050_v59, %v2438_v32  ;;  %v3325_v14 = vpop.f32.mrb[63].mxu1  ;;  %v4272_v48 = vadd.f32 %v3560_v39, %v2436_v63  ;;  %v1968_v63 = vsel %vm874_vm3, %v4155_v34, 0.0  ;;  %v1441_v34 = vsel %vm874_vm3, %v4037_v41, 0.0 }
 0x8fb   : > { %v3561_v14 = vld [vmem:[%s4496_s8 + $0x38] sm:$0xff] }
 0x8fc   : > { %v2468_v16 = vsel %vm874_vm3, %v4272_v48, -inf  ;;  %v4282_v59 = vadd.f32 %v3561_v14, %v2439_v49 }
 0x8fd   : > { %2581 = vrot.lane.b32.xlu1 %v3759_v2, %s3598_s19  ;;  %2460 = vmax.xlane.f32.xlu0 %v2459_v23  ;;  %v1426_v2 = vsel %vm874_vm3, %v4015_v15, 0.0  ;;  %v1438_v15 = vsel %vm874_vm3, %v4035_v37, 0.0  ;;  %v1965_v37 = vsel %vm874_vm3, %v4144_v42, 0.0  ;;  %v4508_v23 = vmov 0.0  }
 0x8fe   : > { %v2471_v60 = vsel %vm874_vm3, %v4282_v59, -inf }
 0x901   : > { %2628 = vrot.lane.b32.xlu1 %v3767_v13, %s3598_s19  ;;  %2469 = vmax.xlane.f32.xlu0 %v2468_v16  ;;  %v1432_v13 = vsel %vm874_vm3, %v4024_v6, 0.0  ;;  %v1974_v6 = vsel %vm874_vm3, %v4164_v35, 0.0  ;;  %v1447_v35 = vsel %vm874_vm3, %v4058_v40, 0.0 }
 0x917   : > { %2534 = vrot.lane.b32.xlu0 %v3761_v3, %s3598_s19  ;;  %v1435_v3 = vsel %vm874_vm3, %v4026_v17, 0.0  ;;  %v1980_v17 = vsel %vm874_vm3, %v4183_v62, 0.0 }
 0x925   : > { %2472 = vmax.xlane.f32.xlu1 %v2471_v60 }
 0x936   : > { %1427 = vadd.xlane.f32.xlu0 %v1426_v2  ;;  %2675 = vrot.lane.b32.xlu1 %v3765_v12, %s3598_s19  ;;  %v1444_v12 = vsel %vm874_vm3, %v4054_v1, 0.0  ;;  %v1971_v1 = vsel %vm874_vm3, %v4157_v43, 0.0  ;;  %v1983_v43 = vsel %vm874_vm3, %v4185_v5, 0.0 }
 0x93a   : > { %1433 = vadd.xlane.f32.xlu0 %v1432_v13 }
 0x93e   : > { %1436 = vadd.xlane.f32.xlu0 %v1435_v3 }
 0x942   : > { %1963 = vadd.xlane.f32.xlu0 %v1962_v18 }
 0x946   : > { %1969 = vadd.xlane.f32.xlu0 %v1968_v63 }
 0x94a   : > { %1439 = vadd.xlane.f32.xlu0 %v1438_v15 }
 0x94e   : > { %1445 = vadd.xlane.f32.xlu0 %v1444_v12 }
 0x952   : > { %1975 = vadd.xlane.f32.xlu0 %v1974_v6 }
 0x956   : > { %1981 = vadd.xlane.f32.xlu0 %v1980_v17 }
 0x95a   : > { %1430 = vadd.xlane.f32.xlu1 %v1429_v50 }
 0x95e   : > { %1966 = vadd.xlane.f32.xlu1 %v1965_v37 }
 0x962   : > { %1972 = vadd.xlane.f32.xlu1 %v1971_v1 }
 0x966   : > { %1442 = vadd.xlane.f32.xlu1 %v1441_v34 }
 0x96a   : > { %1448 = vadd.xlane.f32.xlu1 %v1447_v35 }
 0x96e   : > { %1978 = vadd.xlane.f32.xlu1 %v1977_v8 }
 0x96f   : > { %v2452_v62 = vpop.xlane.xlu0 %2451 }
 0x970   : > { %v2474_v42 = vsub.f32 %v4226_v27, %v2452_v62 }
 0x971   : > { %v2455_v56 = vpop.xlane.xlu1 %2454 }
 0x972   : > { %v2482_v10 = vmul.f32 1.442695, %v2474_v42  ;;  %v2475_v26 = vsub.f32 %v4233_v33, %v2455_v56  ;;  %1984 = vadd.xlane.f32.xlu1 %v1983_v43 }
 0x974   : > { %3474 = vpow2.f32 %v2482_v10  ;;  %v2484_v41 = vmul.f32 1.442695, %v2475_v26  ;;  %v923_v10 = vsel %vm874_vm3, %v3886_v28, 0.0  ;;  %v926_v26 = vsel %vm874_vm3, %v3884_v36, 0.0 }
 0x975   : > { %v941_v36 = vsel %vm874_vm3, %v3923_v0, 0.0 }
 0x976   : > { %3476 = vpow2.f32 %v2484_v41  ;;  %v929_v41 = vsel %vm874_vm3, %v3899_v45, 0.0 }
 0x979   : > { %v2467_v40 = vpop.xlane.xlu1 %2466 }
 0x97a   : > { %v2479_v2 = vsub.f32 %v4244_v51, %v2467_v40  ;;  %v932_v40 = vsel %vm874_vm3, %v3903_v47, 0.0 }
 0x97c   : > { %v2492_v63 = vmul.f32 1.442695, %v2479_v2 }
 0x97d   : > { %v2582_v32 = vpop.permute.xlu1 %2581 }
 0x97e   : > { %v3475_v49 = vpop.eup %3474  ;;  %3333 = vmatpush3.bf16.msra.mxu1 %v2582_v32  ;;  %v935_v32 = vsel %vm874_vm3, %v3897_v21, 0.0 }
 0x97f   : > { %v2498_v57 = vsel %vm874_vm3, %v3475_v49, 0.0  ;;  %3344 = vmatprep.subr.bf16.mxu1 %v4508_v23 }
 0x980   : > { %v3477_v27 = vpop.eup %3476  ;;  %2499 = vadd.xlane.f32.xlu0 %v2498_v57 }
 0x981   : > { %v2501_v39 = vsel %vm874_vm3, %v3477_v27, 0.0  ;;  %v2530_v51 = vpack.c.bf16 %v3477_v27, %v3475_v49  ;;  %v938_v49 = vsel %vm874_vm3, %v3895_v44, 0.0  ;;  %v944_v44 = vsel %vm874_vm3, %v3925_v4, 0.0 }
 0x982   : > { %v2458_v5 = vpop.xlane.xlu0 %2457  ;;  %2502 = vadd.xlane.f32.xlu1 %v2501_v39 }
 0x983   : > { %v2476_v33 = vsub.f32 %v4251_v22, %v2458_v5 }
 0x985   : > { %v2486_v16 = vmul.f32 1.442695, %v2476_v33 }
 0x986   : > { %v2464_v14 = vpop.xlane.xlu0 %2463 }
 0x987   : > { %3478 = vpow2.f32 %v2486_v16  ;;  %v2478_v60 = vsub.f32 %v4258_v54, %v2464_v14 }
 0x989   : > { %v2490_v13 = vmul.f32 1.442695, %v2478_v60 }
 0x98a   : > { %v2461_v3 = vpop.xlane.xlu0 %2460 }
 0x98b   : > { %3480 = vpow2.f32 %v2490_v13  ;;  %v2477_v18 = vsub.f32 %v4265_v9, %v2461_v3  ;;  %v2629_v9 = vpop.permute.xlu1 %2628 }
 0x98d   : > { %v2488_v15 = vmul.f32 1.442695, %v2477_v18 }
 0x98e   : > { %v2470_v12 = vpop.xlane.xlu0 %2469 }
 0x98f   : > { %3482 = vpow2.f32 %v2488_v15  ;;  %v2480_v6 = vsub.f32 %v4272_v48, %v2470_v12 }
 0x990   : > { %3484 = vpow2.f32 %v2492_v63 }
 0x991   : > { %v3479_v17 = vpop.eup %3478  ;;  %v2494_v22 = vmul.f32 1.442695, %v2480_v6 }
 0x992   : > { %v2535_v50 = vpop.permute.xlu0 %2534  ;;  %v2504_v37 = vsel %vm874_vm3, %v3479_v17, 0.0 }
 0x993   : > { %3486 = vpow2.f32 %v2494_v22  ;;  %2505 = vadd.xlane.f32.xlu0 %v2504_v37  ;;  %3327 = vmatpush3.bf16.msra.mxu0 %v2535_v50 }
 0x994   : > { %3338 = vmatprep.subr.bf16.mxu0 %v4508_v23 }
 0x995   : > { %v3481_v54 = vpop.eup %3480 }
 0x996   : > { %3329 = vmatmul.mubr.msk.bf16.vlgmr.msra.gmra.mrb[56].mxu0 %vm874_vm3, %v2530_v51  ;;  %v2510_v1 = vsel %vm874_vm3, %v3481_v54, 0.0 }
 0x997   : > { %2511 = vadd.xlane.f32.xlu0 %v2510_v1  ;;  %3339 = vmatpush3.bf16.msra.mxu0 %v2629_v9 }
 0x998   : > { %3340 = vmatprep.mubr.msk.bf16.mxu0 %vm3587_vm1, %v4508_v23 }
 0x999   : > { %v3483_v48 = vpop.eup %3482 }
 0x99a   : > { %v2507_v34 = vsel %vm874_vm3, %v3483_v48, 0.0  ;;  %v2531_v35 = vpack.c.bf16 %v3483_v48, %v3479_v17  ;;  %v3485_v8 = vpop.eup %3484 }
 0x99b   : > { %2508 = vadd.xlane.f32.xlu1 %v2507_v34  ;;  %v2532_v62 = vpack.c.bf16 %v3485_v8, %v3481_v54  ;;  %v2513_v43 = vsel %vm874_vm3, %v3485_v8, 0.0 }
 0x99c   : > { %3335 = vmatmul.mubr.msk.bf16.vlgmr.msra.gmra.mrb[64].mxu1 %vm874_vm3, %v2531_v35 }
 0x99d   : > { %v3487_v42 = vpop.eup %3486  ;;  %3346 = vmatprep.mubr.msk.bf16.mxu1 %vm3587_vm1, %v4508_v23 }
 0x99e   : > { %3341 = vmatmul.mubr.msk.bf16.vlgmr.msra.gmra.mrb[60].mxu0 %vm874_vm3, %v2532_v62  ;;  %v2516_v56 = vsel %vm874_vm3, %v3487_v42, 0.0 }
 0x99f   : > { %2517 = vadd.xlane.f32.xlu0 %v2516_v56  ;;  %2514 = vadd.xlane.f32.xlu1 %v2513_v43 }
 0x9a3   : > { %924 = vadd.xlane.f32.xlu0 %v923_v10  ;;  %927 = vadd.xlane.f32.xlu1 %v926_v26 }
 0x9a7   : > { %930 = vadd.xlane.f32.xlu0 %v929_v41  ;;  %933 = vadd.xlane.f32.xlu1 %v932_v40 }
 0x9ab   : > { %936 = vadd.xlane.f32.xlu0 %v935_v32  ;;  %939 = vadd.xlane.f32.xlu1 %v938_v49 }
 0x9af   : > { %942 = vadd.xlane.f32.xlu0 %v941_v36 }
 0x9b2   : > { %v2473_v28 = vpop.xlane.xlu1 %2472 }
 0x9b3   : > { %v2481_v45 = vsub.f32 %v4282_v59, %v2473_v28 }
 0x9b5   : > { %v2496_v57 = vmul.f32 1.442695, %v2481_v45 }
 0x9b6   : > { %v2676_v23 = vpop.permute.xlu1 %2675 }
 0x9b7   : > { %3488 = vpow2.f32 %v2496_v57  ;;  %3345 = vmatpush3.bf16.msra.mxu1 %v2676_v23 }
 0x9c1   : > { %v3489_v47 = vpop.eup %3488 }
 0x9c2   : > { %v2519_v27 = vsel %vm874_vm3, %v3489_v47, 0.0  ;;  %v2533_v21 = vpack.c.bf16 %v3489_v47, %v3487_v42 }
 0x9c3   : > { %v1428_v39 = vpop.xlane.xlu0 %1427  ;;  %2520 = vadd.xlane.f32.xlu1 %v2519_v27 }
 0x9c4   : > { %3490 = vrcp.f32 %v1428_v39  ;;  %3347 = vmatmul.mubr.msk.bf16.vlgmr.msra.gmra.mrb[68].mxu1 %vm874_vm3, %v2533_v21 }
 0x9c7   : > { %v1434_v0 = vpop.xlane.xlu0 %1433  ;;  %945 = vadd.xlane.f32.xlu1 %v944_v44  ;;  %v4509_v44 = vld [vmem:[#allocation3_spill] sm:$0xff] }
 0x9cb   : > { %v1437_v5 = vpop.xlane.xlu0 %1436 }
 0x9ce   : > { %v3491_v59 = vpop.eup %3490 }
 0x9cf   : > { %v1964_v33 = vpop.xlane.xlu0 %1963  ;;  %v1650_v16 = vmul.f32 %v3491_v59, %v4075_v19 }
 0x9d0   : > { %3492 = vrcp.f32 %v1964_v33 }
 0x9d1   : > { %1666 = vrot.lane.b32.xlu0 %v1650_v16, %s3599_s22 }
 0x9d3   : > { %v1970_v14 = vpop.xlane.xlu0 %1969 }
 0x9d4   : > { %3494 = vrcp.f32 %v1970_v14  ;;  %v4511_v14 = vld [vmem:[#allocation6_spill] sm:$0xff] }
 0x9d7   : > { %v1440_v60 = vpop.xlane.xlu0 %1439 }
 0x9d8   : > { %3496 = vrcp.f32 %v1440_v60 }
 0x9da   : > { %v3493_v2 = vpop.eup %3492 }
 0x9db   : > { %v1446_v13 = vpop.xlane.xlu0 %1445  ;;  %v2186_v3 = vmul.f32 %v3493_v2, %v4205_v61  ;;  %v4512_v2 = vld [vmem:[#allocation8_spill] sm:$0xff] }
 0x9dc   : > { %3498 = vrcp.f32 %v1446_v13 }
 0x9dd   : > { %2202 = vrot.lane.b32.xlu0 %v2186_v3, %s3600_s23 }
 0x9de   : > { %v3495_v4 = vpop.eup %3494 }
 0x9df   : > { %v1976_v18 = vpop.xlane.xlu0 %1975  ;;  %v2188_v19 = vmul.f32 %v3495_v4, %v4209_v24 }
 0x9e0   : > { %3500 = vrcp.f32 %v1976_v18 }
 0x9e1   : > { %2206 = vrot.lane.b32.xlu0 %v2188_v19, %s3600_s23  ;;  %v4513_v19 = vld [vmem:[#allocation5_spill] sm:$0xff] }
 0x9e2   : > { %v3497_v63 = vpop.eup %3496 }
 0x9e3   : > { %v1982_v15 = vpop.xlane.xlu0 %1981  ;;  %v1654_v12 = vmul.f32 %v3497_v63, %v4083_v38 }
 0x9e4   : > { %3502 = vrcp.f32 %v1982_v15  ;;  %v4514_v15 = vld [vmem:[#allocation7_spill] sm:$0xff] }
 0x9e5   : > { %1674 = vrot.lane.b32.xlu0 %v1654_v12, %s3599_s22 }
 0x9e6   : > { %v3499_v6 = vpop.eup %3498 }
 0x9e7   : > { %v1431_v61 = vpop.xlane.xlu1 %1430  ;;  %v1656_v17 = vmul.f32 %v3499_v6, %v4109_v29 }
 0x9e8   : > { %3504 = vrcp.f32 %v1431_v61  ;;  %v4515_v61 = vld [vmem:[#allocation9_spill] sm:$0xff] }
 0x9e9   : > { %1678 = vrot.lane.b32.xlu0 %v1656_v17, %s3599_s22  ;;  %3506 = vrcp.f32 %v1434_v0 }
 0x9ea   : > { %v3501_v22 = vpop.eup %3500  ;;  %3508 = vrcp.f32 %v1437_v5  ;;  %v4510_v5 = vld [vmem:[#allocation4_spill] sm:$0xff] }
 0x9eb   : > { %v1967_v24 = vpop.xlane.xlu1 %1966  ;;  %v2190_v50 = vmul.f32 %v3501_v22, %v4213_v58 }
 0x9ec   : > { %3510 = vrcp.f32 %v1967_v24 }
 0x9ed   : > { %2210 = vrot.lane.b32.xlu0 %v2190_v50, %s3600_s23 }
 0x9ee   : > { %v3503_v37 = vpop.eup %3502 }
 0x9ef   : > { %v1973_v38 = vpop.xlane.xlu1 %1972  ;;  %v2192_v51 = vmul.f32 %v3503_v37, %v4237_v7 }
 0x9f0   : > { %3512 = vrcp.f32 %v1973_v38 }
 0x9f1   : > { %2214 = vrot.lane.b32.xlu0 %v2192_v51, %s3600_s23 }
 0x9f2   : > { %v3505_v54 = vpop.eup %3504 }
 0x9f3   : > { %v1443_v29 = vpop.xlane.xlu1 %1442  ;;  %v1651_v9 = vmul.f32 %v3505_v54, %v4077_v25  ;;  %v3507_v1 = vpop.eup %3506 }
 0x9f4   : > { %v1652_v58 = vmul.f32 %v3507_v1, %v4079_v31  ;;  %v3509_v34 = vpop.eup %3508  ;;  %3514 = vrcp.f32 %v1443_v29 }
 0x9f5   : > { %1668 = vrot.lane.b32.xlu1 %v1651_v9, %s3599_s22  ;;  %v1653_v7 = vmul.f32 %v3509_v34, %v4081_v30  ;;  %v4516_v9 = vld [vmem:[#allocation10_spill] sm:$0xff]  ;;  %v3408_v34 = vld [vmem:[%s4493_s5] sm:$0xff]  }
 0x9f6   : > { %v3511_v35 = vpop.eup %3510  ;;  %3350 = vmatprep.subr.bf16.mxu0 %v3408_v34 }
 0x9f7   : > { %v1449_v48 = vpop.xlane.xlu1 %1448  ;;  %v2187_v25 = vmul.f32 %v3511_v35, %v4207_v11  ;;  %3351 = vmatpush3.bf16.msra.mxu0 %v3408_v34 }
 0x9f8   : > { %3516 = vrcp.f32 %v1449_v48 }
 0x9f9   : > { %1670 = vrot.lane.b32.xlu1 %v1652_v58, %s3599_s22 }
 0x9fa   : > { %v3513_v62 = vpop.eup %3512 }
 0x9fb   : > { %v1979_v8 = vpop.xlane.xlu1 %1978  ;;  %v2189_v31 = vmul.f32 %v3513_v62, %v4211_v46 }
 0x9fc   : > { %3518 = vrcp.f32 %v1979_v8 }
 0x9fd   : > { %1672 = vrot.lane.b32.xlu1 %v1653_v7, %s3599_s22 }
 0x9fe   : > { %v3515_v56 = vpop.eup %3514 }
 0x9ff   : > { %v1985_v42 = vpop.xlane.xlu1 %1984  ;;  %v1655_v30 = vmul.f32 %v3515_v56, %v4085_v52  ;;  %v3409_v56 = vld [vmem:[%s4493_s5 + $0x8] sm:$0xff]  }
 0xa00   : > { %3520 = vrcp.f32 %v1985_v42  ;;  %3352 = vmatprep.subr.bf16.mxu0 %v3409_v56 }
 0xa01   : > { %2204 = vrot.lane.b32.xlu1 %v2187_v25, %s3600_s23  ;;  %3353 = vmatpush3.bf16.msra.mxu0 %v3409_v56 }
 0xa02   : > { %v3517_v43 = vpop.eup %3516 }
 0xa03   : > { %v1657_v10 = vmul.f32 %v3517_v43, %v4111_v20 }
 0xa05   : > { %2208 = vrot.lane.b32.xlu1 %v2189_v31, %s3600_s23 }
 0xa06   : > { %v3519_v26 = vpop.eup %3518 }
 0xa07   : > { %v2191_v11 = vmul.f32 %v3519_v26, %v4215_v53 }
 0xa09   : > { %1676 = vrot.lane.b32.xlu1 %v1655_v30, %s3599_s22 }
 0xa0a   : > { %v3521_v41 = vpop.eup %3520 }
 0xa0b   : > { %v2193_v46 = vmul.f32 %v3521_v41, %v4239_v55 }
 0xa0d   : > { %1680 = vrot.lane.b32.xlu1 %v1657_v10, %s3599_s22  ;;  %v2500_v40 = vpop.xlane.xlu0 %2499 }
 0xa0f   : > { %v2503_v52 = vpop.xlane.xlu1 %2502 }
 0xa11   : > { %2212 = vrot.lane.b32.xlu1 %v2191_v11, %s3600_s23 }
 0xa15   : > { %2216 = vrot.lane.b32.xlu1 %v2193_v46, %s3600_s23 }
 0xa20   : > { %v4393_v32 = vpop.xlane.xlu0 %2505 }
 0xa24   : > { %v2512_v49 = vpop.xlane.xlu0 %2511 }
 0xa28   : > { %v2509_v36 = vpop.xlane.xlu1 %2508 }
 0xa2c   : > { %v4395_v28 = vpop.xlane.xlu0 %2517  ;;  %v4397_v20 = vpop.xlane.xlu1 %2514 }
 0xa30   : > { %v925_v45 = vpop.xlane.xlu0 %924  ;;  %v928_v57 = vpop.xlane.xlu1 %927 }
 0xa31   : > { %3522 = vrcp.f32 %v925_v45 }
 0xa32   : > { %3524 = vrcp.f32 %v928_v57 }
 0xa34   : > { %v931_v53 = vpop.xlane.xlu0 %930  ;;  %v934_v23 = vpop.xlane.xlu1 %933 }
 0xa35   : > { %3526 = vrcp.f32 %v931_v53 }
 0xa36   : > { %3528 = vrcp.f32 %v934_v23 }
 0xa38   : > { %v937_v55 = vpop.xlane.xlu0 %936  ;;  %v940_v47 = vpop.xlane.xlu1 %939 }
 0xa39   : > { %3530 = vrcp.f32 %v937_v55 }
 0xa3a   : > { %3532 = vrcp.f32 %v940_v47 }
 0xa3b   : > { %v3523_v27 = vpop.eup %3522 }
 0xa3c   : > { %v3525_v21 = vpop.eup %3524  ;;  %v943_v39 = vpop.xlane.xlu0 %942  ;;  %v1147_v0 = vmul.f32 %v3523_v27, %v4509_v44 }
 0xa3d   : > { %3534 = vrcp.f32 %v943_v39  ;;  %v1148_v59 = vmul.f32 %v3525_v21, %v4510_v5 }
 0xa3e   : > { %1155 = vst.msk [vmem:[#allocation2] sm:$0xff] %vm668_vm2, %v1147_v0 }
 0xa3f   : > { %v3527_v33 = vpop.eup %3526  ;;  %1156 = vst.msk [vmem:[#allocation2 + $0x8] sm:$0xff] %vm668_vm2, %v1148_v59 }
 0xa40   : > { %v3529_v16 = vpop.eup %3528  ;;  %v1149_v60 = vmul.f32 %v3527_v33, %v4511_v14 }
 0xa41   : > { %v1150_v13 = vmul.f32 %v3529_v16, %v4512_v2 }
 0xa42   : > { %1157 = vst.msk [vmem:[#allocation2 + $0x10] sm:$0xff] %vm668_vm2, %v1149_v60 }
 0xa43   : > { %v3531_v3 = vpop.eup %3530  ;;  %v1667_v4 = vpop.permute.xlu0 %1666  ;;  %1158 = vst.msk [vmem:[#allocation2 + $0x18] sm:$0xff] %vm668_vm2, %v1150_v13 }
 0xa44   : > { %v3533_v18 = vpop.eup %3532  ;;  %1691 = vst.msk [vmem:[#allocation2] sm:$0xff] %vm1690_vm4, %v1667_v4  ;;  %v1151_v63 = vmul.f32 %v3531_v3, %v4513_v19 }
 0xa45   : > { %v1152_v12 = vmul.f32 %v3533_v18, %v4514_v15 }
 0xa46   : > { %1159 = vst.msk [vmem:[#allocation2 + $0x20] sm:$0xff] %vm668_vm2, %v1151_v63 }
 0xa47   : > { %v3535_v6 = vpop.eup %3534  ;;  %1160 = vst.msk [vmem:[#allocation2 + $0x28] sm:$0xff] %vm668_vm2, %v1152_v12 }
 0xa48   : > { %v1153_v17 = vmul.f32 %v3535_v6, %v4515_v61 }
 0xa4a   : > { %1161 = vst.msk [vmem:[#allocation2 + $0x30] sm:$0xff] %vm668_vm2, %v1153_v17 }
 0xa4f   : > { %v2203_v22 = vpop.permute.xlu0 %2202 }
 0xa50   : > { %2227 = vst.msk [vmem:[#allocation2] sm:$0xff] %vm2226_vm5, %v2203_v22  ;;  %v4415_v24 = vpop.xlane.xlu1 %2520 }
 0xa53   : > { %v2207_v50 = vpop.permute.xlu0 %2206 }
 0xa54   : > { %v946_v37 = vpop.xlane.xlu1 %945 }
 0xa55   : > { %3536 = vrcp.f32 %v946_v37 }
 0xa56   : > { %3538 = vrcp.f32 %v2500_v40 }
 0xa57   : > { %v1675_v38 = vpop.permute.xlu0 %1674  ;;  %3540 = vrcp.f32 %v2503_v52 }
 0xa58   : > { %1695 = vst.msk [vmem:[#allocation2 + $0x20] sm:$0xff] %vm1690_vm4, %v1675_v38  ;;  %3542 = vrcp.f32 %v4393_v32 }
 0xa59   : > { %3544 = vrcp.f32 %v2512_v49 }
 0xa5a   : > { %3546 = vrcp.f32 %v2509_v36 }
 0xa5b   : > { %v1679_v51 = vpop.permute.xlu0 %1678  ;;  %3548 = vrcp.f32 %v4397_v20 }
 0xa5c   : > { %1697 = vst.msk [vmem:[#allocation2 + $0x30] sm:$0xff] %vm1690_vm4, %v1679_v51  ;;  %3550 = vrcp.f32 %v4395_v28 }
 0xa5d   : > { %3552 = vrcp.f32 %v4415_v24 }
 0xa5f   : > { %v3537_v54 = vpop.eup %3536  ;;  %v2211_v29 = vpop.permute.xlu0 %2210 }
 0xa60   : > { %2231 = vst.msk [vmem:[#allocation2 + $0x20] sm:$0xff] %vm2226_vm5, %v2211_v29  ;;  %v1154_v1 = vmul.f32 %v3537_v54, %v4516_v9  ;;  %v3539_v7 = vpop.eup %3538 }
 0xa61   : > { %v3541_v62 = vpop.eup %3540 }
 0xa62   : > { %1162 = vst.msk [vmem:[#allocation2 + $0x38] sm:$0xff] %vm668_vm2, %v1154_v1  ;;  %v3543_v10 = vpop.eup %3542 }
 0xa63   : > { %v2215_v48 = vpop.permute.xlu0 %2214  ;;  %v3545_v41 = vpop.eup %3544 }
 0xa64   : > { %2233 = vst.msk [vmem:[#allocation2 + $0x30] sm:$0xff] %vm2226_vm5, %v2215_v48  ;;  %v3547_v32 = vpop.eup %3546  ;;  %v3059_v48 = vld [vmem:[%s4494_s6] ss:$0 sm:$0xff] }
 0xa65   : > { %v3549_v47 = vpop.eup %3548 }
 0xa66   : > { %v3551_v59 = vpop.eup %3550 }
 0xa67   : > { %v1669_v58 = vpop.permute.xlu1 %1668  ;;  %v3553_v60 = vpop.eup %3552 }
 0xa68   : > { %1692 = vst.msk [vmem:[#allocation2 + $0x8] sm:$0xff] %vm1690_vm4, %v1669_v58 }
 0xa69   : > { %v2574_v35 = vpop.f32.mrb[56].mxu0 }
 0xa6a   : > { %v2722_v8 = vmul.f32 %v3539_v7, %v2574_v35  ;;  %v3330_v25 = vpop.f32.mrb[57].mxu0 }
 0xa6b   : > { %v2577_v42 = vpop.f32.mrb[58].mxu0  ;;  %v1671_v31 = vpop.permute.xlu1 %1670 }
 0xa6c   : > { %v2723_v30 = vmul.f32 %v3541_v62, %v2577_v42  ;;  %1693 = vst.msk [vmem:[#allocation2 + $0x10] sm:$0xff] %vm1690_vm4, %v1671_v31  ;;  %v3331_v43 = vpop.f32.mrb[59].mxu0  ;;  %2738 = vrot.lane.b32.xlu0 %v2722_v8, %s3601_s28 }
 0xa6d   : > { %2229 = vst.msk [vmem:[#allocation2 + $0x10] sm:$0xff] %vm2226_vm5, %v2207_v50 }
 0xa6e   : > { %2740 = vrot.lane.b32.xlu1 %v2723_v30, %s3601_s28 }
 0xa6f   : > { %v1673_v26 = vpop.permute.xlu1 %1672  ;;  %v2621_v11 = vpop.f32.mrb[64].mxu1 }
 0xa70   : > { %1694 = vst.msk [vmem:[#allocation2 + $0x18] sm:$0xff] %vm1690_vm4, %v1673_v26  ;;  %v2724_v46 = vmul.f32 %v3543_v10, %v2621_v11  ;;  %v3336_v40 = vpop.f32.mrb[65].mxu1 }
 0xa71   : > { %v2624_v52 = vpop.f32.mrb[66].mxu1  ;;  %v2668_v49 = vpop.f32.mrb[60].mxu0 }
 0xa72   : > { %v2725_v36 = vmul.f32 %v3547_v32, %v2624_v52  ;;  %v2726_v20 = vmul.f32 %v3545_v41, %v2668_v49  ;;  %v3342_v45 = vpop.f32.mrb[61].mxu0  ;;  %2742 = vrot.lane.b32.xlu0 %v2724_v46, %s3601_s28  ;;  %v3337_v57 = vpop.f32.mrb[67].mxu1 }
 0xa73   : > { %v2671_v53 = vpop.f32.mrb[62].mxu0  ;;  %v2205_v23 = vpop.permute.xlu1 %2204 }
 0xa74   : > { %2228 = vst.msk [vmem:[#allocation2 + $0x8] sm:$0xff] %vm2226_vm5, %v2205_v23  ;;  %v3343_v55 = vpop.f32.mrb[63].mxu0  ;;  %2744 = vrot.lane.b32.xlu1 %v2725_v36, %s3601_s28  ;;  %v2727_v27 = vmul.f32 %v3549_v47, %v2671_v53 }
 0xa76   : > { %2746 = vrot.lane.b32.xlu0 %v2726_v20, %s3601_s28 }
 0xa77   : > { %v2209_v21 = vpop.permute.xlu1 %2208 }
 0xa78   : > { %2230 = vst.msk [vmem:[#allocation2 + $0x18] sm:$0xff] %vm2226_vm5, %v2209_v21  ;;  %2748 = vrot.lane.b32.xlu1 %v2727_v27, %s3601_s28 }
 0xa7b   : > { %v1677_v39 = vpop.permute.xlu1 %1676 }
 0xa7c   : > { %1696 = vst.msk [vmem:[#allocation2 + $0x28] sm:$0xff] %vm1690_vm4, %v1677_v39 }
 0xa7f   : > { %v1681_v44 = vpop.permute.xlu1 %1680 }
 0xa80   : > { %1698 = vst.msk [vmem:[#allocation2 + $0x38] sm:$0xff] %vm1690_vm4, %v1681_v44 }
 0xa83   : > { %v2213_v0 = vpop.permute.xlu1 %2212 }
 0xa84   : > { %2232 = vst.msk [vmem:[#allocation2 + $0x28] sm:$0xff] %vm2226_vm5, %v2213_v0 }
 0xa87   : > { %v2217_v5 = vpop.permute.xlu1 %2216 }
 0xa88   : > { %2234 = vst.msk [vmem:[#allocation2 + $0x38] sm:$0xff] %vm2226_vm5, %v2217_v5 }
 0xa97   : > { %v2715_v33 = vpop.f32.mrb[68].mxu1 }
 0xa98   : > { %v2728_v16 = vmul.f32 %v3551_v59, %v2715_v33  ;;  %v3348_v14 = vpop.f32.mrb[69].mxu1 }
 0xa99   : > { %v2718_v2 = vpop.f32.mrb[70].mxu1 }
 0xa9a   : > { %v2729_v13 = vmul.f32 %v3553_v60, %v2718_v2  ;;  %2750 = vrot.lane.b32.xlu0 %v2728_v16, %s3601_s28  ;;  %v3349_v3 = vpop.f32.mrb[71].mxu1 }
 0xa9c   : > { %2752 = vrot.lane.b32.xlu1 %v2729_v13, %s3601_s28 }
 0xade   : > { %v2739_v4 = vpop.permute.xlu0 %2738 }
 0xadf   : > { %2763 = vst.msk [vmem:[#allocation2] sm:$0xff] %vm2762_vm6, %v2739_v4 }
 0xae0   : > { %v2741_v18 = vpop.permute.xlu1 %2740 }
 0xae1   : > { %2764 = vst.msk [vmem:[#allocation2 + $0x8] sm:$0xff] %vm2762_vm6, %v2741_v18 }
 0xae4   : > { %v2743_v28 = vpop.permute.xlu0 %2742 }
 0xae5   : > { %2765 = vst.msk [vmem:[#allocation2 + $0x10] sm:$0xff] %vm2762_vm6, %v2743_v28 }
 0xae6   : > { %v2745_v19 = vpop.permute.xlu1 %2744  ;;  %v2771_v15 = vld [vmem:[#allocation2] sm:$0xff] }
 0xae7   : > { %2766 = vst.msk [vmem:[#allocation2 + $0x18] sm:$0xff] %vm2762_vm6, %v2745_v19 }
 0xae8   : > { %v2747_v63 = vpop.permute.xlu0 %2746  ;;  %v2772_v12 = vld [vmem:[#allocation2 + $0x8] sm:$0xff] }
 0xae9   : > { %2767 = vst.msk [vmem:[#allocation2 + $0x20] sm:$0xff] %vm2762_vm6, %v2747_v63  ;;  %v2779_v6 = vpack.c.bf16 %v2772_v12, %v2771_v15 }
 0xaea   : > { %v2749_v61 = vpop.permute.xlu1 %2748 }
 0xaeb   : > { %2768 = vst.msk [vmem:[#allocation2 + $0x28] sm:$0xff] %vm2762_vm6, %v2749_v61  ;;  %3354 = vmatprep.mubr.msk.bf16.mxu0 %vm413_vm0, %v2779_v6 }
 0xaec   : > { %v2773_v17 = vld [vmem:[#allocation2 + $0x10] sm:$0xff] }
 0xaee   : > { %v2774_v22 = vld [vmem:[#allocation2 + $0x18] sm:$0xff] }
 0xaef   : > { %v2780_v24 = vpack.c.bf16 %v2774_v22, %v2773_v17 }
 0xaf0   : > { %v2775_v50 = vld [vmem:[#allocation2 + $0x20] sm:$0xff] }
 0xaf1   : > { %3355 = vmatmul.mubr.msk.bf16.vlgmr.msra.gmra.mrb[64].mxu0 %vm413_vm0, %v2780_v24 }
 0xaf2   : > { %v2776_v37 = vld [vmem:[#allocation2 + $0x28] sm:$0xff] }
 0xaf3   : > { %v2781_v38 = vpack.c.bf16 %v2776_v37, %v2775_v50 }
 0xaf5   : > { %3358 = vmatprep.mubr.msk.bf16.mxu0 %vm413_vm0, %v2781_v38 }
 0xb0c   : > { %v2751_v51 = vpop.permute.xlu0 %2750 }
 0xb0d   : > { %2769 = vst.msk [vmem:[#allocation2 + $0x30] sm:$0xff] %vm2762_vm6, %v2751_v51 }
 0xb0e   : > { %v2753_v54 = vpop.permute.xlu1 %2752 }
 0xb0f   : > { %2770 = vst.msk [vmem:[#allocation2 + $0x38] sm:$0xff] %vm2762_vm6, %v2753_v54 }
 0xb14   : > { %v2777_v29 = vld [vmem:[#allocation2 + $0x30] sm:$0xff] }
 0xb16   : > { %v2778_v9 = vld [vmem:[#allocation2 + $0x38] sm:$0xff] }
 0xb17   : > { %v2782_v1 = vpack.c.bf16 %v2778_v9, %v2777_v29 }
 0xb19   : > { %3359 = vmatmul.mubr.msk.bf16.gmra.mrb[68].mxu0 %vm413_vm0, %v2782_v1 }
 0xbc4   : > { %v3356_v58 = vpop.f32.mrb[64].mxu0 }
 0xbc5   : > { %v2861_v34 = vadd.f32 %v3356_v58, %v3059_v48  ;;  %v2852_v7 = vpop.f32.mrb[65].mxu0 }
 0xbc6   : > { %v2853_v35 = vadd.f32 %v3059_v48, %v2852_v7  ;;  %v3357_v8 = vpop.f32.mrb[66].mxu0 }
 0xbc7   : > { %2885 = vst.msk [vmem:[%s400_s17 + $0x10] sm:$0xff] %vm413_vm0, %v2861_v34  ;;  %v2864_v25 = vadd.f32 %v3357_v8, %v3059_v48  ;;  %v2855_v62 = vpop.f32.mrb[67].mxu0 }
 0xbc8   : > { %2883 = vst.msk [vmem:[%s400_s17] sm:$0xff] %vm413_vm0, %v2853_v35  ;;  %v2856_v42 = vadd.f32 %v3059_v48, %v2855_v62 }
 0xbc9   : > { %2886 = vst.msk [vmem:[%s400_s17 + $0x18] sm:$0xff] %vm413_vm0, %v2864_v25 }
 0xbca   : > { %2884 = vst.msk [vmem:[%s400_s17 + $0x8] sm:$0xff] %vm413_vm0, %v2856_v42 }
 0xbec   : > { %v3360_v31 = vpop.f32.mrb[68].mxu0 }
 0xbed   : > { %v2877_v56 = vadd.f32 %v3360_v31, %v3059_v48  ;;  %v2868_v30 = vpop.f32.mrb[69].mxu0 }
 0xbee   : > { %v2869_v43 = vadd.f32 %v3059_v48, %v2868_v30  ;;  %v3361_v10 = vpop.f32.mrb[70].mxu0 }
 0xbef   : > { %2889 = vst.msk [vmem:[%s400_s17 + $0x30] sm:$0xff] %vm413_vm0, %v2877_v56  ;;  %v2880_v26 = vadd.f32 %v3361_v10, %v3059_v48  ;;  %v2871_v11 = vpop.f32.mrb[71].mxu0 }
 0xbf0   : > { %2887 = vst.msk [vmem:[%s400_s17 + $0x20] sm:$0xff] %vm413_vm0, %v2869_v43  ;;  %v2872_v41 = vadd.f32 %v3059_v48, %v2871_v11 }
 0xbf1   : > { %2890 = vst.msk [vmem:[%s400_s17 + $0x38] sm:$0xff] %vm413_vm0, %v2880_v26 }
 0xbf2   : > { %2888 = vst.msk [vmem:[%s400_s17 + $0x28] sm:$0xff] %vm413_vm0, %v2872_v41 }
 0xbf3 PF: > { %s19_s11 = sadd.s32 1, %s3584_s11   ;;  %s4517_s30 = smov %s3580_s10 }
 0xbf4   : > { %p16_p5 = scmp.ge.s32.totalorder %s19_s11, 4   ;;  %s4518_s10 = smov %s4520_s12 }
 0xbf6   :  { %18 = sbr.rel (!%p16_p5) target bundleno = 2 (0x2), region = 92 }

</bundles_post_ra>
